<compile_context>
chip_gen: v7x
topology: tpu7x:2x2x1
jax: 0.10.0
libtpu: 0.0.40
codegen_flags: <defaults>
</compile_context>

<pallas_src>
import jax
import jax.numpy as jnp
from jax.experimental import pallas as pl
from jax.experimental.pallas import tpu as pltpu


def _round_up(x, m):
    return -(-x // m) * m


# ----------------------------------------------------------------------------
# Fused forward kernel
# ----------------------------------------------------------------------------
def _fused_kernel(x_ref, wk1_ref, bst1_ref, wk2_ref, bst2_ref,
                  w1_ref, b1_ref, w2_ref, b2_ref, o_ref):
    """One batch tile end-to-end.

    x_ref   : (BT, H, W)            bf16 input images
    wk1_ref : (3, W, C1P)           bf16 per-row-tap block-Toeplitz conv1 weights
    bst1_ref: (3, C1P)              f32 rows = [bias, bn_scale, bn_shift] (lane-padded w/ 0)
    wk2_ref : (3*C1P, C2P)          bf16 merged-tap block-Toeplitz conv2 weights
    bst2_ref: (3, C2P)              f32 rows = [bias, bn_scale, bn_shift]
    w1_ref  : (OH2, C2P, 128)       bf16 fc1 weights, columns permuted to (h, w, c) order
    b1_ref  : (1, 128)              f32
    w2_ref  : (128, LPAD)           bf16 fc2 weights (label dim padded to 128 lanes)
    b2_ref  : (1, LPAD)             f32
    o_ref   : (BT, LPAD)            f32 logits (lane-dense stores)
    """
    bt, h_in, w_in = x_ref.shape
    oh1 = h_in - 2
    oh2 = h_in - 4
    c1p = wk1_ref.shape[2]
    c2p = wk2_ref.shape[1]

    # ---- conv1 + bias + ReLU + inference BN --------------------------------
    x = x_ref[...]                                            # bf16, cast hoisted to host
    acc1 = jnp.dot(x[:, 0:oh1, :].reshape(bt * oh1, w_in), wk1_ref[0],
                   preferred_element_type=jnp.float32)
    for k in (1, 2):                                          # unrolled row taps (K=8 each)
        acc1 = acc1 + jnp.dot(x[:, k:k + oh1, :].reshape(bt * oh1, w_in),
                              wk1_ref[k], preferred_element_type=jnp.float32)
    z1 = jnp.maximum(acc1 + bst1_ref[0:1, :], 0.0)            # bias + ReLU   (f32)
    z1 = z1 * bst1_ref[1:2, :] + bst1_ref[2:3, :]             # folded BN     (f32)
    y1 = z1.reshape(bt, oh1, c1p).astype(jnp.bfloat16)        # padded lanes stay 0

    # ---- conv2: 3 row taps merged into ONE matmul (K = 3*C1P, 128-aligned) --
    lhs2 = jnp.concatenate([y1[:, k:k + oh2, :] for k in range(3)], axis=-1)
    lhs2 = lhs2.reshape(bt * oh2, 3 * c1p)
    acc2 = jnp.dot(lhs2, wk2_ref[...], preferred_element_type=jnp.float32)
    z2 = jnp.maximum(acc2 + bst2_ref[0:1, :], 0.0)
    z2 = z2 * bst2_ref[1:2, :] + bst2_ref[2:3, :]
    y2 = z2.reshape(bt, oh2, c2p).astype(jnp.bfloat16)

    # ---- dropout2: identity (inference semantics) ---------------------------
    # ---- fc1 + ReLU: accumulate per conv2 output row (no lane relayout) -----
    hacc = jnp.dot(y2[:, 0, :], w1_ref[0], preferred_element_type=jnp.float32)
    for r in range(1, oh2):
        hacc = hacc + jnp.dot(y2[:, r, :], w1_ref[r],
                              preferred_element_type=jnp.float32)
    h = jnp.maximum(hacc + b1_ref[...], 0.0).astype(jnp.bfloat16)

    # ---- fc2 -----------------------------------------------------------------
    o_ref[...] = jnp.dot(h, w2_ref[...],
                         preferred_element_type=jnp.float32) + b2_ref[...]


def cnn_forward(x, packed, window_length, axis_num, label_num, batch_tile=128):
    """x: (N, 1, H, W) float32  ->  (N, label_num) float32 logits."""
    N = x.shape[0]
    H, W = window_length, axis_num

    # Batch-tile sizing: 128 rows/step by default (MXU-friendly on all gens),
    # shrunk for tiny batches.  Real batches give >=2 grid steps (v7x megacore).
    bt = min(batch_tile, max(8, _round_up(N, 8)))
    n_pad = _round_up(N, bt)

    x_img = x.reshape(N, H, W).astype(jnp.bfloat16)           # C=1 squeeze + hoisted cast
    if n_pad != N:
        x_img = jnp.pad(x_img, ((0, n_pad - N), (0, 0), (0, 0)))

    wk1, bst1 = packed["wk1"], packed["bst1"]
    wk2, bst2 = packed["wk2"], packed["bst2"]
    w1p, b1p = packed["w1p"], packed["b1p"]
    w2p, b2p = packed["w2p"], packed["b2p"]
    lpad = w2p.shape[1]

    out = pl.pallas_call(
        _fused_kernel,
        out_shape=jax.ShapeDtypeStruct((n_pad, lpad), jnp.float32),
        grid=(n_pad // bt,),
        in_specs=[
            pl.BlockSpec((bt, H, W), lambda i: (i, 0, 0)),        # batch tile
            pl.BlockSpec(wk1.shape, lambda i: (0, 0, 0)),         # resident weights
            pl.BlockSpec(bst1.shape, lambda i: (0, 0)),
            pl.BlockSpec(wk2.shape, lambda i: (0, 0)),
            pl.BlockSpec(bst2.shape, lambda i: (0, 0)),
            pl.BlockSpec(w1p.shape, lambda i: (0, 0, 0)),
            pl.BlockSpec(b1p.shape, lambda i: (0, 0)),
            pl.BlockSpec(w2p.shape, lambda i: (0, 0)),
            pl.BlockSpec(b2p.shape, lambda i: (0, 0)),
        ],
        out_specs=pl.BlockSpec((bt, lpad), lambda i: (i, 0)),     # lane-dense stores
        compiler_params=pltpu.CompilerParams(
            dimension_semantics=("parallel",),                    # megacore-shardable
            vmem_limit_bytes=32 * 1024 * 1024),
    )(x_img, wk1, bst1, wk2, bst2, w1p, b1p, w2p, b2p)

    return out[:N, :label_num]


# ----------------------------------------------------------------------------
# Host-side one-time parameter packing (block-Toeplitz conv weights, BN folding,
# fc column permutation, lane padding) — all at init, zero runtime cost.
# ----------------------------------------------------------------------------
def pack_params(p, window_length, axis_num, label_num, eps=1e-5):
    H, W = window_length, axis_num
    OH1, OW1 = H - 2, W - 2
    OH2, OW2 = H - 4, W - 4
    OC1, OC2 = 32, 64
    C1, C2 = OW1 * OC1, OW2 * OC2
    c1p, c2p = _round_up(C1, 128), _round_up(C2, 128)   # 192 -> 256 lane pad etc.
    lpad = _round_up(label_num, 128)

    # conv1: (3, W, c1p) per-row-tap block-Toeplitz slabs (lane-padded with zeros).
    wk1 = jnp.zeros((3, W, c1p), jnp.float32)
    for ki in range(3):
        for kj in range(3):
            for j in range(OW1):
                wk1 = wk1.at[ki, j + kj, j * OC1:(j + 1) * OC1].set(
                    p["conv1_w"][:, 0, ki, kj])

    s1 = p["bn1_gamma"] / jnp.sqrt(p["bn1_var"] + eps)
    t1 = p["bn1_beta"] - p["bn1_mean"] * s1
    bst1 = jnp.zeros((3, c1p), jnp.float32)
    bst1 = bst1.at[0, :C1].set(jnp.tile(p["conv1_b"], OW1))
    bst1 = bst1.at[1, :C1].set(jnp.tile(s1, OW1))
    bst1 = bst1.at[2, :C1].set(jnp.tile(t1, OW1))
    # padded lanes: max(0 + 0, 0) * 0 + 0 == 0  ->  conv1's lane pad stays exactly 0.

    # conv2: merged-tap block-Toeplitz slab (3*c1p, c2p); LHS lanes are
    # [tap0 | tap1 | tap2] each c1p wide, so row index = ki*c1p + (j+kj)*32 + ic.
    wk2 = jnp.zeros((3 * c1p, c2p), jnp.float32)
    for ki in range(3):
        for kj in range(3):
            for j in range(OW2):
                r0 = ki * c1p + (j + kj) * OC1
                wk2 = wk2.at[r0:r0 + OC1, j * OC2:(j + 1) * OC2].set(
                    p["conv2_w"][:, :, ki, kj].T)

    s2 = p["bn2_gamma"] / jnp.sqrt(p["bn2_var"] + eps)
    t2 = p["bn2_beta"] - p["bn2_mean"] * s2
    bst2 = jnp.zeros((3, c2p), jnp.float32)
    bst2 = bst2.at[0, :C2].set(jnp.tile(p["conv2_b"], OW2))
    bst2 = bst2.at[1, :C2].set(jnp.tile(s2, OW2))
    bst2 = bst2.at[2, :C2].set(jnp.tile(t2, OW2))

    # fc1: PyTorch flatten order is (c, h, w); kernel's y2 layout is (h, lane = w*64+c).
    # Permute columns once -> (OH2, c2p, 128), zero rows in the lane-pad region.
    w1hwc = (p["fc1_w"].reshape(128, OC2, OH2, OW2)
             .transpose(2, 3, 1, 0).reshape(OH2, C2, 128))
    w1p = jnp.zeros((OH2, c2p, 128), jnp.float32).at[:, :C2, :].set(w1hwc)
    b1p = p["fc1_b"][None, :].astype(jnp.float32)

    # fc2: transpose + pad the tiny label dim up to a 128-lane multiple.
    w2p = jnp.zeros((128, lpad), jnp.float32).at[:, :label_num].set(p["fc2_w"].T)
    b2p = jnp.zeros((1, lpad), jnp.float32).at[:, :label_num].set(p["fc2_b"][None, :])

    return {
        "wk1": wk1.astype(jnp.bfloat16), "bst1": bst1,
        "wk2": wk2.astype(jnp.bfloat16), "bst2": bst2,
        "w1p": w1p.astype(jnp.bfloat16), "b1p": b1p,
        "w2p": w2p.astype(jnp.bfloat16), "b2p": b2p,
    }


def init_params(key, window_length, axis_num, label_num):
    feat = 64 * (window_length - 4) * (axis_num - 4)
    ks = jax.random.split(key, 16)

    def nrm(k, shape, s=0.1):
        return (s * jax.random.normal(k, shape)).astype(jnp.float32)

    p = {
        "conv1_w": nrm(ks[0], (32, 1, 3, 3)),
        "conv1_b": nrm(ks[1], (32,)),
        "bn1_gamma": 1.0 + nrm(ks[2], (32,), 0.05),
        "bn1_beta": nrm(ks[3], (32,), 0.05),
        "bn1_mean": nrm(ks[4], (32,), 0.05),
        "bn1_var": 1.0 + jnp.abs(nrm(ks[5], (32,), 0.05)),
        "conv2_w": nrm(ks[6], (64, 32, 3, 3)),
        "conv2_b": nrm(ks[7], (64,)),
        "bn2_gamma": 1.0 + nrm(ks[8], (64,), 0.05),
        "bn2_beta": nrm(ks[9], (64,), 0.05),
        "bn2_mean": nrm(ks[10], (64,), 0.05),
        "bn2_var": 1.0 + jnp.abs(nrm(ks[11], (64,), 0.05)),
        "fc1_w": nrm(ks[12], (128, feat), 0.02),
        "fc1_b": nrm(ks[13], (128,)),
        "fc2_w": nrm(ks[14], (label_num, 128)),
        "fc2_b": nrm(ks[15], (label_num,)),
    }
    # Make matmul weights exactly bf16-representable so the kernel (bf16 MXU operands,
    # f32 accumulation) and the f32 reference consume identical values.
    for k in ("conv1_w", "conv2_w", "fc1_w", "fc2_w"):
        p[k] = p[k].astype(jnp.bfloat16).astype(jnp.float32)
    return p


# ----------------------------------------------------------------------------
# Pure-JAX reference (sanity check only)
# ----------------------------------------------------------------------------
def reference_forward(x, p):
    eps = 1e-5
    dn = ("NCHW", "OIHW", "NCHW")
    hp = jax.lax.Precision.HIGHEST

    def bn(z, g, b, m, v):
        return (z - m[None, :, None, None]) / jnp.sqrt(v + eps)[None, :, None, None] \
               * g[None, :, None, None] + b[None, :, None, None]

    z = jax.lax.conv_general_dilated(x, p["conv1_w"], (1, 1), "VALID",
                                     dimension_numbers=dn, precision=hp)
    z = jnp.maximum(z + p["conv1_b"][None, :, None, None], 0.0)
    z = bn(z, p["bn1_gamma"], p["bn1_beta"], p["bn1_mean"], p["bn1_var"])
    z = jax.lax.conv_general_dilated(z, p["conv2_w"], (1, 1), "VALID",
                                     dimension_numbers=dn, precision=hp)
    z = jnp.maximum(z + p["conv2_b"][None, :, None, None], 0.0)
    z = bn(z, p["bn2_gamma"], p["bn2_beta"], p["bn2_mean"], p["bn2_var"])
    z = z.reshape(z.shape[0], -1)
    z = jnp.maximum(jnp.dot(z, p["fc1_w"].T, precision=hp) + p["fc1_b"], 0.0)
    z = jnp.dot(z, p["fc2_w"].T, precision=hp) + p["fc2_b"]
    return z


# ----------------------------------------------------------------------------
if __name__ == "__main__":
    # small shapes consistent with the module: window_length=12, axis_num=8
    batch, window_length, axis_num, label_num = 2, 12, 8, 5

    key = jax.random.PRNGKey(0)
    kx, kp = jax.random.split(key)
    x = jax.random.normal(kx, (batch, 1, window_length, axis_num), dtype=jnp.float32)
    params = init_params(kp, window_length, axis_num, label_num)
    packed = pack_params(params, window_length, axis_num, label_num)

    out = cnn_forward(x, packed, window_length, axis_num, label_num)
    out = jax.block_until_ready(out)

    ref = reference_forward(x, params)
    assert out.shape == (batch, label_num)
    # bf16 matmul operands / bf16 intermediate activations vs f32 HIGHEST reference
    assert jnp.allclose(out, ref, rtol=2e-2, atol=2e-2), "mismatch vs reference"

    print("KERNEL_OK")
</pallas_src>

<mosaic_0001>
module attributes {stable_mosaic.version = 11 : i64} {
  func.func @_fused_kernel(%arg0: i32, %arg1: memref<8x12x8xbf16, #tpu.memory_space<vmem>>, %arg2: memref<3x8x256xbf16, #tpu.memory_space<vmem>>, %arg3: memref<3x256xf32, #tpu.memory_space<vmem>>, %arg4: memref<768x256xbf16, #tpu.memory_space<vmem>>, %arg5: memref<3x256xf32, #tpu.memory_space<vmem>>, %arg6: memref<8x256x128xbf16, #tpu.memory_space<vmem>>, %arg7: memref<1x128xf32, #tpu.memory_space<vmem>>, %arg8: memref<128x128xbf16, #tpu.memory_space<vmem>>, %arg9: memref<1x128xf32, #tpu.memory_space<vmem>>, %arg10: memref<8x128xf32, #tpu.memory_space<vmem>>) attributes {dimension_semantics = [#tpu.dimension_semantics<parallel>], iteration_bounds = array<i64: 1>, scalar_prefetch = 0 : i64, scratch_operands = 0 : i64, tpu.core_type = #tpu.core_type<tc>, window_params = [{transform_indices = @transform_0, window_bounds = array<i64: 8, 12, 8>}, {pipeline_mode = #tpu.pipeline_mode<synchronous>, transform_indices = @transform_1, window_bounds = array<i64: 3, 8, 256>}, {pipeline_mode = #tpu.pipeline_mode<synchronous>, transform_indices = @transform_2, window_bounds = array<i64: 3, 256>}, {pipeline_mode = #tpu.pipeline_mode<synchronous>, transform_indices = @transform_3, window_bounds = array<i64: 768, 256>}, {pipeline_mode = #tpu.pipeline_mode<synchronous>, transform_indices = @transform_4, window_bounds = array<i64: 3, 256>}, {pipeline_mode = #tpu.pipeline_mode<synchronous>, transform_indices = @transform_5, window_bounds = array<i64: 8, 256, 128>}, {pipeline_mode = #tpu.pipeline_mode<synchronous>, transform_indices = @transform_6, window_bounds = array<i64: 1, 128>}, {pipeline_mode = #tpu.pipeline_mode<synchronous>, transform_indices = @transform_7, window_bounds = array<i64: 128, 128>}, {pipeline_mode = #tpu.pipeline_mode<synchronous>, transform_indices = @transform_8, window_bounds = array<i64: 1, 128>}, {transform_indices = @transform_9, window_bounds = array<i64: 8, 128>}]} {
    %c0 = arith.constant 0 : index
    %c0_0 = arith.constant 0 : index
    %c0_1 = arith.constant 0 : index
    %0 = vector.load %arg1[%c0, %c0_0, %c0_1] : memref<8x12x8xbf16, #tpu.memory_space<vmem>>, vector<8x12x8xbf16>
    %1 = vector.extract_strided_slice %0 {offsets = [0, 0, 0], sizes = [8, 10, 8], strides = [1, 1, 1]} : vector<8x12x8xbf16> to vector<8x10x8xbf16>
    %2 = vector.shape_cast %1 : vector<8x10x8xbf16> to vector<80x8xbf16>
    %c0_2 = arith.constant 0 : index
    %c0_3 = arith.constant 0 : index
    %c0_4 = arith.constant 0 : index
    %3 = vector.load %arg2[%c0_2, %c0_3, %c0_4] : memref<3x8x256xbf16, #tpu.memory_space<vmem>>, vector<1x8x256xbf16>
    %4 = vector.shape_cast %3 : vector<1x8x256xbf16> to vector<8x256xbf16>
    %cst = arith.constant dense<0.000000e+00> : vector<80x256xf32>
    %5 = tpu.matmul %2, %4, %cst {dimension_numbers = #tpu.dot_dimension_numbers<[1], [0], [0], [1], [0, 0, 1, 1], [], []>} : vector<80x8xbf16>, vector<8x256xbf16>, vector<80x256xf32> -> vector<80x256xf32>
    %6 = vector.extract_strided_slice %0 {offsets = [0, 1, 0], sizes = [8, 10, 8], strides = [1, 1, 1]} : vector<8x12x8xbf16> to vector<8x10x8xbf16>
    %7 = vector.shape_cast %6 : vector<8x10x8xbf16> to vector<80x8xbf16>
    %c1 = arith.constant 1 : index
    %c0_5 = arith.constant 0 : index
    %c0_6 = arith.constant 0 : index
    %8 = vector.load %arg2[%c1, %c0_5, %c0_6] : memref<3x8x256xbf16, #tpu.memory_space<vmem>>, vector<1x8x256xbf16>
    %9 = vector.shape_cast %8 : vector<1x8x256xbf16> to vector<8x256xbf16>
    %cst_7 = arith.constant dense<0.000000e+00> : vector<80x256xf32>
    %10 = tpu.matmul %7, %9, %cst_7 {dimension_numbers = #tpu.dot_dimension_numbers<[1], [0], [0], [1], [0, 0, 1, 1], [], []>} : vector<80x8xbf16>, vector<8x256xbf16>, vector<80x256xf32> -> vector<80x256xf32>
    %11 = arith.addf %5, %10 : vector<80x256xf32>
    %12 = vector.extract_strided_slice %0 {offsets = [0, 2, 0], sizes = [8, 10, 8], strides = [1, 1, 1]} : vector<8x12x8xbf16> to vector<8x10x8xbf16>
    %13 = vector.shape_cast %12 : vector<8x10x8xbf16> to vector<80x8xbf16>
    %c2 = arith.constant 2 : index
    %c0_8 = arith.constant 0 : index
    %c0_9 = arith.constant 0 : index
    %14 = vector.load %arg2[%c2, %c0_8, %c0_9] : memref<3x8x256xbf16, #tpu.memory_space<vmem>>, vector<1x8x256xbf16>
    %15 = vector.shape_cast %14 : vector<1x8x256xbf16> to vector<8x256xbf16>
    %cst_10 = arith.constant dense<0.000000e+00> : vector<80x256xf32>
    %16 = tpu.matmul %13, %15, %cst_10 {dimension_numbers = #tpu.dot_dimension_numbers<[1], [0], [0], [1], [0, 0, 1, 1], [], []>} : vector<80x8xbf16>, vector<8x256xbf16>, vector<80x256xf32> -> vector<80x256xf32>
    %17 = arith.addf %11, %16 : vector<80x256xf32>
    %c0_11 = arith.constant 0 : index
    %c0_12 = arith.constant 0 : index
    %18 = vector.load %arg3[%c0_11, %c0_12] : memref<3x256xf32, #tpu.memory_space<vmem>>, vector<1x256xf32>
    %19 = vector.broadcast %18 : vector<1x256xf32> to vector<80x256xf32>
    %20 = arith.addf %17, %19 : vector<80x256xf32>
    %cst_13 = arith.constant 0.000000e+00 : f32
    %21 = vector.broadcast %cst_13 : f32 to vector<80x256xf32>
    %22 = arith.maximumf %20, %21 : vector<80x256xf32>
    %c1_14 = arith.constant 1 : index
    %c0_15 = arith.constant 0 : index
    %23 = vector.load %arg3[%c1_14, %c0_15] : memref<3x256xf32, #tpu.memory_space<vmem>>, vector<1x256xf32>
    %24 = vector.broadcast %23 : vector<1x256xf32> to vector<80x256xf32>
    %25 = arith.mulf %22, %24 : vector<80x256xf32>
    %c2_16 = arith.constant 2 : index
    %c0_17 = arith.constant 0 : index
    %26 = vector.load %arg3[%c2_16, %c0_17] : memref<3x256xf32, #tpu.memory_space<vmem>>, vector<1x256xf32>
    %27 = vector.broadcast %26 : vector<1x256xf32> to vector<80x256xf32>
    %28 = arith.addf %25, %27 : vector<80x256xf32>
    %29 = vector.shape_cast %28 : vector<80x256xf32> to vector<8x10x256xf32>
    %30 = arith.truncf %29 : vector<8x10x256xf32> to vector<8x10x256xbf16>
    %31 = vector.extract_strided_slice %30 {offsets = [0, 0, 0], sizes = [8, 8, 256], strides = [1, 1, 1]} : vector<8x10x256xbf16> to vector<8x8x256xbf16>
    %32 = vector.extract_strided_slice %30 {offsets = [0, 1, 0], sizes = [8, 8, 256], strides = [1, 1, 1]} : vector<8x10x256xbf16> to vector<8x8x256xbf16>
    %33 = vector.extract_strided_slice %30 {offsets = [0, 2, 0], sizes = [8, 8, 256], strides = [1, 1, 1]} : vector<8x10x256xbf16> to vector<8x8x256xbf16>
    %34 = tpu.concatenate %31, %32, %33 in 2 : vector<8x8x256xbf16>, vector<8x8x256xbf16>, vector<8x8x256xbf16> -> vector<8x8x768xbf16>
    %35 = vector.shape_cast %34 : vector<8x8x768xbf16> to vector<64x768xbf16>
    %c0_18 = arith.constant 0 : index
    %c0_19 = arith.constant 0 : index
    %36 = vector.load %arg4[%c0_18, %c0_19] : memref<768x256xbf16, #tpu.memory_space<vmem>>, vector<768x256xbf16>
    %cst_20 = arith.constant dense<0.000000e+00> : vector<64x256xf32>
    %37 = tpu.matmul %35, %36, %cst_20 {dimension_numbers = #tpu.dot_dimension_numbers<[1], [0], [0], [1], [0, 0, 1, 1], [], []>} : vector<64x768xbf16>, vector<768x256xbf16>, vector<64x256xf32> -> vector<64x256xf32>
    %c0_21 = arith.constant 0 : index
    %c0_22 = arith.constant 0 : index
    %38 = vector.load %arg5[%c0_21, %c0_22] : memref<3x256xf32, #tpu.memory_space<vmem>>, vector<1x256xf32>
    %39 = vector.broadcast %38 : vector<1x256xf32> to vector<64x256xf32>
    %40 = arith.addf %37, %39 : vector<64x256xf32>
    %cst_23 = arith.constant 0.000000e+00 : f32
    %41 = vector.broadcast %cst_23 : f32 to vector<64x256xf32>
    %42 = arith.maximumf %40, %41 : vector<64x256xf32>
    %c1_24 = arith.constant 1 : index
    %c0_25 = arith.constant 0 : index
    %43 = vector.load %arg5[%c1_24, %c0_25] : memref<3x256xf32, #tpu.memory_space<vmem>>, vector<1x256xf32>
    %44 = vector.broadcast %43 : vector<1x256xf32> to vector<64x256xf32>
    %45 = arith.mulf %42, %44 : vector<64x256xf32>
    %c2_26 = arith.constant 2 : index
    %c0_27 = arith.constant 0 : index
    %46 = vector.load %arg5[%c2_26, %c0_27] : memref<3x256xf32, #tpu.memory_space<vmem>>, vector<1x256xf32>
    %47 = vector.broadcast %46 : vector<1x256xf32> to vector<64x256xf32>
    %48 = arith.addf %45, %47 : vector<64x256xf32>
    %49 = vector.shape_cast %48 : vector<64x256xf32> to vector<8x8x256xf32>
    %50 = arith.truncf %49 : vector<8x8x256xf32> to vector<8x8x256xbf16>
    %51 = vector.extract_strided_slice %50 {offsets = [0, 0, 0], sizes = [8, 1, 256], strides = [1, 1, 1]} : vector<8x8x256xbf16> to vector<8x1x256xbf16>
    %52 = vector.shape_cast %51 : vector<8x1x256xbf16> to vector<8x256xbf16>
    %c0_28 = arith.constant 0 : index
    %c0_29 = arith.constant 0 : index
    %c0_30 = arith.constant 0 : index
    %53 = vector.load %arg6[%c0_28, %c0_29, %c0_30] : memref<8x256x128xbf16, #tpu.memory_space<vmem>>, vector<1x256x128xbf16>
    %54 = vector.shape_cast %53 : vector<1x256x128xbf16> to vector<256x128xbf16>
    %cst_31 = arith.constant dense<0.000000e+00> : vector<8x128xf32>
    %55 = tpu.matmul %52, %54, %cst_31 {dimension_numbers = #tpu.dot_dimension_numbers<[1], [0], [0], [1], [0, 0, 1, 1], [], []>} : vector<8x256xbf16>, vector<256x128xbf16>, vector<8x128xf32> -> vector<8x128xf32>
    %56 = vector.extract_strided_slice %50 {offsets = [0, 1, 0], sizes = [8, 1, 256], strides = [1, 1, 1]} : vector<8x8x256xbf16> to vector<8x1x256xbf16>
    %57 = vector.shape_cast %56 : vector<8x1x256xbf16> to vector<8x256xbf16>
    %c1_32 = arith.constant 1 : index
    %c0_33 = arith.constant 0 : index
    %c0_34 = arith.constant 0 : index
    %58 = vector.load %arg6[%c1_32, %c0_33, %c0_34] : memref<8x256x128xbf16, #tpu.memory_space<vmem>>, vector<1x256x128xbf16>
    %59 = vector.shape_cast %58 : vector<1x256x128xbf16> to vector<256x128xbf16>
    %cst_35 = arith.constant dense<0.000000e+00> : vector<8x128xf32>
    %60 = tpu.matmul %57, %59, %cst_35 {dimension_numbers = #tpu.dot_dimension_numbers<[1], [0], [0], [1], [0, 0, 1, 1], [], []>} : vector<8x256xbf16>, vector<256x128xbf16>, vector<8x128xf32> -> vector<8x128xf32>
    %61 = arith.addf %55, %60 : vector<8x128xf32>
    %62 = vector.extract_strided_slice %50 {offsets = [0, 2, 0], sizes = [8, 1, 256], strides = [1, 1, 1]} : vector<8x8x256xbf16> to vector<8x1x256xbf16>
    %63 = vector.shape_cast %62 : vector<8x1x256xbf16> to vector<8x256xbf16>
    %c2_36 = arith.constant 2 : index
    %c0_37 = arith.constant 0 : index
    %c0_38 = arith.constant 0 : index
    %64 = vector.load %arg6[%c2_36, %c0_37, %c0_38] : memref<8x256x128xbf16, #tpu.memory_space<vmem>>, vector<1x256x128xbf16>
    %65 = vector.shape_cast %64 : vector<1x256x128xbf16> to vector<256x128xbf16>
    %cst_39 = arith.constant dense<0.000000e+00> : vector<8x128xf32>
    %66 = tpu.matmul %63, %65, %cst_39 {dimension_numbers = #tpu.dot_dimension_numbers<[1], [0], [0], [1], [0, 0, 1, 1], [], []>} : vector<8x256xbf16>, vector<256x128xbf16>, vector<8x128xf32> -> vector<8x128xf32>
    %67 = arith.addf %61, %66 : vector<8x128xf32>
    %68 = vector.extract_strided_slice %50 {offsets = [0, 3, 0], sizes = [8, 1, 256], strides = [1, 1, 1]} : vector<8x8x256xbf16> to vector<8x1x256xbf16>
    %69 = vector.shape_cast %68 : vector<8x1x256xbf16> to vector<8x256xbf16>
    %c3 = arith.constant 3 : index
    %c0_40 = arith.constant 0 : index
    %c0_41 = arith.constant 0 : index
    %70 = vector.load %arg6[%c3, %c0_40, %c0_41] : memref<8x256x128xbf16, #tpu.memory_space<vmem>>, vector<1x256x128xbf16>
    %71 = vector.shape_cast %70 : vector<1x256x128xbf16> to vector<256x128xbf16>
    %cst_42 = arith.constant dense<0.000000e+00> : vector<8x128xf32>
    %72 = tpu.matmul %69, %71, %cst_42 {dimension_numbers = #tpu.dot_dimension_numbers<[1], [0], [0], [1], [0, 0, 1, 1], [], []>} : vector<8x256xbf16>, vector<256x128xbf16>, vector<8x128xf32> -> vector<8x128xf32>
    %73 = arith.addf %67, %72 : vector<8x128xf32>
    %74 = vector.extract_strided_slice %50 {offsets = [0, 4, 0], sizes = [8, 1, 256], strides = [1, 1, 1]} : vector<8x8x256xbf16> to vector<8x1x256xbf16>
    %75 = vector.shape_cast %74 : vector<8x1x256xbf16> to vector<8x256xbf16>
    %c4 = arith.constant 4 : index
    %c0_43 = arith.constant 0 : index
    %c0_44 = arith.constant 0 : index
    %76 = vector.load %arg6[%c4, %c0_43, %c0_44] : memref<8x256x128xbf16, #tpu.memory_space<vmem>>, vector<1x256x128xbf16>
    %77 = vector.shape_cast %76 : vector<1x256x128xbf16> to vector<256x128xbf16>
    %cst_45 = arith.constant dense<0.000000e+00> : vector<8x128xf32>
    %78 = tpu.matmul %75, %77, %cst_45 {dimension_numbers = #tpu.dot_dimension_numbers<[1], [0], [0], [1], [0, 0, 1, 1], [], []>} : vector<8x256xbf16>, vector<256x128xbf16>, vector<8x128xf32> -> vector<8x128xf32>
    %79 = arith.addf %73, %78 : vector<8x128xf32>
    %80 = vector.extract_strided_slice %50 {offsets = [0, 5, 0], sizes = [8, 1, 256], strides = [1, 1, 1]} : vector<8x8x256xbf16> to vector<8x1x256xbf16>
    %81 = vector.shape_cast %80 : vector<8x1x256xbf16> to vector<8x256xbf16>
    %c5 = arith.constant 5 : index
    %c0_46 = arith.constant 0 : index
    %c0_47 = arith.constant 0 : index
    %82 = vector.load %arg6[%c5, %c0_46, %c0_47] : memref<8x256x128xbf16, #tpu.memory_space<vmem>>, vector<1x256x128xbf16>
    %83 = vector.shape_cast %82 : vector<1x256x128xbf16> to vector<256x128xbf16>
    %cst_48 = arith.constant dense<0.000000e+00> : vector<8x128xf32>
    %84 = tpu.matmul %81, %83, %cst_48 {dimension_numbers = #tpu.dot_dimension_numbers<[1], [0], [0], [1], [0, 0, 1, 1], [], []>} : vector<8x256xbf16>, vector<256x128xbf16>, vector<8x128xf32> -> vector<8x128xf32>
    %85 = arith.addf %79, %84 : vector<8x128xf32>
    %86 = vector.extract_strided_slice %50 {offsets = [0, 6, 0], sizes = [8, 1, 256], strides = [1, 1, 1]} : vector<8x8x256xbf16> to vector<8x1x256xbf16>
    %87 = vector.shape_cast %86 : vector<8x1x256xbf16> to vector<8x256xbf16>
    %c6 = arith.constant 6 : index
    %c0_49 = arith.constant 0 : index
    %c0_50 = arith.constant 0 : index
    %88 = vector.load %arg6[%c6, %c0_49, %c0_50] : memref<8x256x128xbf16, #tpu.memory_space<vmem>>, vector<1x256x128xbf16>
    %89 = vector.shape_cast %88 : vector<1x256x128xbf16> to vector<256x128xbf16>
    %cst_51 = arith.constant dense<0.000000e+00> : vector<8x128xf32>
    %90 = tpu.matmul %87, %89, %cst_51 {dimension_numbers = #tpu.dot_dimension_numbers<[1], [0], [0], [1], [0, 0, 1, 1], [], []>} : vector<8x256xbf16>, vector<256x128xbf16>, vector<8x128xf32> -> vector<8x128xf32>
    %91 = arith.addf %85, %90 : vector<8x128xf32>
    %92 = vector.extract_strided_slice %50 {offsets = [0, 7, 0], sizes = [8, 1, 256], strides = [1, 1, 1]} : vector<8x8x256xbf16> to vector<8x1x256xbf16>
    %93 = vector.shape_cast %92 : vector<8x1x256xbf16> to vector<8x256xbf16>
    %c7 = arith.constant 7 : index
    %c0_52 = arith.constant 0 : index
    %c0_53 = arith.constant 0 : index
    %94 = vector.load %arg6[%c7, %c0_52, %c0_53] : memref<8x256x128xbf16, #tpu.memory_space<vmem>>, vector<1x256x128xbf16>
    %95 = vector.shape_cast %94 : vector<1x256x128xbf16> to vector<256x128xbf16>
    %cst_54 = arith.constant dense<0.000000e+00> : vector<8x128xf32>
    %96 = tpu.matmul %93, %95, %cst_54 {dimension_numbers = #tpu.dot_dimension_numbers<[1], [0], [0], [1], [0, 0, 1, 1], [], []>} : vector<8x256xbf16>, vector<256x128xbf16>, vector<8x128xf32> -> vector<8x128xf32>
    %97 = arith.addf %91, %96 : vector<8x128xf32>
    %c0_55 = arith.constant 0 : index
    %c0_56 = arith.constant 0 : index
    %98 = vector.load %arg7[%c0_55, %c0_56] : memref<1x128xf32, #tpu.memory_space<vmem>>, vector<1x128xf32>
    %99 = vector.broadcast %98 : vector<1x128xf32> to vector<8x128xf32>
    %100 = arith.addf %97, %99 : vector<8x128xf32>
    %cst_57 = arith.constant 0.000000e+00 : f32
    %101 = vector.broadcast %cst_57 : f32 to vector<8x128xf32>
    %102 = arith.maximumf %100, %101 : vector<8x128xf32>
    %103 = arith.truncf %102 : vector<8x128xf32> to vector<8x128xbf16>
    %c0_58 = arith.constant 0 : index
    %c0_59 = arith.constant 0 : index
    %104 = vector.load %arg8[%c0_58, %c0_59] : memref<128x128xbf16, #tpu.memory_space<vmem>>, vector<128x128xbf16>
    %cst_60 = arith.constant dense<0.000000e+00> : vector<8x128xf32>
    %105 = tpu.matmul %103, %104, %cst_60 {dimension_numbers = #tpu.dot_dimension_numbers<[1], [0], [0], [1], [0, 0, 1, 1], [], []>} : vector<8x128xbf16>, vector<128x128xbf16>, vector<8x128xf32> -> vector<8x128xf32>
    %c0_61 = arith.constant 0 : index
    %c0_62 = arith.constant 0 : index
    %106 = vector.load %arg9[%c0_61, %c0_62] : memref<1x128xf32, #tpu.memory_space<vmem>>, vector<1x128xf32>
    %107 = vector.broadcast %106 : vector<1x128xf32> to vector<8x128xf32>
    %108 = arith.addf %105, %107 : vector<8x128xf32>
    %c0_63 = arith.constant 0 : index
    %c0_64 = arith.constant 0 : index
    %109 = vector.load %arg10[%c0_63, %c0_64] : memref<8x128xf32, #tpu.memory_space<vmem>>, vector<8x128xf32>
    tpu.vector_store %arg10[%c0_63, %c0_64], %108 {strides = array<i32>} : memref<8x128xf32, #tpu.memory_space<vmem>>, vector<8x128xf32>,
    return
  }
  func.func @transform_0(%arg0: i32) -> (i32, i32, i32) {
    %c0_i32 = arith.constant 0 : i32
    %c0_i32_0 = arith.constant 0 : i32
    %c0_i32_1 = arith.constant 0 : i32
    return %arg0, %c0_i32, %c0_i32_0 : i32, i32, i32
  }
  func.func @transform_1(%arg0: i32) -> (i32, i32, i32) {
    %c0_i32 = arith.constant 0 : i32
    %c0_i32_0 = arith.constant 0 : i32
    %c0_i32_1 = arith.constant 0 : i32
    %c0_i32_2 = arith.constant 0 : i32
    return %c0_i32, %c0_i32_0, %c0_i32_1 : i32, i32, i32
  }
  func.func @transform_2(%arg0: i32) -> (i32, i32) {
    %c0_i32 = arith.constant 0 : i32
    %c0_i32_0 = arith.constant 0 : i32
    %c0_i32_1 = arith.constant 0 : i32
    return %c0_i32, %c0_i32_0 : i32, i32
  }
  func.func @transform_3(%arg0: i32) -> (i32, i32) {
    %c0_i32 = arith.constant 0 : i32
    %c0_i32_0 = arith.constant 0 : i32
    %c0_i32_1 = arith.constant 0 : i32
    return %c0_i32, %c0_i32_0 : i32, i32
  }
  func.func @transform_4(%arg0: i32) -> (i32, i32) {
    %c0_i32 = arith.constant 0 : i32
    %c0_i32_0 = arith.constant 0 : i32
    %c0_i32_1 = arith.constant 0 : i32
    return %c0_i32, %c0_i32_0 : i32, i32
  }
  func.func @transform_5(%arg0: i32) -> (i32, i32, i32) {
    %c0_i32 = arith.constant 0 : i32
    %c0_i32_0 = arith.constant 0 : i32
    %c0_i32_1 = arith.constant 0 : i32
    %c0_i32_2 = arith.constant 0 : i32
    return %c0_i32, %c0_i32_0, %c0_i32_1 : i32, i32, i32
  }
  func.func @transform_6(%arg0: i32) -> (i32, i32) {
    %c0_i32 = arith.constant 0 : i32
    %c0_i32_0 = arith.constant 0 : i32
    %c0_i32_1 = arith.constant 0 : i32
    return %c0_i32, %c0_i32_0 : i32, i32
  }
  func.func @transform_7(%arg0: i32) -> (i32, i32) {
    %c0_i32 = arith.constant 0 : i32
    %c0_i32_0 = arith.constant 0 : i32
    %c0_i32_1 = arith.constant 0 : i32
    return %c0_i32, %c0_i32_0 : i32, i32
  }
  func.func @transform_8(%arg0: i32) -> (i32, i32) {
    %c0_i32 = arith.constant 0 : i32
    %c0_i32_0 = arith.constant 0 : i32
    %c0_i32_1 = arith.constant 0 : i32
    return %c0_i32, %c0_i32_0 : i32, i32
  }
  func.func @transform_9(%arg0: i32) -> (i32, i32) {
    %c0_i32 = arith.constant 0 : i32
    %c0_i32_0 = arith.constant 0 : i32
    return %arg0, %c0_i32 : i32, i32
  }
}

</mosaic_0001>

<bundles_post_ra>
// kernel: tpu_custom_call.1
= control target key start
LH: loop header
LB: loop body
LE: loop exit
PB: predicated region body
PF: predicated region fallthrough
CT: control target
= control target key end

     0   :  { %14 = vsyncpa [#allocation3], 0  ;;  %s7997_s0 = inlined_call_operand.vmem [shape: bf16[8,12,8], index: 0, kind: input, shape index: {}]   ;;  %s7998_s1 = inlined_call_operand.vmem [shape: bf16[3,8,256], index: 1, kind: input, shape index: {}]   ;;  %s7999_s2 = inlined_call_operand.vmem [shape: f32[3,256], index: 2, kind: input, shape index: {}]   ;;  %s8000_s3 = inlined_call_operand.hbm [shape: bf16[768,256], index: 3, kind: input, shape index: {}]   ;;  %s8001_s4 = inlined_call_operand.vmem [shape: f32[3,256], index: 4, kind: input, shape index: {}]   ;;  %s8002_s5 = inlined_call_operand.hbm [shape: bf16[8,256,128], index: 5, kind: input, shape index: {}]   ;;  %s8003_s6 = inlined_call_operand.vmem [shape: f32[1,128], index: 6, kind: input, shape index: {}]   ;;  %s8004_s7 = inlined_call_operand.vmem [shape: bf16[128,128], index: 7, kind: input, shape index: {}]   ;;  %s8005_s8 = inlined_call_operand.vmem [shape: f32[1,128], index: 8, kind: input, shape index: {}]   ;;  %s8006_s9 = inlined_call_operand.hbm [shape: f32[8,128], index: 9, kind: output, shape index: {}]  }
   0x1   :  { %15 = vsyncpa [#allocation6], 0 }
   0x2   :  { %16 = vsyncpa [#allocation4], 0  ;;  %s6418_s30 = smov [#allocation2]   ;;  %s6346_s13 = scalar_lea.hbm %s8000_s3, 12288 }
   0x3   :  { %s28_s10 = sshll.u32 %s6418_s30, 4  ;;  %p6347_p0 = scmp.ne.s32.totalorder %s8000_s3, %s6346_s13  ;;  %s29_s10 = int_to_ptr.vmem [resolvable:$true] %s28_s10 }
   0x4   :  { %p6350_p1 = scmp.lt.u32.totalorder %s6346_s13, %s8000_s3 }
   0x6   :  { %p6352_p2 = pnand %p6350_p1, %p6347_p0 }
   0x8   :  { %6355 = shalt.err (!%p6352_p2)
}
   0x9   :  { %s6356_s18 = scalar_lea.vmem %s29_s10, 12288  ;;  %p6361_p4 = scmp.lt.s32.totalorder %s29_s10, %s29_s10 }
   0xa   :  { %p6357_p3 = scmp.ne.s32.totalorder %s29_s10, %s6356_s18  ;;  %p6362_p5 = scmp.lt.s32.totalorder %s6356_s18, %s6356_s18 }
   0xc   :  { %p6363_p6 = por %p6362_p5, %p6361_p4 }
   0xe   :  { %p6364_p7 = pnand %p6363_p6, %p6357_p3 }
  0x10   :  { %6367 = shalt.err (!%p6364_p7)
}
  0x11   :  { %s6419_s19 = smov 128   ;;  %s6420_s20 = smov 8  }
  0x12   :  { %34 = dma.hbm_to_vmem [thread:$0]  %s8000_s3, 12288, %s29_s10, [#allocation3], %s6419_s19, %s6419_s19, %s6420_s20  }
  0x13   :  { %s6421_s23 = smov [#allocation5]   ;;  %s6368_s27 = scalar_lea.hbm %s8002_s5, 16384 }
  0x14   :  { %s42_s24 = sshll.u32 %s6421_s23, 4  ;;  %p6369_p8 = scmp.ne.s32.totalorder %s8002_s5, %s6368_s27  ;;  %s43_s24 = int_to_ptr.vmem [resolvable:$true] %s42_s24 }
  0x15   :  { %p6372_p9 = scmp.lt.u32.totalorder %s6368_s27, %s8002_s5 }
  0x17   :  { %p6374_p10 = pnand %p6372_p9, %p6369_p8 }
  0x19   :  { %6377 = shalt.err (!%p6374_p10)
}
  0x1a   :  { %s6378_s12 = scalar_lea.vmem %s43_s24, 16384  ;;  %p6383_p12 = scmp.lt.s32.totalorder %s43_s24, %s43_s24 }
  0x1b   :  { %p6379_p11 = scmp.ne.s32.totalorder %s43_s24, %s6378_s12  ;;  %p6384_p13 = scmp.lt.s32.totalorder %s6378_s12, %s6378_s12 }
  0x1d   :  { %p6385_p0 = por %p6384_p13, %p6383_p12 }
  0x1f   :  { %p6386_p1 = pnand %p6385_p0, %p6379_p11 }
  0x21   :  { %6389 = shalt.err (!%p6386_p1)
}
  0x22   :  { %s6422_s3 = smov 64   ;;  %s6423_s10 = smov 4  }
  0x23   :  { %48 = dma.hbm_to_vmem [thread:$0]  %s8002_s5, 16384, %s43_s24, [#allocation6], %s6422_s3, %s6422_s3, %s6423_s10  }
  0x24   :  { %6412 = dma.done.wait [#allocation3], 12288  }
  0x25   :  { %6413 = vsyncadd [#allocation3], 4294955008 }
  0x26   :  { %6414 = dma.done.wait [#allocation6], 16384  }
  0x27   :  { %6415 = vsyncadd [#allocation6], 4294950912  ;;  %v105_v0 = vlaneseq  ;;  %v8007_v1 = vmov 0   ;;  %v6425_v2 = vmov 1966171168   ;;  %vm1074_vm11 = vcmask 1043456  }
  0x28   :  { %1113 = vmatprep.mubr.bf16.mxu0 %v8007_v1  ;;  %v103_v3 = vunpack.c.l.s4 %v6425_v2  ;;  %vm463_vm0 = vsmask.f32 256  ;;  %vm464_vm1 = vsmask.f32 1284  ;;  %vm466_vm2 = vsmask.f32 2312 }
  0x29   :  { %v6505_v4 = vshrl.u32 %v105_v0, 7  ;;  %vm465_vm3 = vmor %vm463_vm0, %vm464_vm1  ;;  %vm468_vm4 = vsmask.f32 3340  ;;  %vm470_vm5 = vsmask.f32 4368  ;;  %v5451_v7 = vld [vmem:[%s7998_s1 + $0x8] sm:$0xff] }
  0x2a   :  { %v104_v5 = vunpack.c.0.s8 %v103_v3  ;;  %vm467_vm6 = vmor %vm465_vm3, %vm466_vm2  ;;  %vm472_vm7 = vsmask.f32 5396  ;;  %vm474_vm10 = vsmask.f32 6424  ;;  %vm476_vm13 = vsmask.f32 7452 }
  0x2b   :  { %8021 = vst [vmem:[#allocation11_spill] sm:$0xff] %v6505_v4  ;;  %vm469_vm8 = vmor %vm467_vm6, %vm468_vm4  ;;  %v398_v8 = vld [vmem:[%s7998_s1] sm:$0xff]  ;;  %v5453_v10 = vcombine.high %v5451_v7, %v5451_v7  ;;  %v5452_v11 = vcombine.low %v5451_v7, %v5451_v7  ;;  %v5397_v15 = vld.sshfl [vmem:[%s7997_s0 + $0x8] sm:$0x33 pattern:$0x75316420] }
  0x2c   :  { %v6508_v6 = vsub.s32 %v104_v5, %v6505_v4  ;;  %vm471_vm9 = vmor %vm469_vm8, %vm470_vm5  ;;  %v5395_v9 = vld.sshfl [vmem:[%s7997_s0] sm:$0x33 pattern:$0x75316420]  ;;  %v5465_v12 = vcombine.high %v398_v8, %v398_v8  ;;  %v5464_v19 = vcombine.low %v398_v8, %v398_v8  ;;  %v139_v22 = vcombine.high %v5397_v15, %v5397_v15  ;;  %s6429_s11 = smov [#allocation7]  }
  0x2d   :  { %vm473_vm12 = vmor %vm471_vm9, %vm472_vm7  ;;  %v5396_v13 = vld.sshfl [vmem:[%s7997_s0 + $0x4] sm:$0x11 pattern:$0x75316420]  ;;  %v101_v14 = vcombine.high %v5395_v9, %v5395_v9  ;;  %5454 = vmatprep.subr.msk.bf16.mxu0 %vm1074_vm11, %v5453_v10  ;;  %v1076_v20 = vsel %vm1074_vm11, %v5452_v11, 0  ;;  %vm1058_vm0 = vcmask 64512  }
  0x2e   :  { %vm475_vm14 = vmor %vm473_vm12, %vm474_vm10  ;;  %v6526_v16 = vrot.slane %v5395_v9, %v6508_v6  ;;  %v6529_v17 = vrot.slane %v5396_v13, %v6508_v6  ;;  %v399_v18 = vcombine.high %v5396_v13, %v5396_v13  ;;  %v6537_v23 = vrot.slane %v5397_v15, %v6508_v6  ;;  %1082 = vmatpush1.bf16.msra.mxu0 %v1076_v20  ;;  %v5398_v49 = vld.sshfl [vmem:[%s7997_s0 + $0xc] sm:$0x11 pattern:$0x75316420]  ;;  %s5385_s12 = sshll.u32 %s6429_s11, 4  ;;  %s5386_s12 = int_to_ptr.vmem [resolvable:$true] %s5385_s12 }
  0x2f   :  { %v6534_v21 = vrot.slane %v101_v14, %v6508_v6  ;;  %vm6547_vm15 = vmor %vm475_vm14, %vm476_vm13  ;;  %5466 = vmatprep.subr.msk.bf16.mxu0 %vm1074_vm11, %v5465_v12  ;;  %v6559_v30 = vrot.slane %v139_v22, %v6508_v6  ;;  %v5399_v54 = vld.sshfl [vmem:[%s7997_s0 + $0x10] sm:$0x33 pattern:$0x75316420]  ;;  %v1430_v61 = vsel %vm1074_vm11, %v5464_v19, 0  ;;  %v6610_v62 = vrot.slane %v5398_v49, %v6508_v6  ;;  %p6395_p3 = scmp.lt.s32.totalorder %s5386_s12, %s5386_s12 }
  0x30   :  { %v6541_v24 = vcombine.high %v6526_v16, %v6526_v16  ;;  %v6544_v25 = vrot.slane %v399_v18, %v6508_v6  ;;  %v479_v27 = vshrl.u32 %v6526_v16, 16  ;;  %v508_v28 = vshll.u32 %v6529_v17, 16  ;;  %v5401_v59 = vld.sshfl [vmem:[%s7997_s0 + $0x18] sm:$0x33 pattern:$0x75316420] }
  0x31   :  { %v6556_v29 = vcombine.high %v6534_v21, %v6534_v21  ;;  %v6563_v31 = vcombine.high %v6537_v23, %v6537_v23  ;;  %v484_v32 = vshll.u32 %v6534_v21, 16  ;;  %v487_v33 = vshrl.u32 %v6534_v21, 16  ;;  %v5400_v5 = vld.sshfl [vmem:[%s7997_s0 + $0x14] sm:$0x11 pattern:$0x75316420] }
  0x32   :  { %8022 = vst [vmem:[#allocation12_spill] sm:$0xff] %v6541_v24  ;;  %8023 = vst [vmem:[#allocation13_spill] sm:$0xff] %v6544_v25  ;;  %v492_v34 = vshll.u32 %v6541_v24, 16  ;;  %v495_v35 = vshrl.u32 %v6541_v24, 16  ;;  %v511_v36 = vshrl.u32 %v6529_v17, 16  ;;  %v6572_v37 = vcombine.high %v6559_v30, %v6559_v30 }
  0x33   :  { %8026 = vst [vmem:[#allocation14_spill] sm:$0xff] %v6556_v29  ;;  %v486_v38 = vsel %vm6547_vm15, %v479_v27, %v484_v32  ;;  %v500_v39 = vshll.u32 %v6556_v29, 16  ;;  %v503_v40 = vshrl.u32 %v6556_v29, 16  ;;  %v516_v42 = vshll.u32 %v6544_v25, 16 }
  0x34   :  { %v494_v41 = vsel %vm6547_vm15, %v487_v33, %v492_v34  ;;  %v520_v43 = vshrl.u32 %v6537_v23, 16  ;;  %v525_v44 = vshll.u32 %v6559_v30, 16  ;;  %v528_v47 = vshrl.u32 %v6559_v30, 16 }
  0x35   :  { %v502_v45 = vsel %vm6547_vm15, %v495_v35, %v500_v39  ;;  %v510_v46 = vsel %vm6547_vm15, %v503_v40, %v508_v28  ;;  %v533_v48 = vshll.u32 %v6563_v31, 16  ;;  %v518_v50 = vsel %vm6547_vm15, %v511_v36, %v516_v42 }
  0x36   :  { %v527_v51 = vsel %vm6547_vm15, %v520_v43, %v525_v44  ;;  %v536_v52 = vshrl.u32 %v6563_v31, 16  ;;  %v541_v53 = vshll.u32 %v6572_v37, 16  ;;  %v808_v56 = vcombine.low %v486_v38, %v494_v41 }
  0x37   :  { %v535_v55 = vsel %vm6547_vm15, %v528_v47, %v533_v48  ;;  %v809_v57 = vcombine.low %v502_v45, %v510_v46  ;;  %v810_v58 = vcombine.low %v518_v50, %v527_v51  ;;  %v177_v7 = vcombine.high %v5399_v54, %v5399_v54 }
  0x38   :  { %v543_v60 = vsel %vm6547_vm15, %v536_v52, %v541_v53  ;;  %v818_v0 = vrot.slane %v808_v56, %v6508_v6  ;;  %v6619_v8 = vrot.slane %v5399_v54, %v6508_v6  ;;  %v6622_v9 = vrot.slane %v5400_v5, %v6508_v6  ;;  %v5403_v54 = vld.sshfl [vmem:[%s7997_s0 + $0x20] sm:$0x33 pattern:$0x75316420] }
  0x39   :  { %v811_v63 = vcombine.low %v535_v55, %v543_v60  ;;  %v825_v2 = vrot.slane %v809_v57, %v6508_v6  ;;  %v832_v3 = vrot.slane %v810_v58, %v6508_v6  ;;  %v215_v10 = vcombine.high %v5401_v59, %v5401_v59  ;;  %v6686_v60 = vld.sshfl [vmem:[%s7997_s0 + $0x24] sm:$0x11 pattern:$0x75316420] }
  0x3a   :  { %v6626_v13 = vrot.slane %v5401_v59, %v6508_v6  ;;  %v407_v14 = vcombine.high %v5398_v49, %v5398_v49  ;;  %v6629_v15 = vrot.slane %v177_v7, %v6508_v6  ;;  %v6633_v18 = vcombine.high %v6619_v8, %v6619_v8  ;;  %v5402_v59 = vld.sshfl [vmem:[%s7997_s0 + $0x1c] sm:$0x11 pattern:$0x75316420] }
  0x3b   :  { %v839_v11 = vrot.slane %v811_v63, %v6508_v6  ;;  %v840_v12 = vcombine.low %v818_v0, %v825_v2  ;;  %v6636_v19 = vrot.slane %v215_v10, %v6508_v6  ;;  %v415_v20 = vcombine.high %v5400_v5, %v5400_v5 }
  0x3c   :  { %v6640_v28 = vrot.slane %v407_v14, %v6508_v6  ;;  %v544_v32 = vshrl.u32 %v6572_v37, 16  ;;  %v6645_v33 = vcombine.high %v6629_v15, %v6629_v15  ;;  %v549_v35 = vshll.u32 %v6610_v62, 16  ;;  %v6069_v14 = vld [vmem:[#allocation2 + $0x14] ss:$8 sps:$4 sm:$0xff]  }
  0x3d   :  { %v841_v22 = vcombine.low %v832_v3, %v839_v11  ;;  %v848_v27 = vrot.slane %v840_v12, %v6508_v6  ;;  %v6648_v34 = vrot.slane %v415_v20, %v6508_v6  ;;  %v552_v36 = vshrl.u32 %v6610_v62, 16  ;;  %v6068_v12 = vld [vmem:[#allocation2] ss:$8 sps:$4 sm:$0xff]  }
  0x3e   :  { %v557_v39 = vshll.u32 %v6640_v28, 16  ;;  %v561_v40 = vshrl.u32 %v6619_v8, 16  ;;  %v566_v41 = vshll.u32 %v6629_v15, 16  ;;  %v551_v42 = vsel %vm6547_vm15, %v544_v32, %v549_v35 }
  0x3f   :  { %v855_v38 = vrot.slane %v841_v22, %v6508_v6  ;;  %v569_v43 = vshrl.u32 %v6629_v15, 16  ;;  %v574_v44 = vshll.u32 %v6633_v18, 16  ;;  %v577_v45 = vshrl.u32 %v6633_v18, 16 }
  0x40   :  { %v559_v47 = vsel %vm6547_vm15, %v552_v36, %v557_v39  ;;  %v568_v48 = vsel %vm6547_vm15, %v561_v40, %v566_v41  ;;  %v582_v49 = vshll.u32 %v6645_v33, 16  ;;  %v585_v51 = vshrl.u32 %v6645_v33, 16 }
  0x41   :  { %v856_v46 = vcombine.low %v848_v27, %v855_v38  ;;  %v576_v50 = vsel %vm6547_vm15, %v569_v43, %v574_v44  ;;  %v590_v52 = vshll.u32 %v6622_v9, 16  ;;  %v593_v53 = vshrl.u32 %v6622_v9, 16  ;;  %v6071_v44 = vld [vmem:[#allocation2 + $0x10] ss:$8 sps:$4 sm:$0xff]  }
  0x42   :  { %v584_v55 = vsel %vm6547_vm15, %v577_v45, %v582_v49  ;;  %v598_v56 = vshll.u32 %v6648_v34, 16  ;;  %v602_v57 = vshrl.u32 %v6626_v13, 16  ;;  %v607_v58 = vshll.u32 %v6636_v19, 16  ;;  %v6072_v49 = vld [vmem:[#allocation2 + $0x24] ss:$8 sps:$4 sm:$0xff]  }
  0x43   :  { %5455 = vmatmul.mubr.msk.bf16.vlgmr.msra.gmra.mrb[0].mxu0 %vm1058_vm0, %v856_v46  ;;  %v592_v63 = vsel %vm6547_vm15, %v585_v51, %v590_v52  ;;  %v857_v0 = vcombine.low %v551_v42, %v559_v47  ;;  %v858_v2 = vcombine.low %v568_v48, %v576_v50  ;;  %v610_v3 = vshrl.u32 %v6636_v19, 16 }
  0x44   :  { %1436 = vmatpush1.bf16.msra.mxu0 %v1430_v61  ;;  %1123 = vmatprep.mubr.bf16.mxu0 %v8007_v1  ;;  %v600_v5 = vsel %vm6547_vm15, %v593_v53, %v598_v56  ;;  %v609_v7 = vsel %vm6547_vm15, %v602_v57, %v607_v58  ;;  %v859_v10 = vcombine.low %v584_v55, %v592_v63  ;;  %v6066_v61 = vld [vmem:[#allocation2 + $0x4] ss:$8 sps:$4 sm:$0xff]   ;;  %v5405_v58 = vld.sshfl [vmem:[%s7997_s0 + $0x28] sm:$0x33 pattern:$0x75316420] }
  0x45   :  { %v6698_v11 = vcombine.high %v6626_v13, %v6626_v13  ;;  %v860_v20 = vcombine.low %v600_v5, %v609_v7  ;;  %v867_v22 = vrot.slane %v857_v0, %v6508_v6  ;;  %v874_v27 = vrot.slane %v858_v2, %v6508_v6  ;;  %3296 = vmatprep.subr.bf16.mxu1 %v6066_v61  ;;  %v6074_v5 = vld [vmem:[#allocation2 + $0x20] ss:$8 sps:$4 sm:$0xff]  }
  0x46   :  { %v6704_v32 = vcombine.high %v6636_v19, %v6636_v19  ;;  %v881_v35 = vrot.slane %v859_v10, %v6508_v6  ;;  %v6708_v36 = vrot.slane %v5402_v59, %v6508_v6  ;;  %v253_v38 = vcombine.high %v5403_v54, %v5403_v54  ;;  %3297 = vmatpush1.bf16.msra.mxu1 %v6068_v12  ;;  %v6075_v12 = vld [vmem:[#allocation2 + $0x34] ss:$8 sps:$4 sm:$0xff]  }
  0x47   :  { %v6711_v39 = vrot.slane %v5403_v54, %v6508_v6  ;;  %v888_v40 = vrot.slane %v860_v20, %v6508_v6  ;;  %v889_v41 = vcombine.low %v867_v22, %v874_v27  ;;  %v6716_v42 = vrot.slane %v6686_v60, %v6508_v6  ;;  %3298 = vmatprep.subr.bf16.mxu1 %v6069_v14 }
  0x48   :  { %v423_v43 = vcombine.high %v5402_v59, %v5402_v59  ;;  %v6719_v45 = vrot.slane %v253_v38, %v6508_v6  ;;  %v615_v47 = vshll.u32 %v6698_v11, 16  ;;  %v618_v48 = vshrl.u32 %v6698_v11, 16 }
  0x49   :  { %v6723_v46 = vcombine.high %v6711_v39, %v6711_v39  ;;  %v890_v50 = vcombine.low %v881_v35, %v888_v40  ;;  %v897_v51 = vrot.slane %v889_v41, %v6508_v6  ;;  %v623_v53 = vshll.u32 %v6704_v32, 16  ;;  %v5407_v35 = vld.sshfl [vmem:[%s7997_s0 + $0x30] sm:$0x33 pattern:$0x75316420] }
  0x4a   :  { %v6729_v52 = vrot.slane %v423_v43, %v6508_v6  ;;  %v6734_v54 = vcombine.high %v6719_v45, %v6719_v45  ;;  %v617_v55 = vsel %vm6547_vm15, %v610_v3, %v615_v47  ;;  %v626_v56 = vshrl.u32 %v6704_v32, 16  ;;  %3299 = vmatpush1.bf16.msra.mxu1 %v6071_v44 }
  0x4b   :  { %v631_v57 = vshll.u32 %v6708_v36, 16  ;;  %v904_v59 = vrot.slane %v890_v50, %v6508_v6  ;;  %v625_v63 = vsel %vm6547_vm15, %v618_v48, %v623_v53  ;;  %v634_v0 = vshrl.u32 %v6708_v36, 16  ;;  %3300 = vmatprep.subr.bf16.mxu1 %v6072_v49  ;;  %v5406_v49 = vld.sshfl [vmem:[%s7997_s0 + $0x2c] sm:$0x11 pattern:$0x75316420] }
  0x4c   :  { %8027 = vst [vmem:[#allocation15_spill] sm:$0xff] %v6734_v54  ;;  %v639_v2 = vshll.u32 %v6729_v52, 16  ;;  %v643_v7 = vshrl.u32 %v6711_v39, 16  ;;  %v648_v10 = vshll.u32 %v6719_v45, 16  ;;  %v651_v61 = vshrl.u32 %v6719_v45, 16 }
  0x4d   :  { %v633_v3 = vsel %vm6547_vm15, %v626_v56, %v631_v57  ;;  %v905_v14 = vcombine.low %v897_v51, %v904_v59  ;;  %v656_v22 = vshll.u32 %v6723_v46, 16  ;;  %v659_v27 = vshrl.u32 %v6723_v46, 16  ;;  %v6077_v51 = vld [vmem:[#allocation2 + $0x30] ss:$8 sps:$4 sm:$0xff]  }
  0x4e   :  { %v641_v20 = vsel %vm6547_vm15, %v634_v0, %v639_v2  ;;  %v650_v38 = vsel %vm6547_vm15, %v643_v7, %v648_v10  ;;  %v664_v40 = vshll.u32 %v6734_v54, 16  ;;  %v667_v41 = vshrl.u32 %v6734_v54, 16  ;;  %3301 = vmatpush1.bf16.msra.mxu1 %v6074_v5 }
  0x4f   :  { %v672_v43 = vshll.u32 %v6716_v42, 16  ;;  %5456 = vmatmul.mubr.msk.bf16.gmra.mrb[4].mxu0 %vm1058_vm0, %v905_v14  ;;  %v658_v44 = vsel %vm6547_vm15, %v651_v61, %v656_v22  ;;  %v906_v47 = vcombine.low %v617_v55, %v625_v63  ;;  %v907_v48 = vcombine.low %v633_v3, %v641_v20  ;;  %v6078_v55 = vld [vmem:[#allocation2 + $0x44] ss:$8 sps:$4 sm:$0xff]   ;;  %3302 = vmatprep.subr.bf16.mxu1 %v6075_v12 }
  0x50   :  { %v291_v50 = vcombine.high %v5405_v58, %v5405_v58  ;;  %1133 = vmatprep.mubr.bf16.mxu0 %v8007_v1  ;;  %v666_v53 = vsel %vm6547_vm15, %v659_v27, %v664_v40  ;;  %v908_v57 = vcombine.low %v650_v38, %v658_v44  ;;  %v6777_v59 = vrot.slane %v5405_v58, %v6508_v6  ;;  %v6080_v27 = vld [vmem:[#allocation2 + $0x40] ss:$8 sps:$4 sm:$0xff]   ;;  %v5408_v1 = vld.sshfl [vmem:[%s7997_s0 + $0x34] sm:$0x11 pattern:$0x75316420] }
  0x51   :  { %v674_v56 = vsel %vm6547_vm15, %v667_v41, %v672_v43  ;;  %v916_v0 = vrot.slane %v906_v47, %v6508_v6  ;;  %v923_v2 = vrot.slane %v907_v48, %v6508_v6  ;;  %v6790_v61 = vrot.slane %v5406_v49, %v6508_v6  ;;  %v6081_v43 = vld [vmem:[#allocation2 + $0x54] ss:$8 sps:$4 sm:$0xff]  }
  0x52   :  { %v909_v63 = vcombine.low %v666_v53, %v674_v56  ;;  %v6782_v3 = vrot.slane %v291_v50, %v6508_v6  ;;  %v930_v7 = vrot.slane %v908_v57, %v6508_v6  ;;  %v6787_v10 = vcombine.high %v6777_v59, %v6777_v59  ;;  %3303 = vmatpush1.bf16.msra.mxu1 %v6077_v51  ;;  %v6083_v51 = vld [vmem:[#allocation2 + $0x50] ss:$8 sps:$4 sm:$0xff]  }
  0x53   :  { %v329_v58 = vcombine.high %v5407_v35, %v5407_v35  ;;  %v938_v20 = vcombine.low %v916_v0, %v923_v2  ;;  %v6798_v5 = vrot.slane %v5407_v35, %v6508_v6  ;;  %v431_v40 = vcombine.high %v6686_v60, %v6686_v60  ;;  %3304 = vmatprep.subr.bf16.mxu1 %v6078_v55 }
  0x54   :  { %v937_v14 = vrot.slane %v909_v63, %v6508_v6  ;;  %v6795_v22 = vcombine.high %v6782_v3, %v6782_v3  ;;  %v439_v41 = vcombine.high %v5406_v49, %v5406_v49  ;;  %v675_v12 = vshrl.u32 %v6716_v42, 16 }
  0x55   :  { %v6801_v38 = vrot.slane %v329_v58, %v6508_v6  ;;  %v946_v47 = vrot.slane %v938_v20, %v6508_v6  ;;  %v6809_v48 = vcombine.high %v6798_v5, %v6798_v5  ;;  %v684_v35 = vshrl.u32 %v6777_v59, 16  ;;  %v6084_v20 = vld [vmem:[#allocation2 + $0x64] ss:$8 sps:$4 sm:$0xff]  }
  0x56   :  { %v939_v44 = vcombine.low %v930_v7, %v937_v14  ;;  %v6813_v50 = vrot.slane %v431_v40, %v6508_v6  ;;  %v6816_v53 = vrot.slane %v439_v41, %v6508_v6  ;;  %v689_v60 = vshll.u32 %v6782_v3, 16  ;;  %3305 = vmatpush1.bf16.msra.mxu1 %v6080_v27 }
  0x57   :  { %8028 = vst [vmem:[#allocation16_spill] sm:$0xff] %v6809_v48  ;;  %v692_v49 = vshrl.u32 %v6782_v3, 16  ;;  %v697_v57 = vshll.u32 %v6787_v10, 16  ;;  %v700_v63 = vshrl.u32 %v6787_v10, 16  ;;  %v705_v0 = vshll.u32 %v6795_v22, 16  ;;  %3306 = vmatprep.subr.bf16.mxu1 %v6081_v43 }
  0x58   :  { %8029 = vst [vmem:[#allocation17_spill] sm:$0xff] %v6813_v50  ;;  %8030 = vst [vmem:[#allocation18_spill] sm:$0xff] %v6816_v53  ;;  %v953_v56 = vrot.slane %v939_v44, %v6508_v6  ;;  %v680_v2 = vshll.u32 %v6813_v50, 16  ;;  %v691_v7 = vsel %vm6547_vm15, %v684_v35, %v689_v60  ;;  %v708_v58 = vshrl.u32 %v6795_v22, 16 }
  0x59   :  { %v713_v14 = vshll.u32 %v6790_v61, 16  ;;  %v699_v40 = vsel %vm6547_vm15, %v692_v49, %v697_v57  ;;  %v707_v41 = vsel %vm6547_vm15, %v700_v63, %v705_v0  ;;  %v716_v44 = vshrl.u32 %v6790_v61, 16  ;;  %v5409_v35 = vld.sshfl [vmem:[%s7997_s0 + $0x38] sm:$0x33 pattern:$0x75316420] }
  0x5a   :  { %v954_v55 = vcombine.low %v946_v47, %v953_v56  ;;  %v682_v47 = vsel %vm6547_vm15, %v675_v12, %v680_v2  ;;  %v721_v49 = vshll.u32 %v6816_v53, 16  ;;  %v725_v56 = vshrl.u32 %v6798_v5, 16  ;;  %v5410_v57 = vld.sshfl [vmem:[%s7997_s0 + $0x3c] sm:$0x11 pattern:$0x75316420]  ;;  %3307 = vmatpush1.bf16.msra.mxu1 %v6083_v51 }
  0x5b   :  { %v715_v60 = vsel %vm6547_vm15, %v708_v58, %v713_v14  ;;  %v730_v63 = vshll.u32 %v6801_v38, 16  ;;  %v733_v27 = vshrl.u32 %v6801_v38, 16  ;;  %v738_v12 = vshll.u32 %v6809_v48, 16  ;;  %v6086_v2 = vld [vmem:[#allocation2 + $0x60] ss:$8 sps:$4 sm:$0xff]   ;;  %3308 = vmatprep.subr.bf16.mxu1 %v6084_v20 }
  0x5c   :  { %5457 = vmatmul.mubr.msk.bf16.gmra.mrb[8].mxu0 %vm1058_vm0, %v954_v55  ;;  %v955_v0 = vcombine.low %v682_v47, %v691_v7  ;;  %v8031_v58 = vmov 0   ;;  %v723_v14 = vsel %vm6547_vm15, %v716_v44, %v721_v49  ;;  %v956_v4 = vcombine.low %v699_v40, %v707_v41  ;;  %v6087_v55 = vld [vmem:[#allocation2 + $0x74] ss:$8 sps:$4 sm:$0xff]   ;;  %v6090_v51 = vld [vmem:[#allocation2 + $0x84] ss:$8 sps:$4 sm:$0xff]  }
  0x5d   :  { %1143 = vmatprep.mubr.bf16.mxu0 %v8031_v58  ;;  %v6858_v29 = vcombine.high %v6801_v38, %v6801_v38  ;;  %v6861_v43 = vrot.slane %v5408_v1, %v6508_v6  ;;  %v732_v24 = vsel %vm6547_vm15, %v725_v56, %v730_v63  ;;  %v740_v7 = vsel %vm6547_vm15, %v733_v27, %v738_v12  ;;  %v6089_v27 = vld [vmem:[#allocation2 + $0x70] ss:$8 sps:$4 sm:$0xff]  }
  0x5e   :  { %v957_v47 = vcombine.low %v715_v60, %v723_v14  ;;  %v965_v25 = vrot.slane %v955_v0, %v6508_v6  ;;  %v958_v44 = vcombine.low %v732_v24, %v740_v7  ;;  %v972_v40 = vrot.slane %v956_v4, %v6508_v6  ;;  %3309 = vmatpush1.bf16.msra.mxu1 %v6086_v2 }
  0x5f   :  { %8032 = vst [vmem:[#allocation19_spill] sm:$0xff] %v6858_v29  ;;  %v367_v41 = vcombine.high %v5409_v35, %v5409_v35  ;;  %v6870_v49 = vrot.slane %v5409_v35, %v6508_v6  ;;  %v6874_v50 = vrot.slane %v5410_v57, %v6508_v6  ;;  %v447_v56 = vcombine.high %v5408_v1, %v5408_v1 }
  0x60   :  { %v979_v53 = vrot.slane %v957_v47, %v6508_v6  ;;  %v455_v63 = vcombine.high %v5410_v57, %v5410_v57  ;;  %v986_v60 = vrot.slane %v958_v44, %v6508_v6  ;;  %v987_v12 = vcombine.low %v965_v25, %v972_v40  ;;  %3310 = vmatprep.subr.bf16.mxu1 %v6087_v55  ;;  %v5472_v55 = vld [vmem:[%s7998_s1 + $0x10] sm:$0xff] }
  0x61   :  { %v6878_v24 = vrot.slane %v367_v41, %v6508_v6  ;;  %v6882_v4 = vcombine.high %v6870_v49, %v6870_v49  ;;  %v6885_v20 = vrot.slane %v447_v56, %v6508_v6  ;;  %v741_v1 = vshrl.u32 %v6809_v48, 16 }
  0x62   :  { %v6888_v35 = vrot.slane %v455_v63, %v6508_v6  ;;  %v746_v57 = vshll.u32 %v6858_v29, 16  ;;  %v988_v25 = vcombine.low %v979_v53, %v986_v60  ;;  %v995_v0 = vrot.slane %v987_v12, %v6508_v6  ;;  %3311 = vmatpush1.bf16.msra.mxu1 %v6089_v27 }
  0x63   :  { %8033 = vst [vmem:[#allocation20_spill] sm:$0xff] %v6885_v20  ;;  %v6895_v14 = vcombine.high %v6878_v24, %v6878_v24  ;;  %v749_v7 = vshrl.u32 %v6858_v29, 16  ;;  %v754_v44 = vshll.u32 %v6861_v43, 16  ;;  %v757_v40 = vshrl.u32 %v6861_v43, 16  ;;  %3312 = vmatprep.subr.bf16.mxu1 %v6090_v51 }
  0x64   :  { %8034 = vst [vmem:[#allocation21_spill] sm:$0xff] %v6888_v35  ;;  %v748_v47 = vsel %vm6547_vm15, %v741_v1, %v746_v57  ;;  %v762_v41 = vshll.u32 %v6885_v20, 16  ;;  %v1002_v53 = vrot.slane %v988_v25, %v6508_v6  ;;  %v766_v2 = vshrl.u32 %v6870_v49, 16  ;;  %v6092_v25 = vld [vmem:[#allocation2 + $0x80] ss:$8 sps:$4 sm:$0xff]  }
  0x65   :  { %v771_v56 = vshll.u32 %v6878_v24, 16  ;;  %v774_v63 = vshrl.u32 %v6878_v24, 16  ;;  %v756_v60 = vsel %vm6547_vm15, %v749_v7, %v754_v44  ;;  %v779_v1 = vshll.u32 %v6882_v4, 16 }
  0x66   :  { %v764_v12 = vsel %vm6547_vm15, %v757_v40, %v762_v41  ;;  %v782_v57 = vshrl.u32 %v6882_v4, 16  ;;  %v1003_v20 = vcombine.low %v995_v0, %v1002_v53  ;;  %v787_v48 = vshll.u32 %v6895_v14, 16  ;;  %3313 = vmatpush1.bf16.msra.mxu1 %v6092_v25 }
  0x67   :  { %v773_v29 = vsel %vm6547_vm15, %v766_v2, %v771_v56  ;;  %v790_v54 = vshrl.u32 %v6895_v14, 16  ;;  %v781_v7 = vsel %vm6547_vm15, %v774_v63, %v779_v1  ;;  %v795_v44 = vshll.u32 %v6874_v50, 16 }
  0x68   :  { %v798_v40 = vshrl.u32 %v6874_v50, 16  ;;  %v803_v41 = vshll.u32 %v6888_v35, 16  ;;  %5458 = vmatmul.mubr.msk.bf16.gmra.mrb[12].mxu0 %vm1058_vm0, %v1003_v20  ;;  %v789_v27 = vsel %vm6547_vm15, %v782_v57, %v787_v48  ;;  %v1004_v0 = vcombine.low %v748_v47, %v756_v60 }
  0x69   :  { %v1005_v53 = vcombine.low %v764_v12, %v773_v29  ;;  %v5478_v2 = vcombine.high %v5472_v55, %v5472_v55  ;;  %1153 = vmatprep.mubr.bf16.mxu0 %v8031_v58  ;;  %v797_v51 = vsel %vm6547_vm15, %v790_v54, %v795_v44  ;;  %v1006_v63 = vcombine.low %v781_v7, %v789_v27 }
  0x6a   :  { %v805_v56 = vsel %vm6547_vm15, %v798_v40, %v803_v41  ;;  %v1164_v1 = vcombine.low %v6526_v16, %v6534_v21  ;;  %v1014_v20 = vrot.slane %v1004_v0, %v6508_v6  ;;  %v5460_v29 = vcombine.high %v6526_v16, %v6534_v21 }
  0x6b   :  { %v1007_v35 = vcombine.low %v797_v51, %v805_v56  ;;  %v1021_v48 = vrot.slane %v1005_v53, %v6508_v6  ;;  %5479 = vmatprep.subr.msk.bf16.mxu0 %vm1074_vm11, %v5478_v2  ;;  %v1028_v47 = vrot.slane %v1006_v63, %v6508_v6  ;;  %v1166_v26 = vcombine.low %v6529_v17, %v6537_v23 }
  0x6c   :  { %v1167_v54 = vcombine.low %v6559_v30, %v6563_v31  ;;  %v1174_v60 = vrot.slane %v1164_v1, %v6508_v6  ;;  %v1181_v7 = vrot.slane %v5460_v29, %v6508_v6  ;;  %v5477_v44 = vcombine.low %v5472_v55, %v5472_v55 }
  0x6d   :  { %v1035_v12 = vrot.slane %v1007_v35, %v6508_v6  ;;  %v1036_v57 = vcombine.low %v1014_v20, %v1021_v48  ;;  %v1188_v40 = vrot.slane %v1166_v26, %v6508_v6  ;;  %v1213_v41 = vcombine.low %v6572_v37, %v6610_v62 }
  0x6e   :  { %v1195_v16 = vrot.slane %v1167_v54, %v6508_v6  ;;  %v1214_v27 = vcombine.low %v6619_v8, %v6629_v15  ;;  %v1786_v25 = vsel %vm1074_vm11, %v5477_v44, 0  ;;  %v5461_v35 = vcombine.high %v6619_v8, %v6629_v15 }
  0x6f   :  { %v1037_v31 = vcombine.low %v1028_v47, %v1035_v12  ;;  %v1044_v0 = vrot.slane %v1036_v57, %v6508_v6  ;;  %v1216_v55 = vcombine.low %v6622_v9, %v6626_v13  ;;  %v1196_v2 = vcombine.low %v1174_v60, %v1181_v7 }
  0x70   :  { %v1197_v51 = vcombine.low %v1188_v40, %v1195_v16  ;;  %v1262_v37 = vcombine.low %v6636_v19, %v6698_v11  ;;  %v1223_v56 = vrot.slane %v1213_v41, %v6508_v6  ;;  %v1230_v63 = vrot.slane %v1214_v27, %v6508_v6 }
  0x71   :  { %v1051_v53 = vrot.slane %v1037_v31, %v6508_v6  ;;  %v1237_v1 = vrot.slane %v5461_v35, %v6508_v6  ;;  %v1263_v20 = vcombine.low %v6704_v32, %v6708_v36  ;;  %v1244_v48 = vrot.slane %v1216_v55, %v6508_v6 }
  0x72   :  { %v1264_v29 = vcombine.low %v6711_v39, %v6719_v45  ;;  %v5462_v47 = vcombine.high %v6711_v39, %v6719_v45  ;;  %v1204_v11 = vrot.slane %v1196_v2, %v6508_v6  ;;  %v1211_v26 = vrot.slane %v1197_v51, %v6508_v6 }
  0x73   :  { %v1052_v8 = vcombine.low %v1044_v0, %v1051_v53  ;;  %v1272_v54 = vrot.slane %v1262_v37, %v6508_v6  ;;  %v1279_v60 = vrot.slane %v1263_v20, %v6508_v6  ;;  %v1245_v57 = vcombine.low %v1223_v56, %v1230_v63 }
  0x74   :  { %v1286_v32 = vrot.slane %v1264_v29, %v6508_v6  ;;  %v1293_v12 = vrot.slane %v5462_v47, %v6508_v6  ;;  %v1246_v7 = vcombine.low %v1237_v1, %v1244_v48  ;;  %v1311_v39 = vcombine.low %v6716_v42, %v6777_v59 }
  0x75   :  { %5459 = vmatmul.mubr.msk.bf16.gmra.mrb[16].mxu0 %vm1058_vm0, %v1052_v8  ;;  %v1312_v44 = vcombine.low %v6782_v3, %v6787_v10  ;;  %v1212_v40 = vcombine.low %v1204_v11, %v1211_v26  ;;  %v1294_v16 = vcombine.low %v1272_v54, %v1279_v60  ;;  %v1313_v27 = vcombine.low %v6795_v22, %v6790_v61  ;;  %v8036_v60 = vld [vmem:[#allocation17_spill] sm:$0xff] }
  0x76   :  { %1467 = vmatprep.mubr.bf16.mxu0 %v8031_v58  ;;  %v1295_v41 = vcombine.low %v1286_v32, %v1293_v12  ;;  %v1314_v31 = vcombine.low %v6798_v5, %v6801_v38  ;;  %v1253_v0 = vrot.slane %v1245_v57, %v6508_v6  ;;  %v1260_v35 = vrot.slane %v1246_v7, %v6508_v6 }
  0x77   :  { %v6992_v55 = vrot.slane %v1311_v39, %v6508_v6  ;;  %v6995_v53 = vrot.slane %v1312_v44, %v6508_v6  ;;  %v6999_v10 = vrot.slane %v1294_v16, %v6508_v6  ;;  %v5463_v22 = vcombine.high %v6798_v5, %v6801_v38  ;;  %v8038_v39 = vld [vmem:[#allocation16_spill] sm:$0xff] }
  0x78   :  { %v1309_v2 = vrot.slane %v1295_v41, %v6508_v6  ;;  %v7006_v51 = vrot.slane %v1313_v27, %v6508_v6  ;;  %v1342_v37 = vrot.slane %v1314_v31, %v6508_v6  ;;  %v1261_v56 = vcombine.low %v1253_v0, %v1260_v35  ;;  %v8039_v27 = vld [vmem:[#allocation19_spill] sm:$0xff] }
  0x79   :  { %v1361_v63 = vcombine.low %v6861_v43, %v6870_v49  ;;  %v1569_v1 = vcombine.low %v6610_v62, %v6640_v28  ;;  %v1570_v5 = vcombine.low %v6629_v15, %v6633_v18  ;;  %v1362_v20 = vcombine.low %v6878_v24, %v6882_v4 }
  0x7a   :  { %v1363_v8 = vcombine.low %v6895_v14, %v6874_v50  ;;  %v1571_v48 = vcombine.low %v6645_v33, %v6622_v9  ;;  %v1572_v29 = vcombine.low %v6648_v34, %v6636_v19  ;;  %v5474_v15 = vcombine.high %v6626_v13, %v6636_v19  ;;  %v8035_v19 = vld [vmem:[#allocation15_spill] sm:$0xff] }
  0x7b   :  { %v1579_v62 = vrot.slane %v1569_v1, %v6508_v6  ;;  %v1586_v28 = vrot.slane %v1570_v5, %v6508_v6  ;;  %v1310_v18 = vcombine.low %v6999_v10, %v1309_v2  ;;  %v1344_v4 = vcombine.low %v7006_v51, %v1342_v37  ;;  %v8041_v51 = vld [vmem:[#allocation21_spill] sm:$0xff] }
  0x7c   :  { %v7032_v47 = vrot.slane %v5463_v22, %v6508_v6  ;;  %v1593_v14 = vrot.slane %v1571_v48, %v6508_v6  ;;  %v1600_v9 = vrot.slane %v1572_v29, %v6508_v6  ;;  %v1619_v34 = vcombine.low %v6708_v36, %v6729_v52  ;;  %v8037_v52 = vld [vmem:[#allocation18_spill] sm:$0xff] }
  0x7d   :  { %5467 = vmatmul.mubr.msk.bf16.vlgmr.msra.gmra.mrb[0].mxu0 %vm1058_vm0, %v1212_v40  ;;  %v1601_v33 = vcombine.low %v1579_v62, %v1586_v28  ;;  %v1620_v11 = vcombine.low %v6719_v45, %v6723_v46  ;;  %v1377_v13 = vrot.slane %v1361_v63, %v6508_v6  ;;  %v1621_v26 = vcombine.low %v8035_v19, %v6716_v42 }
  0x7e   :  { %1792 = vmatpush1.bf16.msra.mxu0 %v1786_v25  ;;  %1477 = vmatprep.mubr.bf16.mxu0 %v8031_v58  ;;  %v1343_v25 = vcombine.low %v6992_v55, %v6995_v53  ;;  %v1628_v54 = vrot.slane %v5474_v15, %v6508_v6  ;;  %v1667_v32 = vcombine.low %v8036_v60, %v6782_v3  ;;  %vm3703_vm1 = vcmask 1041409  }
  0x7f   :  { %v1602_v12 = vcombine.low %v1593_v14, %v1600_v9  ;;  %v7048_v57 = vrot.slane %v1601_v33, %v6508_v6  ;;  %v1635_v36 = vrot.slane %v1619_v34, %v6508_v6  ;;  %v1642_v45 = vrot.slane %v1620_v11, %v6508_v6  ;;  %v8042_v33 = vld [vmem:[#allocation13_spill] sm:$0xff]  ;;  %v8043_v11 = vld [vmem:[#allocation12_spill] sm:$0xff] }
  0x80   :  { %v1649_v46 = vrot.slane %v1621_v26, %v6508_v6  ;;  %v5475_v42 = vcombine.high %v6777_v59, %v6782_v3  ;;  %v1669_v7 = vcombine.low %v6790_v61, %v8037_v52  ;;  %v1670_v44 = vcombine.low %v6801_v38, %v8038_v39  ;;  %v8040_v38 = vld [vmem:[#allocation20_spill] sm:$0xff]  ;;  %v6098_v39 = vld [vmem:[#allocation2 + $0xa0] ss:$8 sps:$4 sm:$0xff]  }
  0x81   :  { %v1616_v40 = vrot.slane %v1602_v12, %v6508_v6  ;;  %v1650_v16 = vcombine.low %v1628_v54, %v1635_v36  ;;  %v1677_v41 = vrot.slane %v1667_v32, %v6508_v6  ;;  %v1716_v31 = vcombine.low %v8039_v27, %v6861_v43  ;;  %v6095_v52 = vld [vmem:[#allocation2 + $0x90] ss:$8 sps:$4 sm:$0xff]   ;;  %v6105_v27 = vld [vmem:[#allocation2 + $0xd4] ss:$8 sps:$4 sm:$0xff]  }
  0x82   :  { %v1651_v0 = vcombine.low %v1642_v45, %v1649_v46  ;;  %v1684_v35 = vrot.slane %v5475_v42, %v6508_v6  ;;  %v1691_v55 = vrot.slane %v1669_v7, %v6508_v6  ;;  %v1698_v59 = vrot.slane %v1670_v44, %v6508_v6  ;;  %v6096_v7 = vld [vmem:[#allocation2 + $0xa4] ss:$8 sps:$4 sm:$0xff]   ;;  %v6099_v44 = vld [vmem:[#allocation2 + $0xb4] ss:$8 sps:$4 sm:$0xff]  }
  0x83   :  { %v1617_v3 = vcombine.low %v7048_v57, %v1616_v40  ;;  %v1658_v61 = vrot.slane %v1650_v16, %v6508_v6  ;;  %v1717_v53 = vcombine.low %v8040_v38, %v6878_v24  ;;  %v5476_v10 = vcombine.high %v6870_v49, %v6878_v24  ;;  %v6101_v40 = vld [vmem:[#allocation2 + $0xb0] ss:$8 sps:$4 sm:$0xff]   ;;  %v6102_v16 = vld [vmem:[#allocation2 + $0xc4] ss:$8 sps:$4 sm:$0xff]  }
  0x84   :  { %v1665_v22 = vrot.slane %v1651_v0, %v6508_v6  ;;  %v1699_v43 = vcombine.low %v1677_v41, %v1684_v35  ;;  %v1700_v2 = vcombine.low %v1691_v55, %v1698_v59  ;;  %v1719_v37 = vcombine.low %v6874_v50, %v8041_v51  ;;  %v6104_v41 = vld [vmem:[#allocation2 + $0xc0] ss:$8 sps:$4 sm:$0xff]   ;;  %v6111_v35 = vld [vmem:[#allocation2 + $0xf4] ss:$8 sps:$4 sm:$0xff]   ;;  %v6113_v55 = vld [vmem:[#allocation2 + $0xf0] ss:$8 sps:$4 sm:$0xff]  }
  0x85   :  { %5468 = vmatmul.mubr.msk.bf16.gmra.mrb[4].mxu0 %vm1058_vm0, %v1261_v56  ;;  %v1384_v56 = vrot.slane %v1362_v20, %v6508_v6  ;;  %v1726_v63 = vrot.slane %v1716_v31, %v6508_v6  ;;  %v1733_v1 = vrot.slane %v1717_v53, %v6508_v6  ;;  %v1740_v5 = vrot.slane %v5476_v10, %v6508_v6  ;;  %v6108_v31 = vld [vmem:[#allocation2 + $0xe4] ss:$8 sps:$4 sm:$0xff]   ;;  %v6110_v0 = vld [vmem:[#allocation2 + $0xe0] ss:$8 sps:$4 sm:$0xff]  }
  0x86   :  { %1487 = vmatprep.mubr.bf16.mxu0 %v8031_v58  ;;  %v1666_v48 = vcombine.low %v1658_v61, %v1665_v22  ;;  %v1707_v29 = vrot.slane %v1699_v43, %v6508_v6  ;;  %v1714_v49 = vrot.slane %v1700_v2, %v6508_v6  ;;  %v1747_v24 = vrot.slane %v1719_v37, %v6508_v6  ;;  %v6116_v59 = vld [vmem:[#allocation2 + $0x104] ss:$8 sps:$4 sm:$0xff]  }
  0x87   :  { %v1351_v62 = vrot.slane %v1343_v25, %v6508_v6  ;;  %v1358_v50 = vrot.slane %v1344_v4, %v6508_v6  ;;  %v1391_v20 = vrot.slane %v1363_v8, %v6508_v6  ;;  %v1748_v28 = vcombine.low %v1726_v63, %v1733_v1  ;;  %v1894_v38 = vld [vmem:[%s7999_s2] ss:$4 sm:$0x3]  ;;  %v5485_v22 = vld [vmem:[%s7999_s2 + $0x1] ss:$4 sm:$0x3] }
  0x88   :  { %v1715_v15 = vcombine.low %v1707_v29, %v1714_v49  ;;  %v1749_v14 = vcombine.low %v1740_v5, %v1747_v24  ;;  %v1522_v34 = vcombine.low %v8042_v33, %v6559_v30  ;;  %v1520_v19 = vcombine.low %v6534_v21, %v8043_v11  ;;  %v5486_v51 = vld [vmem:[%s7999_s2 + $0x2] ss:$4 sm:$0x3] }
  0x89   :  { %v1756_v9 = vrot.slane %v1748_v28, %v6508_v6  ;;  %v1359_v26 = vcombine.low %v1351_v62, %v1358_v50  ;;  %v1392_v8 = vcombine.low %v7032_v47, %v1377_v13  ;;  %v1393_v54 = vcombine.low %v1384_v56, %v1391_v20 }
  0x8a   :  { %v1763_v4 = vrot.slane %v1749_v14, %v6508_v6  ;;  %v5473_v60 = vcombine.high %v6537_v23, %v6559_v30  ;;  %v1530_v12 = vrot.slane %v1520_v19, %v6508_v6  ;;  %v1544_v57 = vrot.slane %v1522_v34, %v6508_v6 }
  0x8b   :  { %v1400_v21 = vrot.slane %v1392_v8, %v6508_v6  ;;  %v6426_v1 = vmov 1983009808   ;;  %vm3706_vm2 = vcmask 1042434   ;;  %vm3709_vm3 = vcmask 1043459  }
  0x8c   :  { %v1764_v32 = vcombine.low %v1756_v9, %v1763_v4  ;;  %v1551_v45 = vrot.slane %v5473_v60, %v6508_v6  ;;  %v2035_v5 = vunpack.c.l.s4 %v6426_v1  ;;  %vm3712_vm4 = vcmask 1044484  }
  0x8d   :  { %5469 = vmatmul.mubr.msk.bf16.gmra.mrb[8].mxu0 %vm1058_vm0, %v1310_v18  ;;  %v8044_v18 = vld [vmem:[#allocation14_spill] sm:$0xff]  ;;  %vm3715_vm5 = vcmask 1045509   ;;  %vm3718_vm6 = vcmask 1046534   ;;  %vm3721_vm7 = vcmask 1047559   ;;  %vm6428_vm8 = vmmov 0  }
  0x8e   :  { %1497 = vmatprep.mubr.bf16.mxu0 %v8031_v58  ;;  %v1521_v25 = vcombine.low %v8044_v18, %v6529_v17  ;;  %v1407_v17 = vrot.slane %v1393_v54, %v6508_v6  ;;  %v1553_v23 = vcombine.low %v1544_v57, %v1551_v45  ;;  %v2036_v34 = vunpack.c.0.s8 %v2035_v5 }
  0x90   :  { %v1537_v36 = vrot.slane %v1521_v25, %v6508_v6  ;;  %v1408_v47 = vcombine.low %v1400_v21, %v1407_v17  ;;  %v1567_v46 = vrot.slane %v1553_v23, %v6508_v6 }
  0x92   :  { %v1552_v13 = vcombine.low %v1530_v12, %v1537_v36 }
  0x94   :  { %v1560_v30 = vrot.slane %v1552_v13, %v6508_v6  ;;  %v6093_v6 = vld [vmem:[#allocation2 + $0x94] ss:$8 sps:$4 sm:$0xff]  }
  0x95   :  { %5470 = vmatmul.mubr.msk.bf16.gmra.mrb[12].mxu0 %vm1058_vm0, %v1359_v26  ;;  %3314 = vmatprep.subr.bf16.mxu1 %v6093_v6 }
  0x96   :  { %1507 = vmatprep.mubr.bf16.mxu0 %v8031_v58  ;;  %v1568_v42 = vcombine.low %v1560_v30, %v1567_v46  ;;  %3315 = vmatpush1.bf16.msra.mxu1 %v6095_v52 }
  0x97   :  { %3316 = vmatprep.subr.bf16.mxu1 %v6096_v7 }
  0x9a   :  { %3317 = vmatpush1.bf16.msra.mxu1 %v6098_v39 }
  0x9b   :  { %3318 = vmatprep.subr.bf16.mxu1 %v6099_v44 }
  0x9d   :  { %5471 = vmatmul.mubr.msk.bf16.gmra.mrb[16].mxu0 %vm1058_vm0, %v1408_v47 }
  0x9e   :  { %1823 = vmatprep.mubr.bf16.mxu0 %v8031_v58  ;;  %3319 = vmatpush1.bf16.msra.mxu1 %v6101_v40 }
  0x9f   :  { %3320 = vmatprep.subr.bf16.mxu1 %v6102_v16 }
  0xa2   :  { %3321 = vmatpush1.bf16.msra.mxu1 %v6104_v41 }
  0xa3   :  { %3322 = vmatprep.subr.bf16.mxu1 %v6105_v27 }
  0xa5   :  { %5480 = vmatmul.mubr.msk.bf16.vlgmr.msra.gmra.mrb[0].mxu0 %vm1058_vm0, %v1568_v42 }
  0xa6   :  { %1833 = vmatprep.mubr.bf16.mxu0 %v8031_v58 }
  0xad   :  { %5481 = vmatmul.mubr.msk.bf16.gmra.mrb[4].mxu0 %vm1058_vm0, %v1617_v3  ;;  %v8045_v3 = vld [vmem:[#allocation11_spill] sm:$0xff] }
  0xae   :  { %1843 = vmatprep.mubr.bf16.mxu0 %v8031_v58  ;;  %v7121_v61 = vsub.s32 0, %v8045_v3  ;;  %v7127_v53 = vsub.s32 1, %v8045_v3  ;;  %v7165_v60 = vsub.s32 %v2036_v34, %v8045_v3 }
  0xb0   :  { %v7130_v10 = vrot.slane %v1894_v38, %v7121_v61  ;;  %v7136_v43 = vrot.slane %v1894_v38, %v7127_v53  ;;  %v7143_v56 = vrot.slane %v5485_v22, %v7121_v61  ;;  %v7147_v29 = vrot.slane %v5485_v22, %v7127_v53 }
  0xb1   :  { %v7150_v62 = vrot.slane %v5486_v51, %v7121_v61 }
  0xb5   :  { %5482 = vmatmul.mubr.msk.bf16.gmra.mrb[8].mxu0 %vm1058_vm0, %v1666_v48 }
  0xb6   :  { %1853 = vmatprep.mubr.bf16.mxu0 %v8031_v58 }
  0xbd   :  { %5483 = vmatmul.mubr.msk.bf16.gmra.mrb[12].mxu0 %vm1058_vm0, %v1715_v15  ;;  %v7154_v15 = vrot.slane %v5486_v51, %v7127_v53 }
  0xbe   :  { %1863 = vmatprep.mubr.bf16.mxu0 %v8031_v58  ;;  %v6107_v58 = vld [vmem:[#allocation2 + $0xd0] ss:$8 sps:$4 sm:$0xff]  }
  0xbf   :  { %3323 = vmatpush1.bf16.msra.mxu1 %v6107_v58 }
  0xc0   :  { %3324 = vmatprep.subr.bf16.mxu1 %v6108_v31 }
  0xc3   :  { %3325 = vmatpush1.bf16.msra.mxu1 %v6110_v0 }
  0xc4   :  { %3326 = vmatprep.subr.bf16.mxu1 %v6111_v35 }
  0xc5   :  { %5484 = vmatmul.mubr.msk.bf16.gmra.mrb[16].mxu0 %vm1058_vm0, %v1764_v32 }
  0xc7   :  { %3327 = vmatpush1.bf16.msra.mxu1 %v6113_v55 }
  0xc8   :  { %3369 = vmatprep.subr.bf16.mxu1 %v6116_v59 }
 0x178   :  { %v1825_v2 = vpop.f32.mrb[0].mxu0 }
 0x179   :  { %v1906_v37 = vadd.f32 %v7130_v10, %v1825_v2  ;;  %v1827_v63 = vpop.f32.mrb[1].mxu0 }
 0x17a   :  { %v1907_v48 = vadd.f32 %v7136_v43, %v1827_v63  ;;  %v1829_v49 = vpop.f32.mrb[2].mxu0 }
 0x17b   :  { %v1926_v24 = vmax.f32 %v1906_v37, 0.0  ;;  %v1908_v50 = vadd.f32 %v7130_v10, %v1829_v49  ;;  %v1831_v20 = vpop.f32.mrb[3].mxu0 }
 0x17c   :  { %v1927_v28 = vmax.f32 %v1907_v48, 0.0  ;;  %v1909_v14 = vadd.f32 %v7136_v43, %v1831_v20 }
 0x17d   :  { %v1959_v9 = vmul.f32 %v7143_v56, %v1926_v24  ;;  %v1928_v33 = vmax.f32 %v1908_v50, 0.0 }
 0x17e   :  { %v1960_v11 = vmul.f32 %v7147_v29, %v1927_v28  ;;  %v1929_v19 = vmax.f32 %v1909_v14, 0.0 }
 0x17f   :  { %v1992_v18 = vadd.f32 %v7150_v62, %v1959_v9  ;;  %v1961_v25 = vmul.f32 %v7143_v56, %v1928_v33 }
 0x180   :  { %v1993_v4 = vadd.f32 %v7154_v15, %v1960_v11  ;;  %v1962_v26 = vmul.f32 %v7147_v29, %v1929_v19  ;;  %v1835_v8 = vpop.f32.mrb[4].mxu0 }
 0x181   :  { %v1994_v54 = vadd.f32 %v7150_v62, %v1961_v25  ;;  %v1910_v32 = vadd.f32 %v7130_v10, %v1835_v8  ;;  %v1837_v12 = vpop.f32.mrb[5].mxu0 }
 0x182   :  { %v2032_v57 = vcombine.low %v1992_v18, %v1993_v4  ;;  %v2033_v21 = vcombine.high %v1992_v18, %v1993_v4  ;;  %v1995_v17 = vadd.f32 %v7154_v15, %v1962_v26  ;;  %v1911_v36 = vadd.f32 %v7136_v43, %v1837_v12  ;;  %v1839_v45 = vpop.f32.mrb[6].mxu0 }
 0x183   :  { %v1930_v47 = vmax.f32 %v1910_v32, 0.0  ;;  %v1912_v13 = vadd.f32 %v7130_v10, %v1839_v45  ;;  %v1841_v23 = vpop.f32.mrb[7].mxu0 }
 0x184   :  { %v2050_v30 = vcombine.low %v1994_v54, %v1995_v17  ;;  %v2051_v46 = vcombine.high %v1994_v54, %v1995_v17  ;;  %v1931_v42 = vmax.f32 %v1911_v36, 0.0  ;;  %v1913_v6 = vadd.f32 %v7136_v43, %v1841_v23 }
 0x185   :  { %v1963_v52 = vmul.f32 %v7143_v56, %v1930_v47  ;;  %v1932_v7 = vmax.f32 %v1912_v13, 0.0  ;;  %v2040_v39 = vrot.slane %v2032_v57, %v7165_v60  ;;  %v2047_v44 = vrot.slane %v2033_v21, %v7165_v60 }
 0x186   :  { %v7176_v40 = vrot.slane %v2050_v30, %v7165_v60  ;;  %v1964_v16 = vmul.f32 %v7147_v29, %v1931_v42  ;;  %v1933_v41 = vmax.f32 %v1913_v6, 0.0  ;;  %v7180_v27 = vrot.slane %v2051_v46, %v7165_v60 }
 0x187   :  { %v1996_v58 = vadd.f32 %v7150_v62, %v1963_v52  ;;  %v1965_v31 = vmul.f32 %v7143_v56, %v1932_v7  ;;  %v2048_v0 = vcombine.high %v2040_v39, %v2040_v39  ;;  %v2049_v35 = vcombine.high %v2047_v44, %v2047_v44 }
 0x188   :  { %v1997_v55 = vadd.f32 %v7154_v15, %v1964_v16  ;;  %v1966_v59 = vmul.f32 %v7147_v29, %v1933_v41  ;;  %v1845_v3 = vpop.f32.mrb[8].mxu0  ;;  %v2066_v38 = vcombine.high %v7176_v40, %v7176_v40  ;;  %v2067_v22 = vcombine.high %v7180_v27, %v7180_v27 }
 0x189   :  { %v1998_v2 = vadd.f32 %v7150_v62, %v1965_v31  ;;  %v1914_v51 = vadd.f32 %v7130_v10, %v1845_v3  ;;  %v1847_v37 = vpop.f32.mrb[9].mxu0  ;;  %v2212_v63 = vcombine.low %v2040_v39, %v2048_v0  ;;  %v2213_v1 = vcombine.low %v2047_v44, %v2049_v35 }
 0x18a   :  { %v2068_v5 = vcombine.low %v1996_v58, %v1997_v55  ;;  %v2069_v48 = vcombine.high %v1996_v58, %v1997_v55  ;;  %v1999_v49 = vadd.f32 %v7154_v15, %v1966_v59  ;;  %v1915_v24 = vadd.f32 %v7136_v43, %v1847_v37  ;;  %v1849_v50 = vpop.f32.mrb[10].mxu0 }
 0x18b   :  { %v1934_v20 = vmax.f32 %v1914_v51, 0.0  ;;  %v1916_v28 = vadd.f32 %v7130_v10, %v1849_v50  ;;  %v1851_v14 = vpop.f32.mrb[11].mxu0  ;;  %v7196_v9 = vrot.slane %v2212_v63, %v7165_v60  ;;  %v7199_v33 = vrot.slane %v2213_v1, %v7165_v60 }
 0x18c   :  { %v7202_v34 = vrot.slane %v2069_v48, %v7165_v60  ;;  %v2086_v11 = vcombine.low %v1998_v2, %v1999_v49  ;;  %v2087_v19 = vcombine.high %v1998_v2, %v1999_v49  ;;  %v1935_v18 = vmax.f32 %v1915_v24, 0.0 }
 0x18d   :  { %v1967_v25 = vmul.f32 %v7143_v56, %v1934_v20  ;;  %v1936_v4 = vmax.f32 %v1916_v28, 0.0  ;;  %v1917_v26 = vadd.f32 %v7136_v43, %v1851_v14  ;;  %v2076_v8 = vrot.slane %v2068_v5, %v7165_v60 }
 0x18e   :  { %v2085_v54 = vcombine.high %v7202_v34, %v7202_v34  ;;  %v7210_v32 = vrot.slane %v2086_v11, %v7165_v60  ;;  %v7213_v12 = vrot.slane %v2087_v19, %v7165_v60  ;;  %v1968_v57 = vmul.f32 %v7147_v29, %v1935_v18 }
 0x18f   :  { %v2000_v21 = vadd.f32 %v7150_v62, %v1967_v25  ;;  %v1969_v17 = vmul.f32 %v7143_v56, %v1936_v4  ;;  %v1937_v36 = vmax.f32 %v1917_v26, 0.0  ;;  %v2084_v45 = vcombine.high %v2076_v8, %v2076_v8 }
 0x190   :  { %v2102_v47 = vcombine.high %v7210_v32, %v7210_v32  ;;  %v2103_v13 = vcombine.high %v7213_v12, %v7213_v12  ;;  %v7224_v23 = vrot.slane %v7213_v12, %v7165_v60  ;;  %v2001_v30 = vadd.f32 %v7154_v15, %v1968_v57  ;;  %v1855_v46 = vpop.f32.mrb[12].mxu0 }
 0x191   :  { %v2002_v42 = vadd.f32 %v7150_v62, %v1969_v17  ;;  %v1970_v6 = vmul.f32 %v7147_v29, %v1937_v36  ;;  %v1918_v52 = vadd.f32 %v7130_v10, %v1855_v46  ;;  %v1857_v7 = vpop.f32.mrb[13].mxu0  ;;  %v7232_v39 = vcombine.high %v7196_v9, %v7199_v33 }
 0x192   :  { %v2104_v44 = vcombine.low %v2000_v21, %v2001_v30  ;;  %v2105_v16 = vcombine.high %v2000_v21, %v2001_v30  ;;  %v1919_v41 = vadd.f32 %v7136_v43, %v1857_v7  ;;  %v1859_v58 = vpop.f32.mrb[14].mxu0  ;;  %v2236_v31 = vrot.slane %v7176_v40, %v7165_v60 }
 0x193   :  { %v2003_v0 = vadd.f32 %v7154_v15, %v1970_v6  ;;  %v1938_v35 = vmax.f32 %v1918_v52, 0.0  ;;  %v1920_v55 = vadd.f32 %v7130_v10, %v1859_v58  ;;  %v1861_v59 = vpop.f32.mrb[15].mxu0  ;;  %v2238_v3 = vcombine.low %v2066_v38, %v7180_v27 }
 0x194   :  { %v7241_v2 = vrot.slane %v2104_v44, %v7165_v60  ;;  %v7244_v51 = vrot.slane %v2105_v16, %v7165_v60  ;;  %v1939_v37 = vmax.f32 %v1919_v41, 0.0  ;;  %v1921_v63 = vadd.f32 %v7136_v43, %v1861_v59 }
 0x195   :  { %v2122_v1 = vcombine.low %v2002_v42, %v2003_v0  ;;  %v2123_v5 = vcombine.high %v2002_v42, %v2003_v0  ;;  %v1971_v40 = vmul.f32 %v7143_v56, %v1938_v35  ;;  %v1940_v48 = vmax.f32 %v1920_v55, 0.0 }
 0x196   :  { %v2120_v49 = vcombine.high %v7241_v2, %v7241_v2  ;;  %v2121_v38 = vcombine.high %v7244_v51, %v7244_v51  ;;  %v1972_v24 = vmul.f32 %v7147_v29, %v1939_v37  ;;  %v1941_v50 = vmax.f32 %v1921_v63, 0.0 }
 0x197   :  { %v7254_v20 = vrot.slane %v2122_v1, %v7165_v60  ;;  %v7257_v28 = vrot.slane %v2123_v5, %v7165_v60  ;;  %v2004_v14 = vadd.f32 %v7150_v62, %v1971_v40  ;;  %v1973_v11 = vmul.f32 %v7143_v56, %v1940_v48 }
 0x198   :  { %v2005_v19 = vadd.f32 %v7154_v15, %v1972_v24  ;;  %v1974_v18 = vmul.f32 %v7147_v29, %v1941_v50  ;;  %v2237_v25 = vcombine.high %v2236_v31, %v2236_v31  ;;  %v2239_v4 = vcombine.low %v2067_v22, %v2076_v8  ;;  %v1865_v26 = vpop.f32.mrb[16].mxu0 }
 0x199   :  { %v2138_v57 = vcombine.high %v7254_v20, %v7254_v20  ;;  %v2139_v21 = vcombine.high %v7257_v28, %v7257_v28  ;;  %v2006_v17 = vadd.f32 %v7150_v62, %v1973_v11  ;;  %v2246_v36 = vrot.slane %v2238_v3, %v7165_v60  ;;  %v1867_v30 = vpop.f32.mrb[17].mxu0 }
 0x19a   :  { %v2140_v46 = vcombine.low %v2004_v14, %v2005_v19  ;;  %v2141_v42 = vcombine.high %v2004_v14, %v2005_v19  ;;  %v2007_v6 = vadd.f32 %v7154_v15, %v1974_v18  ;;  %v2253_v52 = vrot.slane %v2239_v4, %v7165_v60  ;;  %v1869_v27 = vpop.f32.mrb[18].mxu0  ;;  %v6114_v19 = vld [vmem:[#allocation2 + $0x100] ss:$8 sps:$4 sm:$0xff]  }
 0x19b   :  { %v2262_v22 = vrot.slane %v2084_v45, %v7165_v60  ;;  %v7276_v8 = vpack.c.bf16 %v2237_v25, %v7232_v39  ;;  %v2228_v7 = vcombine.low %v7196_v9, %v7199_v33  ;;  %v1922_v44 = vadd.f32 %v7130_v10, %v1865_v26  ;;  %v1871_v16 = vpop.f32.mrb[19].mxu0 }
 0x19c   :  { %v7282_v41 = vrot.slane %v2140_v46, %v7165_v60  ;;  %v7285_v58 = vrot.slane %v2141_v42, %v7165_v60  ;;  %v2158_v0 = vcombine.low %v2006_v17, %v2007_v6  ;;  %v2159_v35 = vcombine.high %v2006_v17, %v2007_v6  ;;  %v6119_v46 = vld [vmem:[#allocation2 + $0x114] ss:$8 sps:$4 sm:$0xff]  }
 0x19d   :  { %v2255_v55 = vcombine.high %v2246_v36, %v2253_v52  ;;  %v2263_v59 = vcombine.high %v2262_v22, %v2262_v22  ;;  %v2254_v45 = vcombine.low %v2246_v36, %v2253_v52  ;;  %v7287_v3 = vpack.c.bf16 %v2236_v31, %v2228_v7 }
 0x19e   :  { %v2156_v37 = vcombine.high %v7282_v41, %v7282_v41  ;;  %v2157_v9 = vcombine.high %v7285_v58, %v7285_v58  ;;  %v7295_v33 = vrot.slane %v7282_v41, %v7165_v60  ;;  %v7298_v63 = vrot.slane %v2158_v0, %v7165_v60 }
 0x19f   :  { %v7301_v1 = vrot.slane %v2159_v35, %v7165_v60  ;;  %v7303_v5 = vpack.c.bf16 %v2263_v59, %v2255_v55  ;;  %v5748_v31 = vpack.c.bf16 %v2255_v55, %v7232_v39  ;;  %v7306_v40 = vpack.c.bf16 %v2262_v22, %v2254_v45 }
 0x1a0   :  { %v2174_v48 = vcombine.high %v7298_v63, %v7298_v63  ;;  %v2469_v24 = vshrl.u32 %v7287_v3, 16  ;;  %v2471_v50 = vshll.u32 %v7287_v3, 16  ;;  %v2596_v14 = vrot.slane %v7287_v3, 1 }
 0x1a1   :  { %v2175_v11 = vcombine.high %v7301_v1, %v7301_v1  ;;  %3328 = vmatprep.mubr.bf16.mxu1 %v5748_v31  ;;  %v2483_v18 = vshrl.u32 %v7306_v40, 16  ;;  %v2485_v39 = vshll.u32 %v7306_v40, 16  ;;  %v2598_v25 = vrot.slane %v7306_v40, 1 }
 0x1a2   :  { %v7318_v4 = vrot.slane %v2471_v50, 1  ;;  %v5747_v26 = vpack.c.bf16 %v2254_v45, %v2228_v7  ;;  %v1942_v17 = vmax.f32 %v1922_v44, 0.0  ;;  %v1923_v36 = vadd.f32 %v7136_v43, %v1867_v30 }
 0x1a3   :  { %v7321_v42 = vrot.slane %v2485_v39, 1  ;;  %v1924_v6 = vadd.f32 %v7130_v10, %v1869_v27  ;;  %v1925_v52 = vadd.f32 %v7136_v43, %v1871_v16  ;;  %v2264_v22 = vcombine.low %v7202_v34, %v2085_v54  ;;  %v6117_v43 = vld [vmem:[#allocation2 + $0x110] ss:$8 sps:$4 sm:$0xff]  }
 0x1a4   :  { %3329 = vmatmul.mubr.bf16.vlgmr.msra.gmra.mrb[0].mxu1 %v5747_v26  ;;  %v1975_v0 = vmul.f32 %v7143_v56, %v1942_v17  ;;  %v1943_v35 = vmax.f32 %v1923_v36, 0.0  ;;  %v2265_v30 = vcombine.low %v7210_v32, %v2102_v47  ;;  %v2289_v7 = vcombine.high %v7224_v23, %v7224_v23  ;;  %v6122_v32 = vld [vmem:[#allocation2 + $0x124] ss:$8 sps:$4 sm:$0xff]  }
 0x1a5   :  { %3370 = vmatpush1.bf16.msra.mxu1 %v6114_v19  ;;  %v1944_v10 = vmax.f32 %v1924_v6, 0.0  ;;  %v1945_v27 = vmax.f32 %v1925_v52, 0.0  ;;  %v2272_v44 = vrot.slane %v2264_v22, %v7165_v60  ;;  %v2290_v34 = vcombine.low %v2103_v13, %v7241_v2 }
 0x1a6   :  { %v2008_v54 = vadd.f32 %v7150_v62, %v1975_v0  ;;  %v1976_v16 = vmul.f32 %v7147_v29, %v1943_v35  ;;  %3371 = vmatprep.subr.bf16.mxu1 %v6119_v46  ;;  %v2279_v47 = vrot.slane %v2265_v30, %v7165_v60  ;;  %v2291_v55 = vcombine.low %v2120_v49, %v7244_v51  ;;  %v6125_v46 = vld [vmem:[#allocation2 + $0x134] ss:$8 sps:$4 sm:$0xff]  }
 0x1a7   :  { %v1977_v59 = vmul.f32 %v7143_v56, %v1944_v10  ;;  %v1978_v45 = vmul.f32 %v7147_v29, %v1945_v27  ;;  %v2298_v12 = vrot.slane %v2290_v34, %v7165_v60  ;;  %v2314_v13 = vrot.slane %v2121_v38, %v7165_v60  ;;  %v6120_v56 = vld [vmem:[#allocation2 + $0x120] ss:$8 sps:$4 sm:$0xff]   ;;  %v6128_v34 = vld [vmem:[#allocation2 + $0x144] ss:$8 sps:$4 sm:$0xff]  }
 0x1a8   :  { %v2009_v31 = vadd.f32 %v7154_v15, %v1976_v16  ;;  %v2281_v50 = vcombine.high %v2272_v44, %v2279_v47  ;;  %v2305_v19 = vrot.slane %v2291_v55, %v7165_v60  ;;  %v2280_v39 = vcombine.low %v2272_v44, %v2279_v47 }
 0x1a9   :  { %v2010_v2 = vadd.f32 %v7150_v62, %v1977_v59  ;;  %v2011_v49 = vadd.f32 %v7154_v15, %v1978_v45  ;;  %3372 = vmatpush1.bf16.msra.mxu1 %v6117_v43  ;;  %v2315_v29 = vcombine.high %v2314_v13, %v2314_v13  ;;  %v2316_v26 = vcombine.low %v7254_v20, %v2138_v57  ;;  %v6123_v43 = vld [vmem:[#allocation2 + $0x130] ss:$8 sps:$4 sm:$0xff]  }
 0x1aa   :  { %v2176_v51 = vcombine.low %v2008_v54, %v2009_v31  ;;  %v2177_v38 = vcombine.high %v2008_v54, %v2009_v31  ;;  %3373 = vmatprep.subr.bf16.mxu1 %v6122_v32  ;;  %v2307_v17 = vcombine.high %v2298_v12, %v2305_v19  ;;  %v7363_v36 = vpack.c.bf16 %v2289_v7, %v2281_v50 }
 0x1ab   :  { %v2194_v6 = vcombine.low %v2010_v2, %v2011_v49  ;;  %v2195_v52 = vcombine.high %v2010_v2, %v2011_v49  ;;  %v2306_v62 = vcombine.low %v2298_v12, %v2305_v19  ;;  %v7366_v15 = vpack.c.bf16 %v7224_v23, %v2280_v39  ;;  %v6131_v19 = vld [vmem:[#allocation2 + $0x154] ss:$8 sps:$4 sm:$0xff]  }
 0x1ac   :  { %v2184_v22 = vrot.slane %v2176_v51, %v7165_v60  ;;  %v2191_v0 = vrot.slane %v2177_v38, %v7165_v60  ;;  %v7370_v35 = vpack.c.bf16 %v2315_v29, %v2307_v17  ;;  %v5750_v20 = vpack.c.bf16 %v2307_v17, %v2281_v50 }
 0x1ad   :  { %v2202_v57 = vrot.slane %v2194_v6, %v7165_v60  ;;  %v2209_v30 = vrot.slane %v2195_v52, %v7165_v60  ;;  %3374 = vmatpush1.bf16.msra.mxu1 %v6120_v56  ;;  %v7374_v7 = vpack.c.bf16 %v2314_v13, %v2306_v62  ;;  %v5749_v10 = vpack.c.bf16 %v2306_v62, %v2280_v39 }
 0x1ae   :  { %v2192_v27 = vcombine.high %v2184_v22, %v2184_v22  ;;  %v2193_v44 = vcombine.high %v2191_v0, %v2191_v0  ;;  %v2392_v23 = vrot.slane %v2191_v0, %v7165_v60  ;;  %3338 = vmatprep.mubr.bf16.mxu1 %v5750_v20  ;;  %3375 = vmatprep.subr.bf16.mxu1 %v6125_v46  ;;  %v2476_v54 = vshrl.u32 %v7276_v8, 16  ;;  %v6134_v0 = vld [vmem:[#allocation2 + $0x164] ss:$8 sps:$4 sm:$0xff]  }
 0x1af   :  { %v2210_v16 = vcombine.high %v2202_v57, %v2202_v57  ;;  %v2211_v32 = vcombine.high %v2209_v30, %v2209_v30  ;;  %3339 = vmatmul.mubr.bf16.gmra.mrb[4].mxu1 %v5749_v10  ;;  %v2317_v47 = vcombine.low %v7257_v28, %v2139_v21  ;;  %v2324_v55 = vrot.slane %v2316_v26, %v7165_v60  ;;  %v6126_v21 = vld [vmem:[#allocation2 + $0x140] ss:$8 sps:$4 sm:$0xff]  }
 0x1b0   :  { %v2341_v59 = vcombine.high %v7295_v33, %v7295_v33  ;;  %v2342_v45 = vcombine.low %v2156_v37, %v7285_v58  ;;  %v2343_v12 = vcombine.low %v2157_v9, %v7298_v63  ;;  %v2366_v28 = vrot.slane %v2174_v48, %v7165_v60 }
 0x1b1   :  { %3376 = vmatpush1.bf16.msra.mxu1 %v6123_v43  ;;  %v2331_v13 = vrot.slane %v2317_v47, %v7165_v60  ;;  %v2368_v41 = vcombine.low %v7301_v1, %v2175_v11  ;;  %v2369_v37 = vcombine.low %v2184_v22, %v2192_v27  ;;  %v2393_v31 = vcombine.high %v2392_v23, %v2392_v23  ;;  %v6129_v22 = vld [vmem:[#allocation2 + $0x150] ss:$8 sps:$4 sm:$0xff]   ;;  %v6132_v47 = vld [vmem:[#allocation2 + $0x160] ss:$8 sps:$4 sm:$0xff]  }
 0x1b2   :  { %3377 = vmatprep.subr.bf16.mxu1 %v6128_v34  ;;  %v2350_v58 = vrot.slane %v2342_v45, %v7165_v60  ;;  %v2357_v9 = vrot.slane %v2343_v12, %v7165_v60  ;;  %v2367_v50 = vcombine.high %v2366_v28, %v2366_v28  ;;  %v2394_v63 = vcombine.low %v2193_v44, %v2202_v57 }
 0x1b3   :  { %v2333_v48 = vcombine.high %v2324_v55, %v2331_v13  ;;  %v2332_v39 = vcombine.low %v2324_v55, %v2331_v13  ;;  %v2376_v2 = vrot.slane %v2368_v41, %v7165_v60  ;;  %v2383_v49 = vrot.slane %v2369_v37, %v7165_v60 }
 0x1b4   :  { %v2359_v56 = vcombine.high %v2350_v58, %v2357_v9  ;;  %v2358_v29 = vcombine.low %v2350_v58, %v2357_v9  ;;  %v2395_v26 = vcombine.low %v2210_v16, %v2209_v30  ;;  %v2402_v1 = vrot.slane %v2394_v63, %v7165_v60 }
 0x1b5   :  { %3378 = vmatpush1.bf16.msra.mxu1 %v6126_v21  ;;  %v7407_v11 = vpack.c.bf16 %v2341_v59, %v2333_v48  ;;  %v7410_v51 = vpack.c.bf16 %v7295_v33, %v2332_v39  ;;  %v2385_v38 = vcombine.high %v2376_v2, %v2383_v49  ;;  %v2418_v17 = vrot.slane %v2211_v32, %v7165_v60 }
 0x1b6   :  { %v7413_v46 = vpack.c.bf16 %v2367_v50, %v2359_v56  ;;  %v5752_v6 = vpack.c.bf16 %v2359_v56, %v2333_v48  ;;  %v7415_v52 = vpack.c.bf16 %v2366_v28, %v2358_v29  ;;  %v5751_v62 = vpack.c.bf16 %v2358_v29, %v2332_v39  ;;  %3379 = vmatprep.subr.bf16.mxu1 %v6131_v19  ;;  %v6137_v28 = vld [vmem:[#allocation2 + $0x174] ss:$8 sps:$4 sm:$0xff]   ;;  %v6135_v50 = vld [vmem:[#allocation2 + $0x170] ss:$8 sps:$4 sm:$0xff]   ;;  %v6140_v39 = vld [vmem:[#allocation2 + $0x184] ss:$8 sps:$4 sm:$0xff]  }
 0x1b7   :  { %v2409_v20 = vrot.slane %v2395_v26, %v7165_v60  ;;  %v2419_v57 = vcombine.high %v2418_v17, %v2418_v17  ;;  %v7418_v30 = vpack.c.bf16 %v2393_v31, %v2385_v38  ;;  %v2384_v10 = vcombine.low %v2376_v2, %v2383_v49 }
 0x1b8   :  { %3348 = vmatprep.mubr.bf16.mxu1 %v5752_v6  ;;  %v2478_v33 = vshll.u32 %v7276_v8, 16  ;;  %v2490_v43 = vshrl.u32 %v7303_v5, 16  ;;  %v2492_v27 = vshll.u32 %v7303_v5, 16  ;;  %v7426_v44 = vor.u32 %v7318_v4, %v2469_v24 }
 0x1b9   :  { %3349 = vmatmul.mubr.bf16.gmra.mrb[8].mxu1 %v5751_v62  ;;  %v2411_v34 = vcombine.high %v2402_v1, %v2409_v20  ;;  %v2410_v16 = vcombine.low %v2402_v1, %v2409_v20  ;;  %v7428_v60 = vpack.c.bf16 %v2392_v23, %v2384_v10  ;;  %v7433_v32 = vor.u32 %v7321_v42, %v2483_v18  ;;  %v6138_v20 = vld [vmem:[#allocation2 + $0x180] ss:$8 sps:$4 sm:$0xff]  }
 0x1ba   :  { %3380 = vmatpush1.bf16.msra.mxu1 %v6129_v22  ;;  %v2480_v55 = vrot.slane %v2478_v33, 1  ;;  %v2494_v59 = vrot.slane %v2492_v27, 1  ;;  %v2504_v45 = vshrl.u32 %v7363_v36, 16  ;;  %v2506_v12 = vshll.u32 %v7363_v36, 16  ;;  %v6143_v27 = vld [vmem:[#allocation2 + $0x194] ss:$8 sps:$4 sm:$0xff]  }
 0x1bb   :  { %3381 = vmatprep.subr.bf16.mxu1 %v6134_v0  ;;  %v7437_v24 = vpack.c.bf16 %v2419_v57, %v2411_v34  ;;  %v5754_v4 = vpack.c.bf16 %v2411_v34, %v2385_v38  ;;  %v7439_v23 = vpack.c.bf16 %v2418_v17, %v2410_v16  ;;  %v5753_v21 = vpack.c.bf16 %v2410_v16, %v2384_v10 }
 0x1bc   :  { %v2481_v18 = vor.u32 %v2480_v55, %v2476_v54  ;;  %v2495_v42 = vor.u32 %v2494_v59, %v2490_v43  ;;  %v5489_v13 = vcombine.low %v7426_v44, %v7433_v32  ;;  %v2508_v41 = vrot.slane %v2506_v12, 1  ;;  %v6171_v44 = vld [vmem:[#allocation2 + $0x230] ss:$8 sps:$4 sm:$0xff]   ;;  %v6176_v32 = vld [vmem:[#allocation2 + $0x244] ss:$8 sps:$4 sm:$0xff]  }
 0x1bd   :  { %3358 = vmatprep.mubr.bf16.mxu1 %v5754_v4  ;;  %v2518_v37 = vshrl.u32 %v7370_v35, 16  ;;  %v2520_v31 = vshll.u32 %v7370_v35, 16  ;;  %v2497_v58 = vshrl.u32 %v7366_v15, 16  ;;  %v2499_v9 = vshll.u32 %v7366_v15, 16 }
 0x1be   :  { %3382 = vmatpush1.bf16.msra.mxu1 %v6132_v47  ;;  %v5490_v19 = vcombine.low %v2481_v18, %v2495_v42  ;;  %v7449_v63 = vor.u32 %v2508_v41, %v2504_v45  ;;  %v2511_v54 = vshrl.u32 %v7374_v7, 16  ;;  %v2513_v48 = vshll.u32 %v7374_v7, 16  ;;  %v6141_v41 = vld [vmem:[#allocation2 + $0x190] ss:$8 sps:$4 sm:$0xff]  }
 0x1bf   :  { %3383 = vmatprep.subr.bf16.mxu1 %v6137_v28  ;;  %v2522_v2 = vrot.slane %v2520_v31, 1  ;;  %v2501_v49 = vrot.slane %v2499_v9, 1  ;;  %v2532_v56 = vshrl.u32 %v7407_v11, 16  ;;  %v2534_v29 = vshll.u32 %v7407_v11, 16 }
 0x1c0   :  { %v2515_v26 = vrot.slane %v2513_v48, 1  ;;  %v2546_v1 = vshrl.u32 %v7413_v46, 16  ;;  %v2548_v38 = vshll.u32 %v7413_v46, 16  ;;  %v2525_v17 = vshrl.u32 %v7410_v51, 16 }
 0x1c1   :  { %3359 = vmatmul.mubr.bf16.gmra.mrb[12].mxu1 %v5753_v21  ;;  %v7458_v6 = vor.u32 %v2522_v2, %v2518_v37  ;;  %v7460_v62 = vor.u32 %v2501_v49, %v2497_v58  ;;  %v2536_v22 = vrot.slane %v2534_v29, 1  ;;  %v2527_v0 = vshll.u32 %v7410_v51, 16 }
 0x1c2   :  { %3384 = vmatpush1.bf16.msra.mxu1 %v6135_v50  ;;  %3401 = vmatprep.mubr.bf16.mxu1 %v5490_v19  ;;  %v7463_v57 = vor.u32 %v2515_v26, %v2511_v54  ;;  %v2550_v10 = vrot.slane %v2548_v38, 1  ;;  %v2539_v33 = vshrl.u32 %v7415_v52, 16  ;;  %v2541_v43 = vshll.u32 %v7415_v52, 16  ;;  %v6146_v50 = vld [vmem:[#allocation2 + $0x1a4] ss:$8 sps:$4 sm:$0xff]  }
 0x1c3   :  { %3385 = vmatprep.subr.bf16.mxu1 %v6140_v39  ;;  %v5496_v34 = vcombine.low %v7449_v63, %v7458_v6  ;;  %v7469_v16 = vor.u32 %v2536_v22, %v2532_v56  ;;  %v2529_v47 = vrot.slane %v2527_v0, 1  ;;  %v2560_v55 = vshrl.u32 %v7418_v30, 16  ;;  %v6179_v63 = vld [vmem:[#allocation2 + $0x254] ss:$8 sps:$4 sm:$0xff]   ;;  %v6177_v6 = vld [vmem:[#allocation2 + $0x250] ss:$8 sps:$4 sm:$0xff]  }
 0x1c4   :  { %v5495_v59 = vcombine.low %v7460_v62, %v7463_v57  ;;  %v7474_v45 = vor.u32 %v2550_v10, %v2546_v1  ;;  %v2543_v12 = vrot.slane %v2541_v43, 1  ;;  %v2562_v4 = vshll.u32 %v7418_v30, 16  ;;  %v6149_v10 = vld [vmem:[#allocation2 + $0x1b4] ss:$8 sps:$4 sm:$0xff]   ;;  %v6182_v62 = vld [vmem:[#allocation2 + $0x264] ss:$8 sps:$4 sm:$0xff]  }
 0x1c5   :  { %v7477_v28 = vor.u32 %v2529_v47, %v2525_v17  ;;  %v2574_v21 = vshrl.u32 %v7437_v24, 16  ;;  %v2576_v18 = vshll.u32 %v7437_v24, 16  ;;  %v2553_v42 = vshrl.u32 %v7428_v60, 16  ;;  %v6180_v57 = vld [vmem:[#allocation2 + $0x260] ss:$8 sps:$4 sm:$0xff]  }
 0x1c6   :  { %3386 = vmatpush1.bf16.msra.mxu1 %v6138_v20  ;;  %v5502_v37 = vcombine.low %v7469_v16, %v7474_v45  ;;  %v7484_v31 = vor.u32 %v2543_v12, %v2539_v33  ;;  %v2564_v58 = vrot.slane %v2562_v4, 1  ;;  %v2555_v9 = vshll.u32 %v7428_v60, 16  ;;  %v6183_v16 = vld [vmem:[#allocation2 + $0x270] ss:$8 sps:$4 sm:$0xff]   ;;  %v6186_v45 = vld [vmem:[#allocation2 + $0x280] ss:$8 sps:$4 sm:$0xff]  }
 0x1c7   :  { %3387 = vmatprep.subr.bf16.mxu1 %v6143_v27  ;;  %v2578_v19 = vrot.slane %v2576_v18, 1  ;;  %v2567_v54 = vshrl.u32 %v7439_v23, 16  ;;  %v2569_v48 = vshll.u32 %v7439_v23, 16  ;;  %v2597_v39 = vrot.slane %v7276_v8, 1  ;;  %v6144_v8 = vld [vmem:[#allocation2 + $0x1a0] ss:$8 sps:$4 sm:$0xff]  }
 0x1c8   :  { %v5501_v2 = vcombine.low %v7477_v28, %v7484_v31  ;;  %v7492_v49 = vor.u32 %v2564_v58, %v2560_v55  ;;  %v2557_v56 = vrot.slane %v2555_v9, 1  ;;  %v2599_v29 = vrot.slane %v7303_v5, 1  ;;  %v6153_v18 = vld [vmem:[#allocation2 + $0x1d0] ss:$8 sps:$4 sm:$0xff]   ;;  %v6164_v58 = vld [vmem:[#allocation2 + $0x204] ss:$8 sps:$4 sm:$0xff]  }
 0x1c9   :  { %v7495_v26 = vor.u32 %v2578_v19, %v2574_v21  ;;  %v2571_v1 = vrot.slane %v2569_v48, 1  ;;  %v7501_v38 = vcombine.low %v2596_v14, %v2598_v25  ;;  %v2601_v17 = vrot.slane %v7363_v36, 1  ;;  %v6162_v9 = vld [vmem:[#allocation2 + $0x200] ss:$8 sps:$4 sm:$0xff]   ;;  %v6165_v19 = vld [vmem:[#allocation2 + $0x210] ss:$8 sps:$4 sm:$0xff]  }
 0x1ca   :  { %3388 = vmatpush1.bf16.msra.mxu1 %v6141_v41  ;;  %v7504_v22 = vor.u32 %v2557_v56, %v2553_v42  ;;  %v7506_v0 = vcombine.low %v2597_v39, %v2599_v29  ;;  %v2603_v20 = vrot.slane %v7370_v35, 1  ;;  %v2600_v5 = vrot.slane %v7366_v15, 1  ;;  %v6158_v42 = vld [vmem:[#allocation2 + $0x1e4] ss:$8 sps:$4 sm:$0xff]   ;;  %v6156_v41 = vld [vmem:[#allocation2 + $0x1e0] ss:$8 sps:$4 sm:$0xff]  }
 0x1cb   :  { %3389 = vmatprep.subr.bf16.mxu1 %v6146_v50  ;;  %v5508_v40 = vcombine.low %v7492_v49, %v7495_v26  ;;  %v7512_v3 = vor.u32 %v2571_v1, %v2567_v54  ;;  %v2602_v14 = vrot.slane %v7374_v7, 1  ;;  %v2605_v25 = vrot.slane %v7407_v11, 1  ;;  %v6147_v7 = vld [vmem:[#allocation2 + $0x1b0] ss:$8 sps:$4 sm:$0xff]   ;;  %v6167_v50 = vld [vmem:[#allocation2 + $0x214] ss:$8 sps:$4 sm:$0xff]  }
 0x1cc   :  { %v7516_v36 = vcombine.low %v2601_v17, %v2603_v20  ;;  %v2607_v33 = vrot.slane %v7413_v46, 1  ;;  %v2604_v43 = vrot.slane %v7410_v51, 1  ;;  %v2606_v35 = vrot.slane %v7415_v52, 1  ;;  %v6152_v52 = vld [vmem:[#allocation2 + $0x1c4] ss:$8 sps:$4 sm:$0xff]  }
 0x1cd   :  { %v5507_v15 = vcombine.low %v7504_v22, %v7512_v3  ;;  %v7523_v27 = vcombine.low %v2600_v5, %v2602_v14  ;;  %v2609_v47 = vrot.slane %v7418_v30, 1  ;;  %v2611_v55 = vrot.slane %v7437_v24, 1  ;;  %v6150_v30 = vld [vmem:[#allocation2 + $0x1c0] ss:$8 sps:$4 sm:$0xff]   ;;  %v6155_v24 = vld [vmem:[#allocation2 + $0x1d4] ss:$8 sps:$4 sm:$0xff]  }
 0x1ce   :  { %3390 = vmatpush1.bf16.msra.mxu1 %v6144_v8  ;;  %v7527_v11 = vcombine.low %v2605_v25, %v2607_v33  ;;  %v7529_v12 = vcombine.low %v2604_v43, %v2606_v35  ;;  %v2608_v46 = vrot.slane %v7428_v60, 1  ;;  %v2610_v51 = vrot.slane %v7439_v23, 1  ;;  %v6161_v60 = vld [vmem:[#allocation2 + $0x1f4] ss:$8 sps:$4 sm:$0xff]   ;;  %v6159_v23 = vld [vmem:[#allocation2 + $0x1f0] ss:$8 sps:$4 sm:$0xff]  }
 0x1cf   :  { %3391 = vmatprep.subr.bf16.mxu1 %v6149_v10  ;;  %v7533_v4 = vcombine.low %v2609_v47, %v2611_v55  ;;  %v6170_v54 = vld [vmem:[#allocation2 + $0x224] ss:$8 sps:$4 sm:$0xff]   ;;  %v6168_v48 = vld [vmem:[#allocation2 + $0x220] ss:$8 sps:$4 sm:$0xff]   ;;  %v6173_v39 = vld [vmem:[#allocation2 + $0x234] ss:$8 sps:$4 sm:$0xff]  }
 0x1d0   :  { %v7535_v21 = vcombine.low %v2608_v46, %v2610_v51  ;;  %v6191_v28 = vld [vmem:[#allocation2 + $0x294] ss:$8 sps:$4 sm:$0xff]   ;;  %v6194_v31 = vld [vmem:[#allocation2 + $0x2a4] ss:$8 sps:$4 sm:$0xff]   ;;  %v6195_v56 = vld [vmem:[#allocation2 + $0x2b0] ss:$8 sps:$4 sm:$0xff]  }
 0x1d1   :  { %v6197_v49 = vld [vmem:[#allocation2 + $0x2b4] ss:$8 sps:$4 sm:$0xff]   ;;  %v6200_v29 = vld [vmem:[#allocation2 + $0x2c4] ss:$8 sps:$4 sm:$0xff]   ;;  %v6198_v26 = vld [vmem:[#allocation2 + $0x2c0] ss:$8 sps:$4 sm:$0xff]  }
 0x1d2   :  { %3392 = vmatpush1.bf16.msra.mxu1 %v6147_v7  ;;  %v6203_v1 = vld [vmem:[#allocation2 + $0x2d4] ss:$8 sps:$4 sm:$0xff]   ;;  %v6201_v17 = vld [vmem:[#allocation2 + $0x2d0] ss:$8 sps:$4 sm:$0xff]   ;;  %v6206_v8 = vld [vmem:[#allocation2 + $0x2e4] ss:$8 sps:$4 sm:$0xff]  }
 0x1d3   :  { %3393 = vmatprep.subr.bf16.mxu1 %v6152_v52  ;;  %v6204_v22 = vld [vmem:[#allocation2 + $0x2e0] ss:$8 sps:$4 sm:$0xff]   ;;  %v6207_v20 = vld [vmem:[#allocation2 + $0x2f0] ss:$8 sps:$4 sm:$0xff]  }
 0x1d4   :  { %v6210_v5 = vld [vmem:[#allocation5 + $0xc0] sm:$0xff]   ;;  %v6213_v3 = vld [vmem:[#allocation5 + $0x88] sm:$0xff]   ;;  %v6216_v25 = vld [vmem:[#allocation5 + $0xd0] sm:$0xff]  }
 0x1d5   :  { %v6211_v10 = vld [vmem:[#allocation5 + $0x80] sm:$0xff]   ;;  %5755 = vmatprep.subr.bf16.mxu0 %v6210_v5  ;;  %v6218_v33 = vld [vmem:[#allocation5 + $0x248] sm:$0xff]   ;;  %v6220_v35 = vld [vmem:[#allocation5 + $0xd8] sm:$0xff]  }
 0x1d6   :  { %3394 = vmatpush1.bf16.msra.mxu1 %v6150_v30  ;;  %5756 = vmatpush3.bf16.msra.mxu0 %v6211_v10  ;;  %v6214_v14 = vld [vmem:[#allocation5 + $0x240] sm:$0xff]   ;;  %v6219_v43 = vld [vmem:[#allocation5 + $0x208] sm:$0xff]   ;;  %v6223_v47 = vld [vmem:[#allocation5 + $0x210] sm:$0xff]  }
 0x1d7   :  { %3395 = vmatprep.subr.bf16.mxu1 %v6155_v24  ;;  %v6224_v55 = vld [vmem:[#allocation5 + $0xe0] sm:$0xff]   ;;  %v6225_v7 = vld [vmem:[#allocation5 + $0x258] sm:$0xff]   ;;  %v6229_v51 = vld [vmem:[#allocation5 + $0xe8] sm:$0xff]  }
 0x1d8   :  { %v6228_v46 = vld [vmem:[#allocation5 + $0x260] sm:$0xff]   ;;  %v6234_v30 = vld [vmem:[#allocation5 + $0xf0] sm:$0xff]   ;;  %v6233_v24 = vld [vmem:[#allocation5 + $0x228] sm:$0xff]  }
 0x1d9   :  { %v6230_v52 = vld [vmem:[#allocation5 + $0x220] sm:$0xff]  }
 0x1da   :  { %3396 = vmatpush1.bf16.msra.mxu1 %v6153_v18  ;;  %v6235_v18 = vld [vmem:[#allocation5 + $0xb0] sm:$0xff]  }
 0x1db   :  { %3397 = vmatprep.subr.bf16.mxu1 %v6158_v42  ;;  %v6236_v42 = vld [vmem:[#allocation5 + $0x270] sm:$0xff]  }
 0x1de   :  { %3398 = vmatpush1.bf16.msra.mxu1 %v6156_v41  ;;  %v6238_v41 = vld [vmem:[#allocation5 + $0xf8] sm:$0xff]  }
 0x1df   :  { %3399 = vmatprep.subr.bf16.mxu1 %v6161_v60  ;;  %v6237_v60 = vld [vmem:[#allocation5 + $0x230] sm:$0xff]  }
 0x1e2   :  { %3400 = vmatpush1.bf16.msra.mxu1 %v6159_v23  ;;  %v6239_v23 = vld [vmem:[#allocation5 + $0xb8] sm:$0xff]  }
 0x1e3   :  { %3442 = vmatprep.subr.bf16.mxu1 %v6164_v58  ;;  %v6240_v58 = vld [vmem:[#allocation5 + $0x278] sm:$0xff]  }
 0x1e5   :  { %3402 = vmatmul.mubr.bf16.vlgmr.msra.gmra.mrb[0].mxu1 %v5489_v13  ;;  %v6174_v13 = vld [vmem:[#allocation2 + $0x240] ss:$8 sps:$4 sm:$0xff]  }
 0x1e6   :  { %3411 = vmatprep.mubr.bf16.mxu1 %v5496_v34  ;;  %3443 = vmatpush1.bf16.msra.mxu1 %v6162_v9  ;;  %v6185_v34 = vld [vmem:[#allocation2 + $0x274] ss:$8 sps:$4 sm:$0xff]   ;;  %v6242_v9 = vld [vmem:[#allocation5 + $0x40] sm:$0xff]  }
 0x1e7   :  { %3444 = vmatprep.subr.bf16.mxu1 %v6167_v50  ;;  %v6241_v50 = vld [vmem:[#allocation5 + $0x238] sm:$0xff]  }
 0x1ea   :  { %3445 = vmatpush1.bf16.msra.mxu1 %v6165_v19  ;;  %v6243_v19 = vld [vmem:[#allocation5 + $0x340] sm:$0xff]  }
 0x1eb   :  { %3446 = vmatprep.subr.bf16.mxu1 %v6170_v54  ;;  %v2756_v54 = vld [vmem:[%s8001_s4] ss:$4 sm:$0x3] }
 0x1ed   :  { %3412 = vmatmul.mubr.bf16.gmra.mrb[4].mxu1 %v5495_v59  ;;  %v6188_v59 = vld [vmem:[#allocation2 + $0x284] ss:$8 sps:$4 sm:$0xff]  }
 0x1ee   :  { %3421 = vmatprep.mubr.bf16.mxu1 %v5502_v37  ;;  %3447 = vmatpush1.bf16.msra.mxu1 %v6168_v48  ;;  %v6189_v37 = vld [vmem:[#allocation2 + $0x290] ss:$8 sps:$4 sm:$0xff]   ;;  %v7567_v48 = vrot.slane %v2756_v54, %v7121_v61 }
 0x1ef   :  { %3448 = vmatprep.subr.bf16.mxu1 %v6173_v39  ;;  %v5607_v39 = vld [vmem:[%s8001_s4 + $0x1] ss:$4 sm:$0x3] }
 0x1f2   :  { %3449 = vmatpush1.bf16.msra.mxu1 %v6171_v44  ;;  %v7573_v44 = vrot.slane %v2756_v54, %v7127_v53 }
 0x1f3   :  { %3450 = vmatprep.subr.bf16.mxu1 %v6176_v32 }
 0x1f5   :  { %3422 = vmatmul.mubr.bf16.gmra.mrb[8].mxu1 %v5501_v2  ;;  %v6192_v2 = vld [vmem:[#allocation2 + $0x2a0] ss:$8 sps:$4 sm:$0xff]  }
 0x1f6   :  { %3431 = vmatprep.mubr.bf16.mxu1 %v5508_v40  ;;  %3451 = vmatpush1.bf16.msra.mxu1 %v6174_v13  ;;  %v6212_v40 = vld [vmem:[#allocation5 + $0xc8] sm:$0xff]   ;;  %v5608_v13 = vld [vmem:[%s8001_s4 + $0x2] ss:$4 sm:$0x3] }
 0x1f7   :  { %3452 = vmatprep.subr.bf16.mxu1 %v6179_v63  ;;  %5757 = vmatprep.subr.bf16.mxu0 %v6212_v40 }
 0x1f8   :  { %5758 = vmatpush3.bf16.msra.mxu0 %v6213_v3 }
 0x1f9   :  { %5759 = vmatprep.subr.bf16.mxu0 %v6216_v25 }
 0x1fa   :  { %3453 = vmatpush1.bf16.msra.mxu1 %v6177_v6  ;;  %v7580_v6 = vrot.slane %v5607_v39, %v7121_v61 }
 0x1fb   :  { %3454 = vmatprep.subr.bf16.mxu1 %v6182_v62 }
 0x1fd   :  { %3432 = vmatmul.mubr.bf16.gmra.mrb[12].mxu1 %v5507_v15  ;;  %v6221_v15 = vld [vmem:[#allocation5 + $0x98] sm:$0xff]  }
 0x1fe   :  { %3455 = vmatpush1.bf16.msra.mxu1 %v6180_v57  ;;  %3474 = vmatprep.mubr.bf16.mxu1 %v7506_v0  ;;  %v6209_v0 = vld [vmem:[#allocation2 + $0x2f4] ss:$8 sps:$4 sm:$0xff]  }
 0x1ff   :  { %3456 = vmatprep.subr.bf16.mxu1 %v6185_v34  ;;  %v7584_v34 = vrot.slane %v5607_v39, %v7127_v53 }
 0x202   :  { %3457 = vmatpush1.bf16.msra.mxu1 %v6183_v16 }
 0x203   :  { %3458 = vmatprep.subr.bf16.mxu1 %v6188_v59 }
 0x206   :  { %3459 = vmatpush1.bf16.msra.mxu1 %v6186_v45  ;;  %v7587_v45 = vrot.slane %v5608_v13, %v7121_v61 }
 0x207   :  { %3460 = vmatprep.subr.bf16.mxu1 %v6191_v28 }
 0x20a   :  { %3461 = vmatpush1.bf16.msra.mxu1 %v6189_v37 }
 0x20b   :  { %3462 = vmatprep.subr.bf16.mxu1 %v6194_v31 }
 0x20e   :  { %3463 = vmatpush1.bf16.msra.mxu1 %v6192_v2  ;;  %v7591_v2 = vrot.slane %v5608_v13, %v7127_v53 }
 0x20f   :  { %3464 = vmatprep.subr.bf16.mxu1 %v6197_v49 }
 0x212   :  { %3465 = vmatpush1.bf16.msra.mxu1 %v6195_v56 }
 0x213   :  { %3466 = vmatprep.subr.bf16.mxu1 %v6200_v29 }
 0x216   :  { %3467 = vmatpush1.bf16.msra.mxu1 %v6198_v26 }
 0x217   :  { %3468 = vmatprep.subr.bf16.mxu1 %v6203_v1 }
 0x21a   :  { %3469 = vmatpush1.bf16.msra.mxu1 %v6201_v17 }
 0x21b   :  { %3470 = vmatprep.subr.bf16.mxu1 %v6206_v8 }
 0x21e   :  { %3471 = vmatpush1.bf16.msra.mxu1 %v6204_v22 }
 0x21f   :  { %3472 = vmatprep.subr.bf16.mxu1 %v6209_v0 }
 0x222   :  { %3473 = vmatpush1.bf16.msra.mxu1 %v6207_v20 }
 0x223   :  { %5843 = vmatprep.subr.bf16.mxu1 %v6214_v14 }
 0x225   :  { %3475 = vmatmul.mubr.bf16.vlgmr.msra.gmra.mrb[0].mxu1 %v7501_v38  ;;  %v6215_v38 = vld [vmem:[#allocation5 + $0x200] sm:$0xff]  }
 0x226   :  { %3484 = vmatprep.mubr.bf16.mxu1 %v7516_v36  ;;  %5844 = vmatpush3.bf16.msra.mxu1 %v6215_v38  ;;  %v6217_v36 = vld [vmem:[#allocation5 + $0x90] sm:$0xff]  }
 0x227   :  { %5760 = vmatpush3.bf16.msra.mxu0 %v6217_v36  ;;  %5845 = vmatprep.subr.bf16.mxu1 %v6218_v33 }
 0x228   :  { %5761 = vmatprep.subr.bf16.mxu0 %v6220_v35 }
 0x22a   :  { %5846 = vmatpush3.bf16.msra.mxu1 %v6219_v43 }
 0x22b   :  { %5762 = vmatpush3.bf16.msra.mxu0 %v6221_v15 }
 0x22c   :  { %5763 = vmatprep.subr.bf16.mxu0 %v6224_v55 }
 0x22d   :  { %3485 = vmatmul.mubr.bf16.gmra.mrb[4].mxu1 %v7523_v27  ;;  %v6222_v27 = vld [vmem:[#allocation5 + $0x250] sm:$0xff]  }
 0x22e   :  { %3494 = vmatprep.mubr.bf16.mxu1 %v7527_v11  ;;  %5847 = vmatprep.subr.bf16.mxu1 %v6222_v27  ;;  %v6226_v11 = vld [vmem:[#allocation5 + $0xa0] sm:$0xff]  }
 0x22f   :  { %5848 = vmatpush3.bf16.msra.mxu1 %v6223_v47  ;;  %5764 = vmatpush3.bf16.msra.mxu0 %v6226_v11 }
 0x230   :  { %5849 = vmatprep.subr.bf16.mxu1 %v6225_v7  ;;  %5765 = vmatprep.subr.bf16.mxu0 %v6229_v51 }
 0x235   :  { %3495 = vmatmul.mubr.bf16.gmra.mrb[8].mxu1 %v7529_v12  ;;  %v6227_v12 = vld [vmem:[#allocation5 + $0x218] sm:$0xff]  }
 0x236   :  { %3504 = vmatprep.mubr.bf16.mxu1 %v7533_v4  ;;  %5850 = vmatpush3.bf16.msra.mxu1 %v6227_v12  ;;  %v6231_v4 = vld [vmem:[#allocation5 + $0xa8] sm:$0xff]  }
 0x237   :  { %5851 = vmatprep.subr.bf16.mxu1 %v6228_v46  ;;  %5766 = vmatpush3.bf16.msra.mxu0 %v6231_v4 }
 0x238   :  { %5767 = vmatprep.subr.bf16.mxu0 %v6234_v30 }
 0x23a   :  { %5852 = vmatpush3.bf16.msra.mxu1 %v6230_v52 }
 0x23b   :  { %5768 = vmatpush3.bf16.msra.mxu0 %v6235_v18 }
 0x23c   :  { %5769 = vmatprep.subr.bf16.mxu0 %v6238_v41 }
 0x23d   :  { %3505 = vmatmul.mubr.bf16.gmra.mrb[12].mxu1 %v7535_v21  ;;  %v6232_v21 = vld [vmem:[#allocation5 + $0x268] sm:$0xff]  }
 0x23e   :  { %5853 = vmatprep.subr.bf16.mxu1 %v6232_v21 }
 0x23f   :  { %5854 = vmatpush3.bf16.msra.mxu1 %v6233_v24  ;;  %5770 = vmatpush3.bf16.msra.mxu0 %v6239_v23 }
 0x240   :  { %5855 = vmatprep.subr.bf16.mxu1 %v6236_v42  ;;  %5777 = vmatprep.subr.bf16.mxu0 %v6242_v9 }
 0x243   :  { %5856 = vmatpush3.bf16.msra.mxu1 %v6237_v60 }
 0x244   :  { %5857 = vmatprep.subr.bf16.mxu1 %v6240_v58 }
 0x247   :  { %5858 = vmatpush3.bf16.msra.mxu1 %v6241_v50 }
 0x248   :  { %5887 = vmatprep.subr.bf16.mxu1 %v6243_v19 }
 0x2f8   :  { %v3476_v32 = vpop.f32.mrb[0].mxu1 }
 0x2f9   :  { %v5960_v63 = vadd.f32 %v3476_v32, %v7567_v48  ;;  %v3478_v62 = vpop.f32.mrb[1].mxu1 }
 0x2fa   :  { %v5961_v57 = vadd.f32 %v3478_v62, %v7573_v44  ;;  %v3480_v16 = vpop.f32.mrb[2].mxu1 }
 0x2fb   :  { %v3515_v59 = vmax.f32 %v5960_v63, 0.0  ;;  %v5962_v28 = vadd.f32 %v3480_v16, %v7567_v48  ;;  %v3482_v37 = vpop.f32.mrb[3].mxu1 }
 0x2fc   :  { %v3516_v31 = vmax.f32 %v5961_v57, 0.0  ;;  %v5963_v49 = vadd.f32 %v3482_v37, %v7573_v44 }
 0x2fd   :  { %v3544_v56 = vmul.f32 %v7580_v6, %v3515_v59  ;;  %v3517_v29 = vmax.f32 %v5962_v28, 0.0 }
 0x2fe   :  { %v3545_v26 = vmul.f32 %v7584_v34, %v3516_v31  ;;  %v3518_v1 = vmax.f32 %v5963_v49, 0.0 }
 0x2ff   :  { %v3573_v17 = vadd.f32 %v7587_v45, %v3544_v56  ;;  %v3546_v61 = vmul.f32 %v7580_v6, %v3517_v29 }
 0x300   :  { %v3574_v8 = vadd.f32 %v7591_v2, %v3545_v26  ;;  %v3547_v22 = vmul.f32 %v7584_v34, %v3518_v1  ;;  %v3486_v0 = vpop.f32.mrb[4].mxu1 }
 0x301   :  { %v3589_v20 = vpack.c.bf16 %v3573_v17, %v3573_v17  ;;  %v3575_v53 = vadd.f32 %v7587_v45, %v3546_v61  ;;  %v5964_v5 = vadd.f32 %v3486_v0, %v7567_v48  ;;  %v3488_v10 = vpop.f32.mrb[5].mxu1 }
 0x302   :  { %v3590_v40 = vpack.c.bf16 %v3574_v8, %v3574_v8  ;;  %v3576_v3 = vadd.f32 %v7591_v2, %v3547_v22  ;;  %v5965_v14 = vadd.f32 %v3488_v10, %v7573_v44  ;;  %v3490_v38 = vpop.f32.mrb[6].mxu1 }
 0x303   :  { %v7604_v25 = vunpack.c.l.b16 %v3589_v20  ;;  %v3591_v36 = vpack.c.bf16 %v3575_v53, %v3575_v53  ;;  %v3519_v33 = vmax.f32 %v5964_v5, 0.0  ;;  %v5966_v43 = vadd.f32 %v3490_v38, %v7567_v48  ;;  %v3492_v35 = vpop.f32.mrb[7].mxu1 }
 0x304   :  { %v7607_v15 = vunpack.c.l.b16 %v3590_v40  ;;  %v3592_v27 = vpack.c.bf16 %v3576_v3, %v3576_v3  ;;  %v3520_v47 = vmax.f32 %v5965_v14, 0.0  ;;  %v5967_v55 = vadd.f32 %v3492_v35, %v7573_v44 }
 0x305   :  { %v7610_v7 = vunpack.c.l.b16 %v3591_v36  ;;  %v3548_v11 = vmul.f32 %v7580_v6, %v3519_v33  ;;  %v3521_v12 = vmax.f32 %v5966_v43, 0.0  ;;  %v3702_v46 = vrot.slane %v7604_v25, 1 }
 0x306   :  { %v7614_v51 = vunpack.c.l.b16 %v3592_v27  ;;  %v3549_v52 = vmul.f32 %v7584_v34, %v3520_v47  ;;  %v3522_v4 = vmax.f32 %v5967_v55, 0.0  ;;  %v3723_v21 = vrot.slane %v7607_v15, 1 }
 0x307   :  { %v3577_v30 = vadd.f32 %v7587_v45, %v3548_v11  ;;  %v3550_v24 = vmul.f32 %v7580_v6, %v3521_v12  ;;  %v4496_v18 = vrot.slane %v7607_v15, 4  ;;  %v3704_v42 = vsel %vm3703_vm1, %v7610_v7, %v3702_v46 }
 0x308   :  { %v3578_v41 = vadd.f32 %v7591_v2, %v3549_v52  ;;  %v3551_v60 = vmul.f32 %v7584_v34, %v3522_v4  ;;  %v3496_v23 = vpop.f32.mrb[8].mxu1  ;;  %v3724_v58 = vsel %vm3703_vm1, %v7614_v51, %v3723_v21  ;;  %v4497_v9 = vrot.slane %v7614_v51, 3 }
 0x309   :  { %v3593_v50 = vpack.c.bf16 %v3577_v30, %v3577_v30  ;;  %v3579_v19 = vadd.f32 %v7587_v45, %v3550_v24  ;;  %v5968_v54 = vadd.f32 %v3496_v23, %v7567_v48  ;;  %v3498_v39 = vpop.f32.mrb[9].mxu1  ;;  %v4482_v32 = vrot.slane %v7604_v25, 4 }
 0x30a   :  { %v3594_v13 = vpack.c.bf16 %v3578_v41, %v3578_v41  ;;  %v3580_v63 = vadd.f32 %v7591_v2, %v3551_v60  ;;  %v5969_v62 = vadd.f32 %v3498_v39, %v7573_v44  ;;  %v3500_v57 = vpop.f32.mrb[10].mxu1  ;;  %v4498_v16 = vsel %vm3703_vm1, %v4497_v9, %v4496_v18 }
 0x30b   :  { %v7634_v59 = vunpack.c.l.b16 %v3593_v50  ;;  %v3595_v28 = vpack.c.bf16 %v3579_v19, %v3579_v19  ;;  %v3523_v37 = vmax.f32 %v5968_v54, 0.0  ;;  %v5970_v31 = vadd.f32 %v3500_v57, %v7567_v48  ;;  %v3502_v49 = vpop.f32.mrb[11].mxu1 }
 0x30c   :  { %v7637_v56 = vunpack.c.l.b16 %v3594_v13  ;;  %v3596_v29 = vpack.c.bf16 %v3580_v63, %v3580_v63  ;;  %v3524_v26 = vmax.f32 %v5969_v62, 0.0  ;;  %v5971_v1 = vadd.f32 %v3502_v49, %v7573_v44 }
 0x30d   :  { %v7640_v17 = vunpack.c.l.b16 %v3595_v28  ;;  %v3552_v61 = vmul.f32 %v7580_v6, %v3523_v37  ;;  %v3525_v8 = vmax.f32 %v5970_v31, 0.0  ;;  %v3705_v22 = vrot.slane %v7634_v59, 7 }
 0x30e   :  { %v7644_v0 = vunpack.c.l.b16 %v3596_v29  ;;  %v3553_v20 = vmul.f32 %v7584_v34, %v3524_v26  ;;  %v3526_v53 = vmax.f32 %v5971_v1, 0.0  ;;  %v3725_v5 = vrot.slane %v7637_v56, 7 }
 0x30f   :  { %v3581_v10 = vadd.f32 %v7587_v45, %v3552_v61  ;;  %v3554_v40 = vmul.f32 %v7580_v6, %v3525_v8  ;;  %v4499_v3 = vrot.slane %v7637_v56, 2  ;;  %v3707_v14 = vsel %vm3706_vm2, %v3705_v22, %v3704_v42 }
 0x310   :  { %v3582_v38 = vadd.f32 %v7591_v2, %v3553_v20  ;;  %v3555_v36 = vmul.f32 %v7584_v34, %v3526_v53  ;;  %v3506_v33 = vpop.f32.mrb[12].mxu1  ;;  %v3726_v43 = vsel %vm3706_vm2, %v3725_v5, %v3724_v58  ;;  %v3727_v35 = vrot.slane %v7644_v0, 6 }
 0x311   :  { %v3597_v27 = vpack.c.bf16 %v3581_v10, %v3581_v10  ;;  %v3583_v47 = vadd.f32 %v7587_v45, %v3554_v40  ;;  %v5972_v55 = vadd.f32 %v3506_v33, %v7567_v48  ;;  %v3508_v11 = vpop.f32.mrb[13].mxu1  ;;  %v4500_v12 = vsel %vm3706_vm2, %v4499_v3, %v4498_v16 }
 0x312   :  { %v3598_v46 = vpack.c.bf16 %v3582_v38, %v3582_v38  ;;  %v3584_v52 = vadd.f32 %v7591_v2, %v3555_v36  ;;  %v5973_v4 = vadd.f32 %v3508_v11, %v7573_v44  ;;  %v3510_v21 = vpop.f32.mrb[14].mxu1  ;;  %v3728_v30 = vsel %vm3709_vm3, %v3727_v35, %v3726_v43 }
 0x313   :  { %v7662_v24 = vunpack.c.l.b16 %v3597_v27  ;;  %v3599_v18 = vpack.c.bf16 %v3583_v47, %v3583_v47  ;;  %v3527_v42 = vmax.f32 %v5972_v55, 0.0  ;;  %v5974_v41 = vadd.f32 %v3510_v21, %v7567_v48  ;;  %v3512_v60 = vpop.f32.mrb[15].mxu1 }
 0x314   :  { %v7665_v23 = vunpack.c.l.b16 %v3598_v46  ;;  %v3600_v58 = vpack.c.bf16 %v3584_v52, %v3584_v52  ;;  %v3528_v9 = vmax.f32 %v5973_v4, 0.0  ;;  %v5975_v50 = vadd.f32 %v3512_v60, %v7573_v44 }
 0x315   :  { %v7668_v19 = vunpack.c.l.b16 %v3599_v18  ;;  %v3556_v54 = vmul.f32 %v7580_v6, %v3527_v42  ;;  %v3529_v39 = vmax.f32 %v5974_v41, 0.0  ;;  %v4501_v13 = vrot.slane %v7644_v0, 1 }
 0x316   :  { %v7672_v63 = vunpack.c.l.b16 %v3600_v58  ;;  %v3557_v62 = vmul.f32 %v7584_v34, %v3528_v9  ;;  %v3530_v57 = vmax.f32 %v5975_v50, 0.0  ;;  %v3729_v48 = vrot.slane %v7665_v23, 5 }
 0x317   :  { %v3585_v16 = vadd.f32 %v7587_v45, %v3556_v54  ;;  %v3558_v44 = vmul.f32 %v7580_v6, %v3529_v39  ;;  %v4502_v28 = vsel %vm3709_vm3, %v4501_v13, %v4500_v12  ;;  %v3708_v37 = vrot.slane %v7640_v17, 6 }
 0x318   :  { %v3586_v31 = vadd.f32 %v7591_v2, %v3557_v62  ;;  %v3559_v49 = vmul.f32 %v7584_v34, %v3530_v57  ;;  %v3730_v29 = vsel %vm3712_vm4, %v3729_v48, %v3728_v30  ;;  %v3731_v26 = vrot.slane %v7672_v63, 4  ;;  %v6244_v57 = vld [vmem:[#allocation5] sm:$0xff]  }
 0x319   :  { %v3601_v1 = vpack.c.bf16 %v3585_v16, %v3585_v16  ;;  %v3587_v61 = vadd.f32 %v7587_v45, %v3558_v44  ;;  %v4503_v8 = vsel %vm3712_vm4, %v7665_v23, %v4502_v28  ;;  %v4504_v6 = vrot.slane %v7672_v63, 7 }
 0x31a   :  { %v3602_v22 = vpack.c.bf16 %v3586_v31, %v3586_v31  ;;  %v3588_v20 = vadd.f32 %v7591_v2, %v3559_v49  ;;  %v3732_v53 = vsel %vm3715_vm5, %v3731_v26, %v3730_v29  ;;  %v3710_v5 = vsel %vm3709_vm3, %v3708_v37, %v3707_v14  ;;  %v6246_v49 = vld [vmem:[#allocation5 + $0x48] sm:$0xff]  }
 0x31b   :  { %v7691_v34 = vunpack.c.l.b16 %v3601_v1  ;;  %v3603_v10 = vpack.c.bf16 %v3587_v61, %v3587_v61  ;;  %v4505_v40 = vsel %vm3715_vm5, %v4504_v6, %v4503_v8  ;;  %v3711_v3 = vrot.slane %v7662_v24, 5  ;;  %v6245_v6 = vld [vmem:[#allocation5 + $0x300] sm:$0xff]  }
 0x31c   :  { %v7695_v45 = vunpack.c.l.b16 %v3602_v22  ;;  %v3604_v38 = vpack.c.bf16 %v3588_v20, %v3588_v20  ;;  %v3714_v36 = vrot.slane %v7668_v19, 4  ;;  %v4483_v33 = vrot.slane %v7610_v7, 3 }
 0x31d   :  { %v7699_v43 = vunpack.c.l.b16 %v3603_v10  ;;  %v3713_v2 = vsel %vm3712_vm4, %v3711_v3, %v3710_v5  ;;  %v3717_v14 = vrot.slane %v7691_v34, 3  ;;  %v4485_v35 = vrot.slane %v7634_v59, 2 }
 0x31e   :  { %v7704_v27 = vunpack.c.l.b16 %v3604_v38  ;;  %v3733_v47 = vrot.slane %v7695_v45, 3  ;;  %v4506_v55 = vrot.slane %v7695_v45, 6  ;;  %v3716_v11 = vsel %vm3715_vm5, %v3714_v36, %v3713_v2  ;;  %v6247_v38 = vld [vmem:[#allocation5 + $0x348] sm:$0xff]  }
 0x31f   :  { %v3719_v12 = vsel %vm3718_vm6, %v3717_v14, %v3716_v11  ;;  %v3720_v46 = vrot.slane %v7699_v43, 2  ;;  %v4484_v52 = vsel %vm3703_vm1, %v4483_v33, %v4482_v32  ;;  %v4487_v4 = vrot.slane %v7640_v17, 1  ;;  %v6248_v36 = vld [vmem:[#allocation5 + $0x8] sm:$0xff]  }
 0x320   :  { %v3734_v21 = vsel %vm3718_vm6, %v3733_v47, %v3732_v53  ;;  %v3735_v30 = vrot.slane %v7704_v27, 2  ;;  %v4507_v18 = vsel %vm3718_vm6, %v4506_v55, %v4505_v40  ;;  %v4508_v42 = vrot.slane %v7704_v27, 5  ;;  %v6250_v47 = vld [vmem:[#allocation5 + $0x50] sm:$0xff]  }
 0x321   :  { %v3722_v41 = vsel %vm3721_vm7, %v3720_v46, %v3719_v12  ;;  %v4486_v60 = vsel %vm3706_vm2, %v4485_v35, %v4484_v52  ;;  %v4490_v58 = vrot.slane %v7668_v19, 7  ;;  %v4492_v9 = vrot.slane %v7691_v34, 6 }
 0x322   :  { %v3736_v32 = vsel %vm3721_vm7, %v3735_v30, %v3734_v21  ;;  %v4509_v50 = vsel %vm3721_vm7, %v4508_v42, %v4507_v18  ;;  %v3737_v54 = vpack.c.b16 %v3722_v41, %v3722_v41  ;;  %v4488_v39 = vsel %vm3709_vm3, %v4487_v4, %v4486_v60  ;;  %v6249_v21 = vld [vmem:[#allocation5 + $0x308] sm:$0xff]   ;;  %v6251_v60 = vld [vmem:[#allocation5 + $0x350] sm:$0xff]  }
 0x323   :  { %v3738_v13 = vpack.c.b16 %v3736_v32, %v3736_v32  ;;  %v4511_v62 = vpack.c.b16 %v4509_v50, %v4509_v50  ;;  %v4489_v48 = vsel %vm3712_vm4, %v7662_v24, %v4488_v39  ;;  %v4494_v16 = vrot.slane %v7699_v43, 5 }
 0x324   :  { %v4491_v44 = vsel %vm3715_vm5, %v4490_v58, %v4489_v48  ;;  %v3891_v28 = vrot.slane %v7614_v51, 7  ;;  %v3893_v37 = vrot.slane %v7637_v56, 6  ;;  %v3895_v31 = vrot.slane %v7644_v0, 5  ;;  %v6254_v48 = vld [vmem:[#allocation5 + $0x58] sm:$0xff]  }
 0x325   :  { %3869 = vmatprep.mubr.bf16.mxu0 %v3738_v13  ;;  %4642 = vmatprep.mubr.bf16.mxu1 %v4511_v62  ;;  %v4493_v29 = vsel %vm3718_vm6, %v4492_v9, %v4491_v44  ;;  %v3897_v26 = vrot.slane %v7665_v23, 4  ;;  %v3899_v1 = vrot.slane %v7672_v63, 3  ;;  %v3901_v61 = vrot.slane %v7695_v45, 2 }
 0x326   :  { %3870 = vmatmul.mubr.bf16.vlgmr.msra.gmra.mrb[20].mxu0 %v3737_v54  ;;  %v4495_v8 = vsel %vm3721_vm7, %v4494_v16, %v4493_v29  ;;  %v3892_v22 = vsel %vm3703_vm1, %v3891_v28, %v7607_v15  ;;  %v3903_v20 = vrot.slane %v7704_v27, 1  ;;  %v4900_v53 = vrot.slane %v7607_v15, 6  ;;  %v6252_v54 = vld [vmem:[#allocation5 + $0x10] sm:$0xff]  }
 0x327   :  { %5778 = vmatpush3.bf16.msra.mxu0 %v6244_v57  ;;  %v4510_v5 = vpack.c.b16 %v4495_v8, %v4495_v8  ;;  %v3894_v10 = vsel %vm3706_vm2, %v3893_v37, %v3892_v22  ;;  %v4901_v40 = vrot.slane %v7614_v51, 5  ;;  %v4903_v3 = vrot.slane %v7637_v56, 4  ;;  %v6253_v37 = vld [vmem:[#allocation5 + $0x310] sm:$0xff]  }
 0x328   :  { %v3896_v33 = vsel %vm3709_vm3, %v3895_v31, %v3894_v10  ;;  %v4905_v2 = vrot.slane %v7644_v0, 3  ;;  %v4907_v14 = vrot.slane %v7665_v23, 2  ;;  %v4909_v35 = vrot.slane %v7672_v63, 1  ;;  %5779 = vmatprep.subr.bf16.mxu0 %v6246_v49 }
 0x329   :  { %4643 = vmatmul.mubr.bf16.vlgmr.msra.gmra.mrb[16].mxu1 %v4510_v5  ;;  %v3898_v55 = vsel %vm3712_vm4, %v3897_v26, %v3896_v33  ;;  %v4902_v11 = vsel %vm3703_vm1, %v4901_v40, %v4900_v53  ;;  %v4912_v12 = vrot.slane %v7704_v27, 7  ;;  %v3877_v46 = vrot.slane %v7610_v7, 7  ;;  %v6258_v40 = vld [vmem:[#allocation5 + $0x60] sm:$0xff]   ;;  %v6257_v33 = vld [vmem:[#allocation5 + $0x318] sm:$0xff]  }
 0x32a   :  { %5888 = vmatpush3.bf16.msra.mxu1 %v6245_v6  ;;  %v3900_v52 = vsel %vm3715_vm5, %v3899_v1, %v3898_v55  ;;  %v4904_v4 = vsel %vm3706_vm2, %v4903_v3, %v4902_v11  ;;  %v3879_v30 = vrot.slane %v7634_v59, 6  ;;  %v3881_v18 = vrot.slane %v7640_v17, 5  ;;  %v6255_v1 = vld [vmem:[#allocation5 + $0x358] sm:$0xff]   ;;  %v6259_v55 = vld [vmem:[#allocation5 + $0x360] sm:$0xff]  }
 0x32b   :  { %v3902_v42 = vsel %vm3718_vm6, %v3901_v61, %v3900_v52  ;;  %v4906_v41 = vsel %vm3709_vm3, %v4905_v2, %v4904_v4  ;;  %5889 = vmatprep.subr.bf16.mxu1 %v6247_v38  ;;  %5780 = vmatpush3.bf16.msra.mxu0 %v6248_v36  ;;  %v3878_v58 = vsel %vm3703_vm1, %v3877_v46, %v7604_v25  ;;  %v3883_v9 = vrot.slane %v7662_v24, 4  ;;  %v6260_v4 = vld [vmem:[#allocation5 + $0x20] sm:$0xff]  }
 0x32c   :  { %v3904_v32 = vsel %vm3721_vm7, %v3903_v20, %v3902_v42  ;;  %v4908_v50 = vsel %vm3712_vm4, %v4907_v14, %v4906_v41  ;;  %5781 = vmatprep.subr.bf16.mxu0 %v6250_v47  ;;  %v3880_v39 = vsel %vm3706_vm2, %v3879_v30, %v3878_v58  ;;  %v3885_v13 = vrot.slane %v7668_v19, 3  ;;  %v6256_v20 = vld [vmem:[#allocation5 + $0x18] sm:$0xff]   ;;  %v6262_v41 = vld [vmem:[#allocation5 + $0x68] sm:$0xff]  }
 0x32d   :  { %v3906_v62 = vpack.c.b16 %v3904_v32, %v3904_v32  ;;  %v4910_v57 = vsel %vm3715_vm5, %v4909_v35, %v4908_v50  ;;  %v3882_v16 = vsel %vm3709_vm3, %v3881_v18, %v3880_v39  ;;  %v3887_v44 = vrot.slane %v7691_v34, 2  ;;  %v6261_v50 = vld [vmem:[#allocation5 + $0x320] sm:$0xff]  }
 0x32e   :  { %v4911_v28 = vsel %vm3718_vm6, %v7695_v45, %v4910_v57  ;;  %5890 = vmatpush3.bf16.msra.mxu1 %v6249_v21  ;;  %v3884_v31 = vsel %vm3712_vm4, %v3883_v9, %v3882_v16  ;;  %v3889_v49 = vrot.slane %v7699_v43, 1  ;;  %v4886_v29 = vrot.slane %v7604_v25, 6  ;;  %v6263_v57 = vld [vmem:[#allocation5 + $0x368] sm:$0xff]  }
 0x32f   :  { %4037 = vmatprep.mubr.bf16.mxu0 %v3906_v62  ;;  %v4913_v26 = vsel %vm3721_vm7, %v4912_v12, %v4911_v28  ;;  %5891 = vmatprep.subr.bf16.mxu1 %v6251_v60  ;;  %v3886_v61 = vsel %vm3715_vm5, %v3885_v13, %v3884_v31  ;;  %v4887_v8 = vrot.slane %v7610_v7, 5  ;;  %v4889_v6 = vrot.slane %v7634_v59, 4 }
 0x330   :  { %v4915_v22 = vpack.c.b16 %v4913_v26, %v4913_v26  ;;  %5782 = vmatpush3.bf16.msra.mxu0 %v6252_v54  ;;  %v3888_v53 = vsel %vm3718_vm6, %v3887_v44, %v3886_v61  ;;  %v4891_v5 = vrot.slane %v7640_v17, 3  ;;  %v4893_v10 = vrot.slane %v7662_v24, 2  ;;  %v6266_v26 = vld [vmem:[#allocation5 + $0x70] sm:$0xff]  }
 0x331   :  { %5783 = vmatprep.subr.bf16.mxu0 %v6254_v48  ;;  %v7782_v3 = vsel %vm3721_vm7, %v3889_v49, %v3888_v53  ;;  %v4888_v38 = vsel %vm3703_vm1, %v4887_v8, %v4886_v29  ;;  %v4895_v36 = vrot.slane %v7668_v19, 1  ;;  %v4898_v14 = vrot.slane %v7699_v43, 7 }
 0x332   :  { %5046 = vmatprep.mubr.bf16.mxu1 %v4915_v22  ;;  %5892 = vmatpush3.bf16.msra.mxu1 %v6253_v37  ;;  %v4890_v2 = vsel %vm3706_vm2, %v4889_v6, %v4888_v38  ;;  %v4092_v35 = vrot.slane %v7607_v15, 2  ;;  %v4093_v47 = vrot.slane %v7614_v51, 1  ;;  %v4096_v12 = vrot.slane %v7644_v0, 7  ;;  %v6264_v37 = vld [vmem:[#allocation5 + $0x28] sm:$0xff]  }
 0x333   :  { %5893 = vmatprep.subr.bf16.mxu1 %v6255_v1  ;;  %v4892_v11 = vsel %vm3709_vm3, %v4891_v5, %v4890_v2  ;;  %v4098_v46 = vrot.slane %v7665_v23, 6  ;;  %v4100_v52 = vrot.slane %v7672_v63, 5  ;;  %v4102_v18 = vrot.slane %v7695_v45, 4  ;;  %v6265_v22 = vld [vmem:[#allocation5 + $0x328] sm:$0xff]   ;;  %v6268_v2 = vld [vmem:[#allocation5 + $0x30] sm:$0xff]  }
 0x334   :  { %5784 = vmatpush3.bf16.msra.mxu0 %v6256_v20  ;;  %v4894_v21 = vsel %vm3712_vm4, %v4893_v10, %v4892_v11  ;;  %v4094_v30 = vsel %vm3703_vm1, %v4093_v47, %v4092_v35  ;;  %v4104_v42 = vrot.slane %v7704_v27, 3  ;;  %v4078_v9 = vrot.slane %v7604_v25, 2  ;;  %v6270_v11 = vld [vmem:[#allocation5 + $0x78] sm:$0xff]  }
 0x335   :  { %5785 = vmatprep.subr.bf16.mxu0 %v6258_v40  ;;  %v4896_v60 = vsel %vm3715_vm5, %v4895_v36, %v4894_v21  ;;  %v4095_v58 = vsel %vm3706_vm2, %v7637_v56, %v4094_v30  ;;  %v4079_v32 = vrot.slane %v7610_v7, 1  ;;  %v4082_v13 = vrot.slane %v7640_v17, 7  ;;  %v6267_v40 = vld [vmem:[#allocation5 + $0x370] sm:$0xff]  }
 0x336   :  { %5894 = vmatpush3.bf16.msra.mxu1 %v6257_v33  ;;  %v4897_v54 = vsel %vm3718_vm6, %v7691_v34, %v4896_v60  ;;  %v4097_v39 = vsel %vm3709_vm3, %v4096_v12, %v4095_v58  ;;  %v4084_v62 = vrot.slane %v7662_v24, 6  ;;  %v4086_v28 = vrot.slane %v7668_v19, 5  ;;  %v6269_v21 = vld [vmem:[#allocation5 + $0x330] sm:$0xff]   ;;  %v6271_v60 = vld [vmem:[#allocation5 + $0x378] sm:$0xff]  }
 0x337   :  { %5895 = vmatprep.subr.bf16.mxu1 %v6259_v55  ;;  %v7809_v48 = vsel %vm3721_vm7, %v4898_v14, %v4897_v54  ;;  %v4099_v16 = vsel %vm3712_vm4, %v4098_v46, %v4097_v39  ;;  %v4080_v44 = vsel %vm3703_vm1, %v4079_v32, %v4078_v9  ;;  %v4088_v29 = vrot.slane %v7691_v34, 4  ;;  %v6272_v54 = vld [vmem:[#allocation5 + $0x38] sm:$0xff]  }
 0x338   :  { %5786 = vmatpush3.bf16.msra.mxu0 %v6260_v4  ;;  %v4101_v31 = vsel %vm3715_vm5, %v4100_v52, %v4099_v16  ;;  %v4081_v49 = vsel %vm3706_vm2, %v7634_v59, %v4080_v44  ;;  %v4090_v8 = vrot.slane %v7699_v43, 3  ;;  %v4294_v6 = vrot.slane %v7607_v15, 3  ;;  %v6274_v16 = vld [vmem:[#allocation5 + $0x140] sm:$0xff]  }
 0x339   :  { %5787 = vmatprep.subr.bf16.mxu0 %v6262_v41  ;;  %v4103_v1 = vsel %vm3718_vm6, %v4102_v18, %v4101_v31  ;;  %v4083_v61 = vsel %vm3709_vm3, %v4082_v13, %v4081_v49  ;;  %v4295_v5 = vrot.slane %v7614_v51, 2  ;;  %v4297_v10 = vrot.slane %v7637_v56, 1  ;;  %v6273_v49 = vld [vmem:[#allocation5 + $0x338] sm:$0xff]  }
 0x33a   :  { %5896 = vmatpush3.bf16.msra.mxu1 %v6261_v50  ;;  %v7823_v20 = vsel %vm3721_vm7, %v4104_v42, %v4103_v1  ;;  %v4085_v53 = vsel %vm3712_vm4, %v4084_v62, %v4083_v61  ;;  %v3905_v38 = vpack.c.b16 %v7782_v3, %v7782_v3  ;;  %v4300_v33 = vrot.slane %v7665_v23, 7 }
 0x33b   :  { %5897 = vmatprep.subr.bf16.mxu1 %v6263_v57  ;;  %v4087_v36 = vsel %vm3715_vm5, %v4086_v28, %v4085_v53  ;;  %v4296_v35 = vsel %vm3703_vm1, %v4295_v5, %v4294_v6  ;;  %v4302_v47 = vrot.slane %v7672_v63, 6  ;;  %v4304_v55 = vrot.slane %v7695_v45, 5  ;;  %v6275_v5 = vld [vmem:[#allocation5 + $0x100] sm:$0xff]  }
 0x33c   :  { %5788 = vmatpush3.bf16.msra.mxu0 %v6264_v37  ;;  %v4089_v14 = vsel %vm3718_vm6, %v4088_v29, %v4087_v36  ;;  %v4298_v46 = vsel %vm3706_vm2, %v4297_v10, %v4296_v35  ;;  %v4280_v52 = vrot.slane %v7604_v25, 3  ;;  %v4281_v4 = vrot.slane %v7610_v7, 2 }
 0x33d   :  { %5789 = vmatprep.subr.bf16.mxu0 %v6266_v26  ;;  %v7837_v12 = vsel %vm3721_vm7, %v4090_v8, %v4089_v14  ;;  %v4299_v30 = vsel %vm3709_vm3, %v7644_v0, %v4298_v46  ;;  %v4306_v18 = vrot.slane %v7704_v27, 4  ;;  %v4283_v42 = vrot.slane %v7634_v59, 1 }
 0x33e   :  { %5898 = vmatpush3.bf16.msra.mxu1 %v6265_v22  ;;  %v4286_v41 = vrot.slane %v7662_v24, 7  ;;  %v4301_v58 = vsel %vm3712_vm4, %v4300_v33, %v4299_v30  ;;  %v4282_v9 = vsel %vm3703_vm1, %v4281_v4, %v4280_v52  ;;  %v4288_v32 = vrot.slane %v7668_v19, 6 }
 0x33f   :  { %5899 = vmatprep.subr.bf16.mxu1 %v6267_v40  ;;  %v4290_v50 = vrot.slane %v7691_v34, 5  ;;  %v4303_v39 = vsel %vm3715_vm5, %v4302_v47, %v4301_v58  ;;  %v4284_v13 = vsel %vm3706_vm2, %v4283_v42, %v4282_v9  ;;  %v4292_v62 = vrot.slane %v7699_v43, 4 }
 0x340   :  { %5790 = vmatpush3.bf16.msra.mxu0 %v6268_v2  ;;  %v4698_v57 = vrot.slane %v7607_v15, 5  ;;  %v4305_v44 = vsel %vm3718_vm6, %v4304_v55, %v4303_v39  ;;  %v4285_v28 = vsel %vm3709_vm3, %v7640_v17, %v4284_v13  ;;  %v4699_v37 = vrot.slane %v7614_v51, 4  ;;  %v6276_v2 = vld [vmem:[#allocation5 + $0x148] sm:$0xff]  }
 0x341   :  { %5791 = vmatprep.subr.bf16.mxu0 %v6270_v11  ;;  %v4701_v31 = vrot.slane %v7637_v56, 3  ;;  %v7861_v29 = vsel %vm3721_vm7, %v4306_v18, %v4305_v44  ;;  %v4287_v26 = vsel %vm3712_vm4, %v4286_v41, %v4285_v28  ;;  %v4703_v1 = vrot.slane %v7644_v0, 2 }
 0x342   :  { %5900 = vmatpush3.bf16.msra.mxu1 %v6269_v21  ;;  %v4705_v61 = vrot.slane %v7665_v23, 1  ;;  %v4914_v8 = vpack.c.b16 %v7809_v48, %v7809_v48  ;;  %v4289_v6 = vsel %vm3715_vm5, %v4288_v32, %v4287_v26  ;;  %v4700_v22 = vsel %vm3703_vm1, %v4699_v37, %v4698_v57 }
 0x343   :  { %5901 = vmatprep.subr.bf16.mxu1 %v6271_v60  ;;  %v4708_v53 = vrot.slane %v7695_v45, 7  ;;  %v4291_v10 = vsel %vm3718_vm6, %v4290_v50, %v4289_v6  ;;  %v4702_v40 = vsel %vm3706_vm2, %v4701_v31, %v4700_v22  ;;  %v4710_v36 = vrot.slane %v7704_v27, 6  ;;  %v6281_v6 = vld [vmem:[#allocation5 + $0x118] sm:$0xff]   ;;  %v6282_v22 = vld [vmem:[#allocation5 + $0x160] sm:$0xff]  }
 0x344   :  { %5792 = vmatpush3.bf16.msra.mxu0 %v6272_v54  ;;  %v4684_v33 = vrot.slane %v7604_v25, 5  ;;  %v7876_v48 = vsel %vm3721_vm7, %v4292_v62, %v4291_v10  ;;  %v4704_v14 = vsel %vm3709_vm3, %v4703_v1, %v4702_v40  ;;  %v4685_v35 = vrot.slane %v7610_v7, 4  ;;  %v6284_v10 = vld [vmem:[#allocation5 + $0x168] sm:$0xff]   ;;  %v6286_v40 = vld [vmem:[#allocation5 + $0x170] sm:$0xff]  }
 0x345   :  { %5799 = vmatprep.subr.bf16.mxu0 %v6274_v16  ;;  %v4687_v47 = vrot.slane %v7634_v59, 3  ;;  %v4107_v55 = vpack.c.b16 %v7823_v20, %v7823_v20  ;;  %v4706_v11 = vsel %vm3712_vm4, %v4705_v61, %v4704_v14  ;;  %v4689_v46 = vrot.slane %v7640_v17, 2  ;;  %v6277_v20 = vld [vmem:[#allocation5 + $0x108] sm:$0xff]   ;;  %v6279_v16 = vld [vmem:[#allocation5 + $0x110] sm:$0xff]   ;;  %v6290_v14 = vld [vmem:[#allocation5 + $0x1c0] sm:$0xff]  }
 0x346   :  { %5902 = vmatpush3.bf16.msra.mxu1 %v6273_v49  ;;  %v4691_v52 = vrot.slane %v7662_v24, 1  ;;  %v4707_v4 = vsel %vm3715_vm5, %v7672_v63, %v4706_v11  ;;  %v4686_v21 = vsel %vm3703_vm1, %v4685_v35, %v4684_v33  ;;  %v4694_v30 = vrot.slane %v7691_v34, 7  ;;  %v6288_v33 = vld [vmem:[#allocation5 + $0x178] sm:$0xff]   ;;  %v6291_v35 = vld [vmem:[#allocation5 + $0x180] sm:$0xff]   ;;  %v6293_v11 = vld [vmem:[#allocation5 + $0x188] sm:$0xff]  }
 0x347   :  { %4038 = vmatmul.mubr.bf16.vlgmr.msra.gmra.mrb[24].mxu0 %v3905_v38  ;;  %v4696_v18 = vrot.slane %v7699_v43, 6  ;;  %v4709_v42 = vsel %vm3718_vm6, %v4708_v53, %v4707_v4  ;;  %v4688_v41 = vsel %vm3706_vm2, %v4687_v47, %v4686_v21  ;;  %v5102_v60 = vrot.slane %v7607_v15, 7  ;;  %v6278_v38 = vld [vmem:[#allocation5 + $0x150] sm:$0xff]   ;;  %v6292_v47 = vld [vmem:[#allocation5 + $0x1c8] sm:$0xff]   ;;  %v6296_v4 = vld [vmem:[#allocation5 + $0x1d8] sm:$0xff]  }
 0x348   :  { %5800 = vmatpush3.bf16.msra.mxu0 %v6275_v5  ;;  %4238 = vmatprep.mubr.bf16.mxu0 %v4107_v55  ;;  %v5103_v3 = vrot.slane %v7614_v51, 6  ;;  %v7899_v58 = vsel %vm3721_vm7, %v4710_v36, %v4709_v42  ;;  %v4690_v9 = vsel %vm3709_vm3, %v4689_v46, %v4688_v41  ;;  %v5105_v32 = vrot.slane %v7637_v56, 5  ;;  %v6287_v36 = vld [vmem:[#allocation5 + $0x130] sm:$0xff]   ;;  %v6297_v21 = vld [vmem:[#allocation5 + $0x198] sm:$0xff]  }
 0x349   :  { %5047 = vmatmul.mubr.bf16.vlgmr.msra.gmra.mrb[20].mxu1 %v4914_v8  ;;  %5801 = vmatprep.subr.bf16.mxu0 %v6276_v2  ;;  %v5107_v50 = vrot.slane %v7644_v0, 4  ;;  %v4692_v54 = vsel %vm3712_vm4, %v4691_v52, %v4690_v9  ;;  %v5109_v15 = vrot.slane %v7665_v23, 3  ;;  %v5111_v62 = vrot.slane %v7672_v63, 2  ;;  %v6280_v23 = vld [vmem:[#allocation5 + $0x158] sm:$0xff]   ;;  %v6294_v46 = vld [vmem:[#allocation5 + $0x1d0] sm:$0xff]  }
 0x34a   :  { %v5104_v39 = vsel %vm3703_vm1, %v5103_v3, %v5102_v60  ;;  %v4693_v51 = vsel %vm3715_vm5, %v7668_v19, %v4692_v54  ;;  %v5113_v57 = vrot.slane %v7695_v45, 1  ;;  %v5088_v44 = vrot.slane %v7604_v25, 7  ;;  %v6289_v2 = vld [vmem:[#allocation5 + $0x138] sm:$0xff]   ;;  %v6295_v52 = vld [vmem:[#allocation5 + $0x190] sm:$0xff]   ;;  %v6306_v3 = vld [vmem:[#allocation5 + $0x2c0] sm:$0xff]  }
 0x34b   :  { %v5106_v13 = vsel %vm3706_vm2, %v5105_v32, %v5104_v39  ;;  %v4695_v56 = vsel %vm3718_vm6, %v4694_v30, %v4693_v51  ;;  %v5089_v28 = vrot.slane %v7610_v7, 6  ;;  %v5091_v63 = vrot.slane %v7634_v59, 5  ;;  %v6298_v30 = vld [vmem:[#allocation5 + $0x1e0] sm:$0xff]   ;;  %v6303_v42 = vld [vmem:[#allocation5 + $0x1b0] sm:$0xff]   ;;  %v6304_v41 = vld [vmem:[#allocation5 + $0x1f8] sm:$0xff]  }
 0x34c   :  { %5802 = vmatpush3.bf16.msra.mxu0 %v6277_v20  ;;  %v5108_v0 = vsel %vm3709_vm3, %v5107_v50, %v5106_v13  ;;  %v7917_v37 = vsel %vm3721_vm7, %v4696_v18, %v4695_v56  ;;  %v5093_v45 = vrot.slane %v7640_v17, 4  ;;  %v5095_v1 = vrot.slane %v7662_v24, 3  ;;  %v6300_v18 = vld [vmem:[#allocation5 + $0x1e8] sm:$0xff]   ;;  %v6302_v20 = vld [vmem:[#allocation5 + $0x1f0] sm:$0xff]   ;;  %v6305_v60 = vld [vmem:[#allocation5 + $0x1b8] sm:$0xff]  }
 0x34d   :  { %5803 = vmatprep.subr.bf16.mxu0 %v6278_v38  ;;  %v5110_v31 = vsel %vm3712_vm4, %v5109_v15, %v5108_v0  ;;  %v5090_v26 = vsel %vm3703_vm1, %v5089_v28, %v5088_v44  ;;  %v5097_v61 = vrot.slane %v7668_v19, 2  ;;  %v5099_v8 = vrot.slane %v7691_v34, 1  ;;  %v6283_v19 = vld [vmem:[#allocation5 + $0x120] sm:$0xff]   ;;  %v6308_v32 = vld [vmem:[#allocation5 + $0x2c8] sm:$0xff]   ;;  %v6310_v39 = vld [vmem:[#allocation5 + $0x2d0] sm:$0xff]  }
 0x34e   :  { %v5112_v49 = vsel %vm3715_vm5, %v5111_v62, %v5110_v31  ;;  %v5092_v7 = vsel %vm3706_vm2, %v5091_v63, %v5090_v26  ;;  %v4309_v55 = vpack.c.b16 %v7861_v29, %v7861_v29  ;;  %v6301_v29 = vld [vmem:[#allocation5 + $0x1a8] sm:$0xff]   ;;  %v6307_v38 = vld [vmem:[#allocation5 + $0x280] sm:$0xff]   ;;  %v4308_v9 = vpack.c.b16 %v7876_v48, %v7876_v48  ;;  %v6311_v15 = vld [vmem:[#allocation5 + $0x290] sm:$0xff]  }
 0x34f   :  { %v5114_v25 = vsel %vm3718_vm6, %v5113_v57, %v5112_v49  ;;  %v5094_v17 = vsel %vm3709_vm3, %v5093_v45, %v5092_v7  ;;  %v4713_v50 = vpack.c.b16 %v7899_v58, %v7899_v58  ;;  %v6309_v54 = vld [vmem:[#allocation5 + $0x288] sm:$0xff]   ;;  %v6312_v51 = vld [vmem:[#allocation5 + $0x2d8] sm:$0xff]   ;;  %v6314_v62 = vld [vmem:[#allocation5 + $0x2e0] sm:$0xff]   ;;  %v4712_v31 = vpack.c.b16 %v7917_v37, %v7917_v37 }
 0x350   :  { %5804 = vmatpush3.bf16.msra.mxu0 %v6279_v16  ;;  %v7931_v59 = vsel %vm3721_vm7, %v7704_v27, %v5114_v25  ;;  %v5096_v24 = vsel %vm3712_vm4, %v5095_v1, %v5094_v17  ;;  %v6285_v27 = vld [vmem:[#allocation5 + $0x128] sm:$0xff]   ;;  %v6313_v13 = vld [vmem:[#allocation5 + $0x298] sm:$0xff]   ;;  %v6315_v48 = vld [vmem:[#allocation5 + $0x2a0] sm:$0xff]  }
 0x351   :  { %5805 = vmatprep.subr.bf16.mxu0 %v6280_v23  ;;  %v5098_v53 = vsel %vm3715_vm5, %v5097_v61, %v5096_v24  ;;  %v6316_v57 = vld [vmem:[#allocation5 + $0x2e8] sm:$0xff]   ;;  %v6318_v16 = vld [vmem:[#allocation5 + $0x2f0] sm:$0xff]   ;;  %v6320_v0 = vld [vmem:[#allocation5 + $0x2f8] sm:$0xff]   ;;  %v5117_v45 = vpack.c.b16 %v7931_v59, %v7931_v59 }
 0x352   :  { %v5100_v5 = vsel %vm3718_vm6, %v5099_v8, %v5098_v53  ;;  %v6317_v58 = vld [vmem:[#allocation5 + $0x2a8] sm:$0xff]   ;;  %v6319_v56 = vld [vmem:[#allocation5 + $0x2b0] sm:$0xff]   ;;  %v6321_v44 = vld [vmem:[#allocation5 + $0x2b8] sm:$0xff]  }
 0x353   :  { %v7939_v34 = vsel %vm3721_vm7, %v7699_v43, %v5100_v5  ;;  %v4106_v43 = vpack.c.b16 %v7837_v12, %v7837_v12  ;;  %v6299_v12 = vld [vmem:[#allocation5 + $0x1a0] sm:$0xff]   ;;  %v6324_v63 = vld [vmem:[#allocation5 + $0x3c8] sm:$0xff]   ;;  %v6326_v26 = vld [vmem:[#allocation5 + $0x3d0] sm:$0xff]  }
 0x354   :  { %5806 = vmatpush3.bf16.msra.mxu0 %v6281_v6  ;;  %v6322_v28 = vld [vmem:[#allocation5 + $0x3c0] sm:$0xff]   ;;  %v6325_v49 = vld [vmem:[#allocation5 + $0x388] sm:$0xff]   ;;  %v6327_v1 = vld [vmem:[#allocation5 + $0x390] sm:$0xff]   ;;  %v5116_v53 = vpack.c.b16 %v7939_v34, %v7939_v34 }
 0x355   :  { %5807 = vmatprep.subr.bf16.mxu0 %v6282_v22  ;;  %v6323_v23 = vld [vmem:[#allocation5 + $0x380] sm:$0xff]   ;;  %v6328_v25 = vld [vmem:[#allocation5 + $0x3d8] sm:$0xff]   ;;  %v6332_v8 = vld [vmem:[#allocation5 + $0x3e8] sm:$0xff]  }
 0x356   :  { %v6329_v7 = vld [vmem:[#allocation5 + $0x398] sm:$0xff]   ;;  %v6330_v61 = vld [vmem:[#allocation5 + $0x3e0] sm:$0xff]   ;;  %v6333_v6 = vld [vmem:[#allocation5 + $0x3a8] sm:$0xff]  }
 0x357   :  { %v6331_v37 = vld [vmem:[#allocation5 + $0x3a0] sm:$0xff]   ;;  %v6334_v59 = vld [vmem:[#allocation5 + $0x3f0] sm:$0xff]   ;;  %v6336_v22 = vld [vmem:[#allocation5 + $0x3f8] sm:$0xff]  }
 0x358   :  { %5808 = vmatpush3.bf16.msra.mxu0 %v6283_v19  ;;  %v6335_v17 = vld [vmem:[#allocation5 + $0x3b0] sm:$0xff]   ;;  %v6337_v24 = vld [vmem:[#allocation5 + $0x3b8] sm:$0xff]   ;;  %v6339_v34 = vld [vmem:[%s8004_s7 + $0x8] sm:$0xff]  }
 0x359   :  { %5809 = vmatprep.subr.bf16.mxu0 %v6284_v10 }
 0x35c   :  { %5810 = vmatpush3.bf16.msra.mxu0 %v6285_v27 }
 0x35d   :  { %5811 = vmatprep.subr.bf16.mxu0 %v6286_v40 }
 0x360   :  { %5812 = vmatpush3.bf16.msra.mxu0 %v6287_v36 }
 0x361   :  { %5813 = vmatprep.subr.bf16.mxu0 %v6288_v33 }
 0x364   :  { %5814 = vmatpush3.bf16.msra.mxu0 %v6289_v2 }
 0x365   :  { %5821 = vmatprep.subr.bf16.mxu0 %v6290_v14 }
 0x367   :  { %4239 = vmatmul.mubr.bf16.vlgmr.msra.gmra.mrb[28].mxu0 %v4106_v43 }
 0x368   :  { %5822 = vmatpush3.bf16.msra.mxu0 %v6291_v35  ;;  %4440 = vmatprep.mubr.bf16.mxu0 %v4309_v55  ;;  %v6338_v35 = vld [vmem:[%s8004_s7] sm:$0xff]   ;;  %v6340_v55 = vld [vmem:[%s8004_s7 + $0x10] sm:$0xff]  }
 0x369   :  { %5823 = vmatprep.subr.bf16.mxu0 %v6292_v47  ;;  %v6427_v47 = vmov 0.0  }
 0x36a   :  { %5940 = vmatprep.subr.bf16.mxu1 %v6427_v47  ;;  %5956 = vmatprep.mubr.msk.bf16.mxu1 %vm6428_vm8, %v6427_v47 }
 0x36b   :  { %5941 = vmatpush3.bf16.msra.mxu1 %v6338_v35 }
 0x36c   :  { %5824 = vmatpush3.bf16.msra.mxu0 %v6293_v11  ;;  %5942 = vmatprep.subr.bf16.mxu1 %v6427_v47  ;;  %v6341_v11 = vld [vmem:[%s8004_s7 + $0x18] sm:$0xff]  }
 0x36d   :  { %5825 = vmatprep.subr.bf16.mxu0 %v6294_v46  ;;  %v6342_v46 = vld [vmem:[%s8004_s7 + $0x20] sm:$0xff]  }
 0x36f   :  { %5943 = vmatpush3.bf16.msra.mxu1 %v6339_v34 }
 0x370   :  { %5826 = vmatpush3.bf16.msra.mxu0 %v6295_v52  ;;  %5944 = vmatprep.subr.bf16.mxu1 %v6427_v47 }
 0x371   :  { %5827 = vmatprep.subr.bf16.mxu0 %v6296_v4 }
 0x373   :  { %5945 = vmatpush3.bf16.msra.mxu1 %v6340_v55 }
 0x374   :  { %5828 = vmatpush3.bf16.msra.mxu0 %v6297_v21  ;;  %5946 = vmatprep.subr.bf16.mxu1 %v6427_v47 }
 0x375   :  { %5829 = vmatprep.subr.bf16.mxu0 %v6298_v30 }
 0x377   :  { %5947 = vmatpush3.bf16.msra.mxu1 %v6341_v11 }
 0x378   :  { %5830 = vmatpush3.bf16.msra.mxu0 %v6299_v12  ;;  %5948 = vmatprep.subr.bf16.mxu1 %v6427_v47 }
 0x379   :  { %5831 = vmatprep.subr.bf16.mxu0 %v6300_v18 }
 0x37b   :  { %5949 = vmatpush3.bf16.msra.mxu1 %v6342_v46 }
 0x37c   :  { %5832 = vmatpush3.bf16.msra.mxu0 %v6301_v29  ;;  %5950 = vmatprep.subr.bf16.mxu1 %v6427_v47 }
 0x37d   :  { %5833 = vmatprep.subr.bf16.mxu0 %v6302_v20 }
 0x380   :  { %5834 = vmatpush3.bf16.msra.mxu0 %v6303_v42 }
 0x381   :  { %5835 = vmatprep.subr.bf16.mxu0 %v6304_v41 }
 0x384   :  { %5836 = vmatpush3.bf16.msra.mxu0 %v6305_v60 }
 0x385   :  { %5865 = vmatprep.subr.bf16.mxu0 %v6306_v3  ;;  %v6343_v3 = vld [vmem:[%s8004_s7 + $0x28] sm:$0xff]  }
 0x386   :  { %5951 = vmatpush3.bf16.msra.mxu1 %v6343_v3 }
 0x387   :  { %4441 = vmatmul.mubr.bf16.vlgmr.msra.gmra.mrb[32].mxu0 %v4308_v9  ;;  %5952 = vmatprep.subr.bf16.mxu1 %v6427_v47  ;;  %v6345_v9 = vld [vmem:[%s8004_s7 + $0x38] sm:$0xff]  }
 0x388   :  { %5866 = vmatpush3.bf16.msra.mxu0 %v6307_v38  ;;  %4844 = vmatprep.mubr.bf16.mxu0 %v4713_v50  ;;  %v6344_v38 = vld [vmem:[%s8004_s7 + $0x30] sm:$0xff]  }
 0x389   :  { %5867 = vmatprep.subr.bf16.mxu0 %v6308_v32 }
 0x38a   :  { %5953 = vmatpush3.bf16.msra.mxu1 %v6344_v38 }
 0x38b   :  { %5954 = vmatprep.subr.bf16.mxu1 %v6427_v47 }
 0x38c   :  { %5868 = vmatpush3.bf16.msra.mxu0 %v6309_v54 }
 0x38d   :  { %5869 = vmatprep.subr.bf16.mxu0 %v6310_v39 }
 0x38e   :  { %5955 = vmatpush3.bf16.msra.mxu1 %v6345_v9 }
 0x390   :  { %5870 = vmatpush3.bf16.msra.mxu0 %v6311_v15 }
 0x391   :  { %5871 = vmatprep.subr.bf16.mxu0 %v6312_v51 }
 0x394   :  { %5872 = vmatpush3.bf16.msra.mxu0 %v6313_v13 }
 0x395   :  { %5873 = vmatprep.subr.bf16.mxu0 %v6314_v62 }
 0x398   :  { %5874 = vmatpush3.bf16.msra.mxu0 %v6315_v48 }
 0x399   :  { %5875 = vmatprep.subr.bf16.mxu0 %v6316_v57 }
 0x39c   :  { %5876 = vmatpush3.bf16.msra.mxu0 %v6317_v58 }
 0x39d   :  { %5877 = vmatprep.subr.bf16.mxu0 %v6318_v16 }
 0x3a0   :  { %5878 = vmatpush3.bf16.msra.mxu0 %v6319_v56 }
 0x3a1   :  { %5879 = vmatprep.subr.bf16.mxu0 %v6320_v0 }
 0x3a4   :  { %5880 = vmatpush3.bf16.msra.mxu0 %v6321_v44 }
 0x3a5   :  { %5909 = vmatprep.subr.bf16.mxu0 %v6322_v28 }
 0x3a7   :  { %4845 = vmatmul.mubr.bf16.vlgmr.msra.gmra.mrb[36].mxu0 %v4712_v31 }
 0x3a8   :  { %5910 = vmatpush3.bf16.msra.mxu0 %v6323_v23  ;;  %5248 = vmatprep.mubr.bf16.mxu0 %v5117_v45 }
 0x3a9   :  { %5911 = vmatprep.subr.bf16.mxu0 %v6324_v63 }
 0x3ac   :  { %5912 = vmatpush3.bf16.msra.mxu0 %v6325_v49 }
 0x3ad   :  { %5913 = vmatprep.subr.bf16.mxu0 %v6326_v26 }
 0x3b0   :  { %5914 = vmatpush3.bf16.msra.mxu0 %v6327_v1 }
 0x3b1   :  { %5915 = vmatprep.subr.bf16.mxu0 %v6328_v25 }
 0x3b4   :  { %5916 = vmatpush3.bf16.msra.mxu0 %v6329_v7  ;;  %v5737_v7 = vld [vmem:[%s8003_s6] ss:$0 sm:$0xff]  ;;  %s6390_s6 = scalar_lea.vmem %s5386_s12, 128 }
 0x3b5   :  { %5917 = vmatprep.subr.bf16.mxu0 %v6330_v61  ;;  %p6391_p2 = scmp.ne.s32.totalorder %s5386_s12, %s6390_s6  ;;  %p6396_p4 = scmp.lt.s32.totalorder %s6390_s6, %s6390_s6 }
 0x3b7   :  { %p6397_p5 = por %p6396_p4, %p6395_p3 }
 0x3b8   :  { %5918 = vmatpush3.bf16.msra.mxu0 %v6331_v37 }
 0x3b9   :  { %5919 = vmatprep.subr.bf16.mxu0 %v6332_v8  ;;  %p6398_p6 = pnand %p6397_p5, %p6391_p2 }
 0x3bc   :  { %5920 = vmatpush3.bf16.msra.mxu0 %v6333_v6 }
 0x3bd   :  { %5921 = vmatprep.subr.bf16.mxu0 %v6334_v59 }
 0x3c0   :  { %5922 = vmatpush3.bf16.msra.mxu0 %v6335_v17  ;;  %v5738_v17 = vld [vmem:[%s8005_s8] ss:$0 sm:$0xff] }
 0x3c1   :  { %5923 = vmatprep.subr.bf16.mxu0 %v6336_v22 }
 0x3c4   :  { %5924 = vmatpush3.bf16.msra.mxu0 %v6337_v24 }
 0x3c7   :  { %5249 = vmatmul.mubr.bf16.vlgmr.msra.gmra.mrb[40].mxu0 %v5116_v53 }
 0x3f9   :  { %v5771_v5 = vpop.f32.mrb[20].mxu0 }
 0x3fa   :  { %v5772_v19 = vpop.f32.mrb[21].mxu0 }
 0x3fb   :  { %v5773_v10 = vadd.f32 %v5772_v19, %v5771_v5  ;;  %v5774_v27 = vpop.f32.mrb[22].mxu0 }
 0x3fc   :  { %v5859_v40 = vpop.f32.mrb[16].mxu1  ;;  %v5775_v36 = vpop.f32.mrb[23].mxu0 }
 0x3fd   :  { %v5860_v33 = vpop.f32.mrb[17].mxu1 }
 0x3fe   :  { %v5861_v2 = vadd.f32 %v5860_v33, %v5859_v40  ;;  %v5862_v14 = vpop.f32.mrb[18].mxu1 }
 0x3ff   :  { %v5863_v43 = vpop.f32.mrb[19].mxu1 }
 0x41a   :  { %v5793_v52 = vpop.f32.mrb[24].mxu0 }
 0x41b   :  { %v5794_v4 = vpop.f32.mrb[25].mxu0 }
 0x41c   :  { %v5903_v21 = vpop.f32.mrb[20].mxu1  ;;  %v5795_v30 = vadd.f32 %v5794_v4, %v5793_v52  ;;  %v5796_v12 = vpop.f32.mrb[26].mxu0 }
 0x41d   :  { %v5904_v18 = vpop.f32.mrb[21].mxu1  ;;  %v5797_v29 = vpop.f32.mrb[27].mxu0 }
 0x41e   :  { %v4040_v20 = vadd.f32 %v5795_v30, %v5773_v10  ;;  %v5905_v42 = vadd.f32 %v5904_v18, %v5903_v21  ;;  %v5906_v41 = vpop.f32.mrb[22].mxu1 }
 0x41f   :  { %v5907_v60 = vpop.f32.mrb[23].mxu1 }
 0x43a   :  { %v5815_v32 = vpop.f32.mrb[28].mxu0 }
 0x43b   :  { %v5816_v50 = vpop.f32.mrb[29].mxu0 }
 0x43c   :  { %v5817_v54 = vadd.f32 %v5816_v50, %v5815_v32  ;;  %v5818_v39 = vpop.f32.mrb[30].mxu0 }
 0x43d   :  { %v5819_v15 = vpop.f32.mrb[31].mxu0 }
 0x43e   :  { %v4246_v51 = vadd.f32 %v5817_v54, %v4040_v20 }
 0x45a   :  { %v5837_v13 = vpop.f32.mrb[32].mxu0 }
 0x45b   :  { %v5838_v62 = vpop.f32.mrb[33].mxu0 }
 0x45c   :  { %v5839_v48 = vadd.f32 %v5838_v62, %v5837_v13  ;;  %v5840_v57 = vpop.f32.mrb[34].mxu0 }
 0x45d   :  { %v5841_v58 = vpop.f32.mrb[35].mxu0 }
 0x45e   :  { %v4448_v16 = vadd.f32 %v5839_v48, %v4246_v51 }
 0x460   :  { %v4650_v56 = vadd.f32 %v5861_v2, %v4448_v16 }
 0x47a   :  { %v5881_v0 = vpop.f32.mrb[36].mxu0 }
 0x47b   :  { %v5882_v44 = vpop.f32.mrb[37].mxu0 }
 0x47c   :  { %v5883_v28 = vadd.f32 %v5882_v44, %v5881_v0  ;;  %v5884_v23 = vpop.f32.mrb[38].mxu0 }
 0x47d   :  { %v5885_v31 = vpop.f32.mrb[39].mxu0 }
 0x47e   :  { %v4852_v63 = vadd.f32 %v5883_v28, %v4650_v56 }
 0x480   :  { %v5054_v45 = vadd.f32 %v5905_v42, %v4852_v63 }
 0x49a   :  { %v5925_v49 = vpop.f32.mrb[40].mxu0 }
 0x49b   :  { %v5926_v26 = vpop.f32.mrb[41].mxu0 }
 0x49c   :  { %v5927_v1 = vadd.f32 %v5926_v26, %v5925_v49  ;;  %v5928_v25 = vpop.f32.mrb[42].mxu0 }
 0x49d   :  { %v5929_v61 = vpop.f32.mrb[43].mxu0 }
 0x49e   :  { %v5256_v37 = vadd.f32 %v5927_v1, %v5054_v45 }
 0x4a0   :  { %v5264_v8 = vadd.f32 %v5737_v7, %v5256_v37 }
 0x4a2   :  { %v5265_v6 = vmax.f32 %v5264_v8, 0.0 }
 0x4a4   :  { %v5266_v59 = vpack.c.bf16 %v5265_v6, %v5265_v6 }
 0x4a6   :  { %5957 = vmatmul.mubr.bf16.vlgmr.msra.gmra.mrb[24].mxu1 %v5266_v59 }
 0x579   :  { %v5372_v22 = vpop.f32.mrb[24].mxu1 }
 0x57a   :  { %v5373_v24 = vadd.f32 %v5738_v17, %v5372_v22  ;;  %v5958_v53 = vpop.f32.mrb[25].mxu1 }
 0x57b   :  { %v5375_v5 = vpop.f32.mrb[26].mxu1 }
 0x57c   :  { %5378 = vst [vmem:[#allocation7] sm:$0xff] %v5373_v24  ;;  %v5959_v19 = vpop.f32.mrb[27].mxu1 }
 0x57d   :  { %6401 = shalt.err (!%p6398_p6)
}
 0x57e   :  { %s6402_s8 = scalar_lea.hbm %s8006_s9, 128 }
 0x57f   :  { %p6403_p7 = scmp.ne.s32.totalorder %s8006_s9, %s6402_s8  ;;  %p6406_p8 = scmp.lt.u32.totalorder %s6402_s8, %s8006_s9 }
 0x581   :  { %p6408_p9 = pnand %p6406_p8, %p6403_p7 }
 0x583   :  { %6411 = shalt.err (!%p6408_p9)
}
 0x584   :  { %5388 = dma.vmem_to_hbm [thread:$0]  %s5386_s12, 128, %s8006_s9, [#allocation4]  }
 0x585   :  { %6416 = dma.done.wait [#allocation4], 128  }
 0x586   :  { %6417 = vsyncadd [#allocation4], 4294967168 }
 0x587   :  { %5392 = vsyncpa [#allocation3], 1 }
 0x588   :  { %5393 = vsyncpa [#allocation6], 1 }
 0x589   :  { %5394 = vsyncpa [#allocation4], 1 }

</bundles_post_ra>
